<compile_context>
chip_gen: v7x
topology: tpu7x:2x2x1
jax: 0.10.0
libtpu: 0.0.40
codegen_flags: <defaults>
</compile_context>

<pallas_src>
import jax
import jax.numpy as jnp
from jax.experimental import pallas as pl
from jax.experimental.pallas import tpu as pltpu


# ----------------------------------------------------------------------------
# Fused bidirectional-LSTM + MLP kernel (single invocation, both directions)
# ----------------------------------------------------------------------------
def bilstm_mlp_kernel(
    x_ref,       # (T*Bp, E)       bf16  time-major embedded tokens, flattened, batch-padded
    lens_ref,    # (Bp, 1)         int32 sequence lengths (0 for padded rows)
    topics_ref,  # (Bp, Pp)        bf16
    wih_ref,     # (E, 8*Hp)       bf16  [W_ih_fwd | W_ih_bwd], gate blocks padded to Hp
    whhf_ref,    # (Hp, 4*Hp)      bf16  forward recurrence weights
    whhb_ref,    # (Hp, 4*Hp)      bf16  backward recurrence weights
    b_ref,       # (1, 8*Hp)       f32   fused b_ih + b_hh for both directions
    w1f_ref,     # (Hp, Hmp)       bf16  first Linear rows for h_fwd
    w1b_ref,     # (Hp, Hmp)       bf16  first Linear rows for h_bwd
    w1t_ref,     # (Pp, Hmp)       bf16  first Linear rows for topics
    b1_ref,      # (1, Hmp)        f32
    w2t_ref,     # (1, Hmp)        f32   second Linear weight, transposed
    b2_ref,      # (1, 1)          f32
    out_ref,     # (Bp, 1)         f32   mlp_output (padded rows sliced off by wrapper)
    fused_ref,   # (Bp, Hmp)       f32   fused_encoding (padding sliced off by wrapper)
    gx_ref,      # (T*Bp, 8*Hp)    f32   scratch: hoisted x @ [W_ih_f|W_ih_b] + b
):
    B = lens_ref.shape[0]
    H = whhf_ref.shape[0]
    G = 4 * H
    T = x_ref.shape[0] // B

    # --- Hoisted input projection for BOTH directions in one MXU matmul, bias folded in.
    gx_ref[...] = (
        jnp.dot(x_ref[...], wih_ref[...], preferred_element_type=jnp.float32)
        + b_ref[...]
    )

    whh_f = whhf_ref[...]
    whh_b = whhb_ref[...]
    lens = lens_ref[...]                        # (Bp, 1) int32

    def cell(gates, h, c, idx):
        # H is a multiple of 128 -> every slice below is lane-aligned (full vregs).
        i_g = jax.nn.sigmoid(gates[:, 0:H])
        f_g = jax.nn.sigmoid(gates[:, H:2 * H])
        g_g = jnp.tanh(gates[:, 2 * H:3 * H])
        o_g = jax.nn.sigmoid(gates[:, 3 * H:4 * H])
        c_new = f_g * c + i_g * g_g
        h_new = o_g * jnp.tanh(c_new)
        m = idx < lens                          # (Bp,1): padding carries state forward
        return jnp.where(m, h_new, h), jnp.where(m, c_new, c)

    def step(t, carry):
        h_f, c_f, h_b, c_b = carry
        idx_f = t
        idx_b = T - 1 - t
        off_f = pl.multiple_of(idx_f * B, 8)    # B is a multiple of 8 -> aligned slices
        off_b = pl.multiple_of(idx_b * B, 8)

        gx_f = gx_ref[pl.ds(off_f, B), pl.ds(0, G)]      # (Bp, 4Hp) forward half
        gx_b = gx_ref[pl.ds(off_b, B), pl.ds(G, G)]      # (Bp, 4Hp) backward half

        # Two independent recurrence matmuls back-to-back (overlap MXU latency).
        gates_f = gx_f + jnp.dot(h_f.astype(whh_f.dtype), whh_f,
                                 preferred_element_type=jnp.float32)
        gates_b = gx_b + jnp.dot(h_b.astype(whh_b.dtype), whh_b,
                                 preferred_element_type=jnp.float32)

        h_f, c_f = cell(gates_f, h_f, c_f, idx_f)
        h_b, c_b = cell(gates_b, h_b, c_b, idx_b)
        return h_f, c_f, h_b, c_b

    z = jnp.zeros((B, H), jnp.float32)
    h_f, _, h_b, _ = jax.lax.fori_loop(0, T, step, (z, z, z, z),
                                       unroll=min(T, 8))

    # --- MLP epilogue: split-W1 (no concat), bf16 operands with f32 MXU accumulation.
    fused = (
        jnp.dot(h_f.astype(jnp.bfloat16), w1f_ref[...], preferred_element_type=jnp.float32)
        + jnp.dot(h_b.astype(jnp.bfloat16), w1b_ref[...], preferred_element_type=jnp.float32)
        + jnp.dot(topics_ref[...], w1t_ref[...], preferred_element_type=jnp.float32)
        + b1_ref[...]
    )
    fused_ref[...] = fused                      # lane-dense store (Hmp multiple of 128)
    hidden = jnp.maximum(fused, 0.0)
    # Final (Hm,1) projection as VPU multiply + lane reduction (avoid an N=1 MXU pass).
    out_ref[...] = jnp.sum(hidden * w2t_ref[...], axis=-1, keepdims=True) + b2_ref[...]


def bilstm_mlp_call(x_flat, lens, topics, wih, whh_f, whh_b, b,
                    w1f, w1b, w1t, b1, w2t, b2, *, T, B_pad, H_pad, Hm_pad):
    return pl.pallas_call(
        bilstm_mlp_kernel,
        out_shape=(
            jax.ShapeDtypeStruct((B_pad, 1), jnp.float32),
            jax.ShapeDtypeStruct((B_pad, Hm_pad), jnp.float32),
        ),
        scratch_shapes=[
            pltpu.VMEM((T * B_pad, 8 * H_pad), jnp.float32),   # hoisted gate pre-activations
        ],
        compiler_params=pltpu.CompilerParams(
            # TODO(synk): size per generation / production T,B,H (v7x has only 64 MiB VMEM).
            vmem_limit_bytes=32 * 1024 * 1024,
        ),
    )(x_flat, lens, topics, wih, whh_f, whh_b, b, w1f, w1b, w1t, b1, w2t, b2)


# ----------------------------------------------------------------------------
# Parameters + forward wrapper
# ----------------------------------------------------------------------------
def init_params(key, vocab_size, emb_dim, hidden_dim, num_topics, mlp_hidden):
    ks = jax.random.split(key, 8)
    s = 0.1
    mlp_in = 2 * hidden_dim + num_topics
    return {
        "embedding": s * jax.random.normal(ks[0], (vocab_size, emb_dim), jnp.float32),
        # stacked (dir 0 = fwd, dir 1 = bwd) LSTM weights, stored transposed vs PyTorch
        "w_ih": (s * jax.random.normal(ks[1], (2, emb_dim, 4 * hidden_dim), jnp.float32)
                 ).astype(jnp.bfloat16),
        "w_hh": (s * jax.random.normal(ks[2], (2, hidden_dim, 4 * hidden_dim), jnp.float32)
                 ).astype(jnp.bfloat16),
        "b": s * jax.random.normal(ks[3], (2, 1, 4 * hidden_dim), jnp.float32),
        # MLP (Linear -> ReLU -> Linear), weights stored (in, out)
        "w1": s * jax.random.normal(ks[4], (mlp_in, mlp_hidden), jnp.float32),
        "b1": s * jax.random.normal(ks[5], (1, mlp_hidden), jnp.float32),
        "w2": s * jax.random.normal(ks[6], (mlp_hidden, 1), jnp.float32),
        "b2": s * jax.random.normal(ks[7], (1, 1), jnp.float32),
    }


def _round_up(x, m):
    return ((x + m - 1) // m) * m


def _pad_axis(a, axis, new_size):
    pad = [(0, 0)] * a.ndim
    pad[axis] = (0, new_size - a.shape[axis])
    return jnp.pad(a, pad)


def _pad_gate_cols(w, H, H_pad):
    """(..., 4H) with [i|f|g|o] blocks -> (..., 4*H_pad), each gate block zero-padded.

    Zero padding is exact: padded gate pre-activations are 0 => i=f=o=0.5, g=0, so the
    padded hidden/cell entries stay exactly 0 for all timesteps.
    """
    parts = []
    for k in range(4):
        blk = w[..., k * H:(k + 1) * H]
        parts.append(_pad_axis(blk, w.ndim - 1, H_pad))
    return jnp.concatenate(parts, axis=-1)


@jax.jit
def lstm_mlp_ensemble_forward(params, text, text_len, topics):
    """text: (B, T) int32 ids; text_len: (B,) int32; topics: (B, P) f32."""
    B, T = text.shape
    E = params["embedding"].shape[1]
    H = params["w_hh"].shape[1]
    Hm = params["w1"].shape[1]
    P = topics.shape[1]

    B_pad = _round_up(B, 8)
    H_pad = _round_up(H, 128)
    P_pad = _round_up(P, 128)
    Hm_pad = _round_up(Hm, 128)

    # Time-major embedding gather (no post-gather transpose copy in HBM).
    emb_tm = jnp.take(params["embedding"], text.T, axis=0)          # (T, B, E)
    emb_tm = _pad_axis(emb_tm, 1, B_pad)                            # (T, Bp, E)
    x_flat = emb_tm.reshape(T * B_pad, E).astype(jnp.bfloat16)

    lens = _pad_axis(text_len.astype(jnp.int32), 0, B_pad).reshape(B_pad, 1)
    topics_p = _pad_axis(_pad_axis(topics.astype(jnp.float32), 0, B_pad), 1, P_pad
                         ).astype(jnp.bfloat16)

    # LSTM weights: pad each gate block H->Hp, pad recurrence rows, fuse directions along N.
    wih_f = _pad_gate_cols(params["w_ih"][0], H, H_pad)             # (E, 4*Hp)
    wih_b = _pad_gate_cols(params["w_ih"][1], H, H_pad)
    wih = jnp.concatenate([wih_f, wih_b], axis=-1)                  # (E, 8*Hp) bf16

    whh_f = _pad_axis(_pad_gate_cols(params["w_hh"][0], H, H_pad), 0, H_pad)
    whh_b = _pad_axis(_pad_gate_cols(params["w_hh"][1], H, H_pad), 0, H_pad)

    b_f = _pad_gate_cols(params["b"][0], H, H_pad)                  # (1, 4*Hp)
    b_b = _pad_gate_cols(params["b"][1], H, H_pad)
    b = jnp.concatenate([b_f, b_b], axis=-1)                        # (1, 8*Hp) f32

    # MLP first layer split into [h_fwd | h_bwd | topics] row blocks, zero-padded.
    w1 = params["w1"]
    w1f = _pad_axis(_pad_axis(w1[:H], 0, H_pad), 1, Hm_pad).astype(jnp.bfloat16)
    w1b = _pad_axis(_pad_axis(w1[H:2 * H], 0, H_pad), 1, Hm_pad).astype(jnp.bfloat16)
    w1t = _pad_axis(_pad_axis(w1[2 * H:], 0, P_pad), 1, Hm_pad).astype(jnp.bfloat16)
    b1 = _pad_axis(params["b1"], 1, Hm_pad)                         # (1, Hmp) f32
    w2t = _pad_axis(params["w2"].T, 1, Hm_pad)                      # (1, Hmp) f32
    b2 = params["b2"]

    out_p, fused_p = bilstm_mlp_call(
        x_flat, lens, topics_p, wih, whh_f, whh_b, b,
        w1f, w1b, w1t, b1, w2t, b2,
        T=T, B_pad=B_pad, H_pad=H_pad, Hm_pad=Hm_pad,
    )
    return out_p[:B], fused_p[:B, :Hm]


# ----------------------------------------------------------------------------
# Pure-JAX reference (f32) for a sanity check
# ----------------------------------------------------------------------------
def reference_forward(params, text, text_len, topics):
    B, T = text.shape
    H = params["w_hh"].shape[1]
    emb = jnp.take(params["embedding"], text, axis=0)
    x = jnp.transpose(emb, (1, 0, 2))                               # (T, B, E)

    def run_dir(d, reverse):
        wih = params["w_ih"][d].astype(jnp.float32)
        whh = params["w_hh"][d].astype(jnp.float32)
        b = params["b"][d]
        h = jnp.zeros((B, H), jnp.float32)
        c = jnp.zeros((B, H), jnp.float32)
        order = range(T - 1, -1, -1) if reverse else range(T)
        for t in order:
            g = x[t] @ wih + h @ whh + b
            i = jax.nn.sigmoid(g[:, :H])
            f = jax.nn.sigmoid(g[:, H:2 * H])
            gg = jnp.tanh(g[:, 2 * H:3 * H])
            o = jax.nn.sigmoid(g[:, 3 * H:])
            c_new = f * c + i * gg
            h_new = o * jnp.tanh(c_new)
            m = (t < text_len)[:, None]
            h = jnp.where(m, h_new, h)
            c = jnp.where(m, c_new, c)
        return h

    h_f = run_dir(0, False)
    h_b = run_dir(1, True)
    concat = jnp.concatenate([h_f, h_b, topics], axis=1)
    fused = concat @ params["w1"] + params["b1"]
    out = jnp.maximum(fused, 0.0) @ params["w2"] + params["b2"]
    return out, fused


# ----------------------------------------------------------------------------
# main
# ----------------------------------------------------------------------------
if __name__ == "__main__":
    B = 2            # batch
    T = 8            # sequence length
    VOCAB = 50
    EMB = 16         # embedding dim (LSTM input size)
    HIDDEN_DIM = 32  # lstm_args['hidden_dim']
    NUM_TOPICS = 4   # mlp_args['num_topics']
    MLP_HIDDEN = 32  # mlp_args['hidden_size']

    key = jax.random.PRNGKey(0)
    k_param, k_text, k_topics = jax.random.split(key, 3)

    params = init_params(k_param, VOCAB, EMB, HIDDEN_DIM, NUM_TOPICS, MLP_HIDDEN)

    text = jax.random.randint(k_text, (B, T), 0, VOCAB, dtype=jnp.int32)
    text_len = jnp.array([T, T - 3], dtype=jnp.int32)
    topics = jax.random.normal(k_topics, (B, NUM_TOPICS), jnp.float32)

    mlp_out, fused = lstm_mlp_ensemble_forward(params, text, text_len, topics)
    jax.block_until_ready((mlp_out, fused))

    assert mlp_out.shape == (B, 1)
    assert fused.shape == (B, MLP_HIDDEN)

    # numerical sanity check vs f32 reference (kernel uses bf16 operands, f32 accumulation)
    ref_out, ref_fused = reference_forward(params, text, text_len, topics)
    assert jnp.allclose(mlp_out, ref_out, atol=5e-2, rtol=5e-2)
    assert jnp.allclose(fused, ref_fused, atol=5e-2, rtol=5e-2)

    print("KERNEL_OK")
</pallas_src>

<mosaic_0001>
module attributes {stable_mosaic.version = 11 : i64} {
  func.func @bilstm_mlp_kernel(%arg0: memref<64x16xbf16, #tpu.memory_space<vmem>>, %arg1: memref<8x1xi32, #tpu.memory_space<vmem>>, %arg2: memref<8x128xbf16, #tpu.memory_space<vmem>>, %arg3: memref<16x1024xbf16, #tpu.memory_space<vmem>>, %arg4: memref<128x512xbf16, #tpu.memory_space<vmem>>, %arg5: memref<128x512xbf16, #tpu.memory_space<vmem>>, %arg6: memref<1x1024xf32, #tpu.memory_space<vmem>>, %arg7: memref<128x128xbf16, #tpu.memory_space<vmem>>, %arg8: memref<128x128xbf16, #tpu.memory_space<vmem>>, %arg9: memref<128x128xbf16, #tpu.memory_space<vmem>>, %arg10: memref<1x128xf32, #tpu.memory_space<vmem>>, %arg11: memref<1x128xf32, #tpu.memory_space<vmem>>, %arg12: memref<1x1xf32, #tpu.memory_space<vmem>>, %arg13: memref<8x1xf32, #tpu.memory_space<vmem>>, %arg14: memref<8x128xf32, #tpu.memory_space<vmem>>, %arg15: memref<64x1024xf32, #tpu.memory_space<vmem>>) attributes {dimension_semantics = [], scalar_prefetch = 0 : i64, scratch_operands = 1 : i64, tpu.core_type = #tpu.core_type<tc>} {
    %c0 = arith.constant 0 : index
    %c0_0 = arith.constant 0 : index
    %0 = vector.load %arg0[%c0, %c0_0] : memref<64x16xbf16, #tpu.memory_space<vmem>>, vector<64x16xbf16>
    %c0_1 = arith.constant 0 : index
    %c0_2 = arith.constant 0 : index
    %1 = vector.load %arg3[%c0_1, %c0_2] : memref<16x1024xbf16, #tpu.memory_space<vmem>>, vector<16x1024xbf16>
    %cst = arith.constant dense<0.000000e+00> : vector<64x1024xf32>
    %2 = tpu.matmul %0, %1, %cst {dimension_numbers = #tpu.dot_dimension_numbers<[1], [0], [0], [1], [0, 0, 1, 1], [], []>} : vector<64x16xbf16>, vector<16x1024xbf16>, vector<64x1024xf32> -> vector<64x1024xf32>
    %c0_3 = arith.constant 0 : index
    %c0_4 = arith.constant 0 : index
    %3 = vector.load %arg6[%c0_3, %c0_4] : memref<1x1024xf32, #tpu.memory_space<vmem>>, vector<1x1024xf32>
    %4 = vector.broadcast %3 : vector<1x1024xf32> to vector<64x1024xf32>
    %5 = arith.addf %2, %4 : vector<64x1024xf32>
    %c0_5 = arith.constant 0 : index
    %c0_6 = arith.constant 0 : index
    %6 = vector.load %arg15[%c0_5, %c0_6] : memref<64x1024xf32, #tpu.memory_space<vmem>>, vector<64x1024xf32>
    tpu.vector_store %arg15[%c0_5, %c0_6], %5 {strides = array<i32>} : memref<64x1024xf32, #tpu.memory_space<vmem>>, vector<64x1024xf32>,
    %c0_7 = arith.constant 0 : index
    %c0_8 = arith.constant 0 : index
    %7 = vector.load %arg4[%c0_7, %c0_8] : memref<128x512xbf16, #tpu.memory_space<vmem>>, vector<128x512xbf16>
    %c0_9 = arith.constant 0 : index
    %c0_10 = arith.constant 0 : index
    %8 = vector.load %arg5[%c0_9, %c0_10] : memref<128x512xbf16, #tpu.memory_space<vmem>>, vector<128x512xbf16>
    %c0_11 = arith.constant 0 : index
    %c0_12 = arith.constant 0 : index
    %9 = vector.load %arg1[%c0_11, %c0_12] : memref<8x1xi32, #tpu.memory_space<vmem>>, vector<8x1xi32>
    %cst_13 = arith.constant 0.000000e+00 : f32
    %10 = vector.broadcast %cst_13 : f32 to vector<8x128xf32>
    %c0_i32 = arith.constant 0 : i32
    %c7_i32 = arith.constant 7 : i32
    %11 = arith.subi %c7_i32, %c0_i32 : i32
    %c8_i32 = arith.constant 8 : i32
    %12 = arith.muli %c0_i32, %c8_i32 : i32
    %13 = tpu.assume_multiple %12, 8 : i32
    %c8_i32_14 = arith.constant 8 : i32
    %14 = arith.muli %11, %c8_i32_14 : i32
    %15 = tpu.assume_multiple %14, 8 : i32
    %16 = arith.index_cast %13 : i32 to index
    %c0_15 = arith.constant 0 : index
    %17 = vector.load %arg15[%16, %c0_15] : memref<64x1024xf32, #tpu.memory_space<vmem>>, vector<8x512xf32>
    %18 = arith.index_cast %15 : i32 to index
    %c512 = arith.constant 512 : index
    %19 = vector.load %arg15[%18, %c512] : memref<64x1024xf32, #tpu.memory_space<vmem>>, vector<8x512xf32>
    %20 = arith.truncf %10 : vector<8x128xf32> to vector<8x128xbf16>
    %cst_16 = arith.constant dense<0.000000e+00> : vector<8x512xf32>
    %21 = tpu.matmul %20, %7, %cst_16 {dimension_numbers = #tpu.dot_dimension_numbers<[1], [0], [0], [1], [0, 0, 1, 1], [], []>} : vector<8x128xbf16>, vector<128x512xbf16>, vector<8x512xf32> -> vector<8x512xf32>
    %22 = arith.addf %17, %21 : vector<8x512xf32>
    %23 = arith.truncf %10 : vector<8x128xf32> to vector<8x128xbf16>
    %cst_17 = arith.constant dense<0.000000e+00> : vector<8x512xf32>
    %24 = tpu.matmul %23, %8, %cst_17 {dimension_numbers = #tpu.dot_dimension_numbers<[1], [0], [0], [1], [0, 0, 1, 1], [], []>} : vector<8x128xbf16>, vector<128x512xbf16>, vector<8x512xf32> -> vector<8x512xf32>
    %25 = arith.addf %19, %24 : vector<8x512xf32>
    %26 = vector.extract_strided_slice %22 {offsets = [0, 0], sizes = [8, 128], strides = [1, 1]} : vector<8x512xf32> to vector<8x128xf32>
    %27 = arith.negf %26 : vector<8x128xf32>
    %28 = math.exp %27 : vector<8x128xf32>
    %cst_18 = arith.constant 1.000000e+00 : f32
    %29 = vector.broadcast %cst_18 : f32 to vector<8x128xf32>
    %30 = arith.addf %29, %28 : vector<8x128xf32>
    %31 = arith.divf %29, %30 : vector<8x128xf32>
    %32 = vector.extract_strided_slice %22 {offsets = [0, 128], sizes = [8, 128], strides = [1, 1]} : vector<8x512xf32> to vector<8x128xf32>
    %33 = arith.negf %32 : vector<8x128xf32>
    %34 = math.exp %33 : vector<8x128xf32>
    %cst_19 = arith.constant 1.000000e+00 : f32
    %35 = vector.broadcast %cst_19 : f32 to vector<8x128xf32>
    %36 = arith.addf %35, %34 : vector<8x128xf32>
    %37 = arith.divf %35, %36 : vector<8x128xf32>
    %38 = vector.extract_strided_slice %22 {offsets = [0, 256], sizes = [8, 128], strides = [1, 1]} : vector<8x512xf32> to vector<8x128xf32>
    %39 = math.tanh %38 : vector<8x128xf32>
    %40 = vector.extract_strided_slice %22 {offsets = [0, 384], sizes = [8, 128], strides = [1, 1]} : vector<8x512xf32> to vector<8x128xf32>
    %41 = arith.negf %40 : vector<8x128xf32>
    %42 = math.exp %41 : vector<8x128xf32>
    %cst_20 = arith.constant 1.000000e+00 : f32
    %43 = vector.broadcast %cst_20 : f32 to vector<8x128xf32>
    %44 = arith.addf %43, %42 : vector<8x128xf32>
    %45 = arith.divf %43, %44 : vector<8x128xf32>
    %46 = arith.mulf %37, %10 : vector<8x128xf32>
    %47 = arith.mulf %31, %39 : vector<8x128xf32>
    %48 = arith.addf %46, %47 : vector<8x128xf32>
    %49 = math.tanh %48 : vector<8x128xf32>
    %50 = arith.mulf %45, %49 : vector<8x128xf32>
    %51 = vector.broadcast %c0_i32 : i32 to vector<8x1xi32>
    %52 = arith.cmpi slt, %51, %9 : vector<8x1xi32>
    %53 = vector.shape_cast %52 : vector<8x1xi1> to vector<8x1xi1>
    %54 = vector.broadcast %53 : vector<8x1xi1> to vector<8x128xi1>
    %55 = arith.select %54, %50, %10 : vector<8x128xi1>, vector<8x128xf32>
    %56 = vector.shape_cast %52 : vector<8x1xi1> to vector<8x1xi1>
    %57 = vector.broadcast %56 : vector<8x1xi1> to vector<8x128xi1>
    %58 = arith.select %57, %48, %10 : vector<8x128xi1>, vector<8x128xf32>
    %59 = vector.extract_strided_slice %25 {offsets = [0, 0], sizes = [8, 128], strides = [1, 1]} : vector<8x512xf32> to vector<8x128xf32>
    %60 = arith.negf %59 : vector<8x128xf32>
    %61 = math.exp %60 : vector<8x128xf32>
    %cst_21 = arith.constant 1.000000e+00 : f32
    %62 = vector.broadcast %cst_21 : f32 to vector<8x128xf32>
    %63 = arith.addf %62, %61 : vector<8x128xf32>
    %64 = arith.divf %62, %63 : vector<8x128xf32>
    %65 = vector.extract_strided_slice %25 {offsets = [0, 128], sizes = [8, 128], strides = [1, 1]} : vector<8x512xf32> to vector<8x128xf32>
    %66 = arith.negf %65 : vector<8x128xf32>
    %67 = math.exp %66 : vector<8x128xf32>
    %cst_22 = arith.constant 1.000000e+00 : f32
    %68 = vector.broadcast %cst_22 : f32 to vector<8x128xf32>
    %69 = arith.addf %68, %67 : vector<8x128xf32>
    %70 = arith.divf %68, %69 : vector<8x128xf32>
    %71 = vector.extract_strided_slice %25 {offsets = [0, 256], sizes = [8, 128], strides = [1, 1]} : vector<8x512xf32> to vector<8x128xf32>
    %72 = math.tanh %71 : vector<8x128xf32>
    %73 = vector.extract_strided_slice %25 {offsets = [0, 384], sizes = [8, 128], strides = [1, 1]} : vector<8x512xf32> to vector<8x128xf32>
    %74 = arith.negf %73 : vector<8x128xf32>
    %75 = math.exp %74 : vector<8x128xf32>
    %cst_23 = arith.constant 1.000000e+00 : f32
    %76 = vector.broadcast %cst_23 : f32 to vector<8x128xf32>
    %77 = arith.addf %76, %75 : vector<8x128xf32>
    %78 = arith.divf %76, %77 : vector<8x128xf32>
    %79 = arith.mulf %70, %10 : vector<8x128xf32>
    %80 = arith.mulf %64, %72 : vector<8x128xf32>
    %81 = arith.addf %79, %80 : vector<8x128xf32>
    %82 = math.tanh %81 : vector<8x128xf32>
    %83 = arith.mulf %78, %82 : vector<8x128xf32>
    %84 = vector.broadcast %11 : i32 to vector<8x1xi32>
    %85 = arith.cmpi slt, %84, %9 : vector<8x1xi32>
    %86 = vector.shape_cast %85 : vector<8x1xi1> to vector<8x1xi1>
    %87 = vector.broadcast %86 : vector<8x1xi1> to vector<8x128xi1>
    %88 = arith.select %87, %83, %10 : vector<8x128xi1>, vector<8x128xf32>
    %89 = vector.shape_cast %85 : vector<8x1xi1> to vector<8x1xi1>
    %90 = vector.broadcast %89 : vector<8x1xi1> to vector<8x128xi1>
    %91 = arith.select %90, %81, %10 : vector<8x128xi1>, vector<8x128xf32>
    %c1_i32 = arith.constant 1 : i32
    %c7_i32_24 = arith.constant 7 : i32
    %92 = arith.subi %c7_i32_24, %c1_i32 : i32
    %c8_i32_25 = arith.constant 8 : i32
    %93 = arith.muli %c1_i32, %c8_i32_25 : i32
    %94 = tpu.assume_multiple %93, 8 : i32
    %c8_i32_26 = arith.constant 8 : i32
    %95 = arith.muli %92, %c8_i32_26 : i32
    %96 = tpu.assume_multiple %95, 8 : i32
    %97 = arith.index_cast %94 : i32 to index
    %c0_27 = arith.constant 0 : index
    %98 = vector.load %arg15[%97, %c0_27] : memref<64x1024xf32, #tpu.memory_space<vmem>>, vector<8x512xf32>
    %99 = arith.index_cast %96 : i32 to index
    %c512_28 = arith.constant 512 : index
    %100 = vector.load %arg15[%99, %c512_28] : memref<64x1024xf32, #tpu.memory_space<vmem>>, vector<8x512xf32>
    %101 = arith.truncf %55 : vector<8x128xf32> to vector<8x128xbf16>
    %cst_29 = arith.constant dense<0.000000e+00> : vector<8x512xf32>
    %102 = tpu.matmul %101, %7, %cst_29 {dimension_numbers = #tpu.dot_dimension_numbers<[1], [0], [0], [1], [0, 0, 1, 1], [], []>} : vector<8x128xbf16>, vector<128x512xbf16>, vector<8x512xf32> -> vector<8x512xf32>
    %103 = arith.addf %98, %102 : vector<8x512xf32>
    %104 = arith.truncf %88 : vector<8x128xf32> to vector<8x128xbf16>
    %cst_30 = arith.constant dense<0.000000e+00> : vector<8x512xf32>
    %105 = tpu.matmul %104, %8, %cst_30 {dimension_numbers = #tpu.dot_dimension_numbers<[1], [0], [0], [1], [0, 0, 1, 1], [], []>} : vector<8x128xbf16>, vector<128x512xbf16>, vector<8x512xf32> -> vector<8x512xf32>
    %106 = arith.addf %100, %105 : vector<8x512xf32>
    %107 = vector.extract_strided_slice %103 {offsets = [0, 0], sizes = [8, 128], strides = [1, 1]} : vector<8x512xf32> to vector<8x128xf32>
    %108 = arith.negf %107 : vector<8x128xf32>
    %109 = math.exp %108 : vector<8x128xf32>
    %cst_31 = arith.constant 1.000000e+00 : f32
    %110 = vector.broadcast %cst_31 : f32 to vector<8x128xf32>
    %111 = arith.addf %110, %109 : vector<8x128xf32>
    %112 = arith.divf %110, %111 : vector<8x128xf32>
    %113 = vector.extract_strided_slice %103 {offsets = [0, 128], sizes = [8, 128], strides = [1, 1]} : vector<8x512xf32> to vector<8x128xf32>
    %114 = arith.negf %113 : vector<8x128xf32>
    %115 = math.exp %114 : vector<8x128xf32>
    %cst_32 = arith.constant 1.000000e+00 : f32
    %116 = vector.broadcast %cst_32 : f32 to vector<8x128xf32>
    %117 = arith.addf %116, %115 : vector<8x128xf32>
    %118 = arith.divf %116, %117 : vector<8x128xf32>
    %119 = vector.extract_strided_slice %103 {offsets = [0, 256], sizes = [8, 128], strides = [1, 1]} : vector<8x512xf32> to vector<8x128xf32>
    %120 = math.tanh %119 : vector<8x128xf32>
    %121 = vector.extract_strided_slice %103 {offsets = [0, 384], sizes = [8, 128], strides = [1, 1]} : vector<8x512xf32> to vector<8x128xf32>
    %122 = arith.negf %121 : vector<8x128xf32>
    %123 = math.exp %122 : vector<8x128xf32>
    %cst_33 = arith.constant 1.000000e+00 : f32
    %124 = vector.broadcast %cst_33 : f32 to vector<8x128xf32>
    %125 = arith.addf %124, %123 : vector<8x128xf32>
    %126 = arith.divf %124, %125 : vector<8x128xf32>
    %127 = arith.mulf %118, %58 : vector<8x128xf32>
    %128 = arith.mulf %112, %120 : vector<8x128xf32>
    %129 = arith.addf %127, %128 : vector<8x128xf32>
    %130 = math.tanh %129 : vector<8x128xf32>
    %131 = arith.mulf %126, %130 : vector<8x128xf32>
    %132 = vector.broadcast %c1_i32 : i32 to vector<8x1xi32>
    %133 = arith.cmpi slt, %132, %9 : vector<8x1xi32>
    %134 = vector.shape_cast %133 : vector<8x1xi1> to vector<8x1xi1>
    %135 = vector.broadcast %134 : vector<8x1xi1> to vector<8x128xi1>
    %136 = arith.select %135, %131, %55 : vector<8x128xi1>, vector<8x128xf32>
    %137 = vector.shape_cast %133 : vector<8x1xi1> to vector<8x1xi1>
    %138 = vector.broadcast %137 : vector<8x1xi1> to vector<8x128xi1>
    %139 = arith.select %138, %129, %58 : vector<8x128xi1>, vector<8x128xf32>
    %140 = vector.extract_strided_slice %106 {offsets = [0, 0], sizes = [8, 128], strides = [1, 1]} : vector<8x512xf32> to vector<8x128xf32>
    %141 = arith.negf %140 : vector<8x128xf32>
    %142 = math.exp %141 : vector<8x128xf32>
    %cst_34 = arith.constant 1.000000e+00 : f32
    %143 = vector.broadcast %cst_34 : f32 to vector<8x128xf32>
    %144 = arith.addf %143, %142 : vector<8x128xf32>
    %145 = arith.divf %143, %144 : vector<8x128xf32>
    %146 = vector.extract_strided_slice %106 {offsets = [0, 128], sizes = [8, 128], strides = [1, 1]} : vector<8x512xf32> to vector<8x128xf32>
    %147 = arith.negf %146 : vector<8x128xf32>
    %148 = math.exp %147 : vector<8x128xf32>
    %cst_35 = arith.constant 1.000000e+00 : f32
    %149 = vector.broadcast %cst_35 : f32 to vector<8x128xf32>
    %150 = arith.addf %149, %148 : vector<8x128xf32>
    %151 = arith.divf %149, %150 : vector<8x128xf32>
    %152 = vector.extract_strided_slice %106 {offsets = [0, 256], sizes = [8, 128], strides = [1, 1]} : vector<8x512xf32> to vector<8x128xf32>
    %153 = math.tanh %152 : vector<8x128xf32>
    %154 = vector.extract_strided_slice %106 {offsets = [0, 384], sizes = [8, 128], strides = [1, 1]} : vector<8x512xf32> to vector<8x128xf32>
    %155 = arith.negf %154 : vector<8x128xf32>
    %156 = math.exp %155 : vector<8x128xf32>
    %cst_36 = arith.constant 1.000000e+00 : f32
    %157 = vector.broadcast %cst_36 : f32 to vector<8x128xf32>
    %158 = arith.addf %157, %156 : vector<8x128xf32>
    %159 = arith.divf %157, %158 : vector<8x128xf32>
    %160 = arith.mulf %151, %91 : vector<8x128xf32>
    %161 = arith.mulf %145, %153 : vector<8x128xf32>
    %162 = arith.addf %160, %161 : vector<8x128xf32>
    %163 = math.tanh %162 : vector<8x128xf32>
    %164 = arith.mulf %159, %163 : vector<8x128xf32>
    %165 = vector.broadcast %92 : i32 to vector<8x1xi32>
    %166 = arith.cmpi slt, %165, %9 : vector<8x1xi32>
    %167 = vector.shape_cast %166 : vector<8x1xi1> to vector<8x1xi1>
    %168 = vector.broadcast %167 : vector<8x1xi1> to vector<8x128xi1>
    %169 = arith.select %168, %164, %88 : vector<8x128xi1>, vector<8x128xf32>
    %170 = vector.shape_cast %166 : vector<8x1xi1> to vector<8x1xi1>
    %171 = vector.broadcast %170 : vector<8x1xi1> to vector<8x128xi1>
    %172 = arith.select %171, %162, %91 : vector<8x128xi1>, vector<8x128xf32>
    %c2_i32 = arith.constant 2 : i32
    %c7_i32_37 = arith.constant 7 : i32
    %173 = arith.subi %c7_i32_37, %c2_i32 : i32
    %c8_i32_38 = arith.constant 8 : i32
    %174 = arith.muli %c2_i32, %c8_i32_38 : i32
    %175 = tpu.assume_multiple %174, 8 : i32
    %c8_i32_39 = arith.constant 8 : i32
    %176 = arith.muli %173, %c8_i32_39 : i32
    %177 = tpu.assume_multiple %176, 8 : i32
    %178 = arith.index_cast %175 : i32 to index
    %c0_40 = arith.constant 0 : index
    %179 = vector.load %arg15[%178, %c0_40] : memref<64x1024xf32, #tpu.memory_space<vmem>>, vector<8x512xf32>
    %180 = arith.index_cast %177 : i32 to index
    %c512_41 = arith.constant 512 : index
    %181 = vector.load %arg15[%180, %c512_41] : memref<64x1024xf32, #tpu.memory_space<vmem>>, vector<8x512xf32>
    %182 = arith.truncf %136 : vector<8x128xf32> to vector<8x128xbf16>
    %cst_42 = arith.constant dense<0.000000e+00> : vector<8x512xf32>
    %183 = tpu.matmul %182, %7, %cst_42 {dimension_numbers = #tpu.dot_dimension_numbers<[1], [0], [0], [1], [0, 0, 1, 1], [], []>} : vector<8x128xbf16>, vector<128x512xbf16>, vector<8x512xf32> -> vector<8x512xf32>
    %184 = arith.addf %179, %183 : vector<8x512xf32>
    %185 = arith.truncf %169 : vector<8x128xf32> to vector<8x128xbf16>
    %cst_43 = arith.constant dense<0.000000e+00> : vector<8x512xf32>
    %186 = tpu.matmul %185, %8, %cst_43 {dimension_numbers = #tpu.dot_dimension_numbers<[1], [0], [0], [1], [0, 0, 1, 1], [], []>} : vector<8x128xbf16>, vector<128x512xbf16>, vector<8x512xf32> -> vector<8x512xf32>
    %187 = arith.addf %181, %186 : vector<8x512xf32>
    %188 = vector.extract_strided_slice %184 {offsets = [0, 0], sizes = [8, 128], strides = [1, 1]} : vector<8x512xf32> to vector<8x128xf32>
    %189 = arith.negf %188 : vector<8x128xf32>
    %190 = math.exp %189 : vector<8x128xf32>
    %cst_44 = arith.constant 1.000000e+00 : f32
    %191 = vector.broadcast %cst_44 : f32 to vector<8x128xf32>
    %192 = arith.addf %191, %190 : vector<8x128xf32>
    %193 = arith.divf %191, %192 : vector<8x128xf32>
    %194 = vector.extract_strided_slice %184 {offsets = [0, 128], sizes = [8, 128], strides = [1, 1]} : vector<8x512xf32> to vector<8x128xf32>
    %195 = arith.negf %194 : vector<8x128xf32>
    %196 = math.exp %195 : vector<8x128xf32>
    %cst_45 = arith.constant 1.000000e+00 : f32
    %197 = vector.broadcast %cst_45 : f32 to vector<8x128xf32>
    %198 = arith.addf %197, %196 : vector<8x128xf32>
    %199 = arith.divf %197, %198 : vector<8x128xf32>
    %200 = vector.extract_strided_slice %184 {offsets = [0, 256], sizes = [8, 128], strides = [1, 1]} : vector<8x512xf32> to vector<8x128xf32>
    %201 = math.tanh %200 : vector<8x128xf32>
    %202 = vector.extract_strided_slice %184 {offsets = [0, 384], sizes = [8, 128], strides = [1, 1]} : vector<8x512xf32> to vector<8x128xf32>
    %203 = arith.negf %202 : vector<8x128xf32>
    %204 = math.exp %203 : vector<8x128xf32>
    %cst_46 = arith.constant 1.000000e+00 : f32
    %205 = vector.broadcast %cst_46 : f32 to vector<8x128xf32>
    %206 = arith.addf %205, %204 : vector<8x128xf32>
    %207 = arith.divf %205, %206 : vector<8x128xf32>
    %208 = arith.mulf %199, %139 : vector<8x128xf32>
    %209 = arith.mulf %193, %201 : vector<8x128xf32>
    %210 = arith.addf %208, %209 : vector<8x128xf32>
    %211 = math.tanh %210 : vector<8x128xf32>
    %212 = arith.mulf %207, %211 : vector<8x128xf32>
    %213 = vector.broadcast %c2_i32 : i32 to vector<8x1xi32>
    %214 = arith.cmpi slt, %213, %9 : vector<8x1xi32>
    %215 = vector.shape_cast %214 : vector<8x1xi1> to vector<8x1xi1>
    %216 = vector.broadcast %215 : vector<8x1xi1> to vector<8x128xi1>
    %217 = arith.select %216, %212, %136 : vector<8x128xi1>, vector<8x128xf32>
    %218 = vector.shape_cast %214 : vector<8x1xi1> to vector<8x1xi1>
    %219 = vector.broadcast %218 : vector<8x1xi1> to vector<8x128xi1>
    %220 = arith.select %219, %210, %139 : vector<8x128xi1>, vector<8x128xf32>
    %221 = vector.extract_strided_slice %187 {offsets = [0, 0], sizes = [8, 128], strides = [1, 1]} : vector<8x512xf32> to vector<8x128xf32>
    %222 = arith.negf %221 : vector<8x128xf32>
    %223 = math.exp %222 : vector<8x128xf32>
    %cst_47 = arith.constant 1.000000e+00 : f32
    %224 = vector.broadcast %cst_47 : f32 to vector<8x128xf32>
    %225 = arith.addf %224, %223 : vector<8x128xf32>
    %226 = arith.divf %224, %225 : vector<8x128xf32>
    %227 = vector.extract_strided_slice %187 {offsets = [0, 128], sizes = [8, 128], strides = [1, 1]} : vector<8x512xf32> to vector<8x128xf32>
    %228 = arith.negf %227 : vector<8x128xf32>
    %229 = math.exp %228 : vector<8x128xf32>
    %cst_48 = arith.constant 1.000000e+00 : f32
    %230 = vector.broadcast %cst_48 : f32 to vector<8x128xf32>
    %231 = arith.addf %230, %229 : vector<8x128xf32>
    %232 = arith.divf %230, %231 : vector<8x128xf32>
    %233 = vector.extract_strided_slice %187 {offsets = [0, 256], sizes = [8, 128], strides = [1, 1]} : vector<8x512xf32> to vector<8x128xf32>
    %234 = math.tanh %233 : vector<8x128xf32>
    %235 = vector.extract_strided_slice %187 {offsets = [0, 384], sizes = [8, 128], strides = [1, 1]} : vector<8x512xf32> to vector<8x128xf32>
    %236 = arith.negf %235 : vector<8x128xf32>
    %237 = math.exp %236 : vector<8x128xf32>
    %cst_49 = arith.constant 1.000000e+00 : f32
    %238 = vector.broadcast %cst_49 : f32 to vector<8x128xf32>
    %239 = arith.addf %238, %237 : vector<8x128xf32>
    %240 = arith.divf %238, %239 : vector<8x128xf32>
    %241 = arith.mulf %232, %172 : vector<8x128xf32>
    %242 = arith.mulf %226, %234 : vector<8x128xf32>
    %243 = arith.addf %241, %242 : vector<8x128xf32>
    %244 = math.tanh %243 : vector<8x128xf32>
    %245 = arith.mulf %240, %244 : vector<8x128xf32>
    %246 = vector.broadcast %173 : i32 to vector<8x1xi32>
    %247 = arith.cmpi slt, %246, %9 : vector<8x1xi32>
    %248 = vector.shape_cast %247 : vector<8x1xi1> to vector<8x1xi1>
    %249 = vector.broadcast %248 : vector<8x1xi1> to vector<8x128xi1>
    %250 = arith.select %249, %245, %169 : vector<8x128xi1>, vector<8x128xf32>
    %251 = vector.shape_cast %247 : vector<8x1xi1> to vector<8x1xi1>
    %252 = vector.broadcast %251 : vector<8x1xi1> to vector<8x128xi1>
    %253 = arith.select %252, %243, %172 : vector<8x128xi1>, vector<8x128xf32>
    %c3_i32 = arith.constant 3 : i32
    %c7_i32_50 = arith.constant 7 : i32
    %254 = arith.subi %c7_i32_50, %c3_i32 : i32
    %c8_i32_51 = arith.constant 8 : i32
    %255 = arith.muli %c3_i32, %c8_i32_51 : i32
    %256 = tpu.assume_multiple %255, 8 : i32
    %c8_i32_52 = arith.constant 8 : i32
    %257 = arith.muli %254, %c8_i32_52 : i32
    %258 = tpu.assume_multiple %257, 8 : i32
    %259 = arith.index_cast %256 : i32 to index
    %c0_53 = arith.constant 0 : index
    %260 = vector.load %arg15[%259, %c0_53] : memref<64x1024xf32, #tpu.memory_space<vmem>>, vector<8x512xf32>
    %261 = arith.index_cast %258 : i32 to index
    %c512_54 = arith.constant 512 : index
    %262 = vector.load %arg15[%261, %c512_54] : memref<64x1024xf32, #tpu.memory_space<vmem>>, vector<8x512xf32>
    %263 = arith.truncf %217 : vector<8x128xf32> to vector<8x128xbf16>
    %cst_55 = arith.constant dense<0.000000e+00> : vector<8x512xf32>
    %264 = tpu.matmul %263, %7, %cst_55 {dimension_numbers = #tpu.dot_dimension_numbers<[1], [0], [0], [1], [0, 0, 1, 1], [], []>} : vector<8x128xbf16>, vector<128x512xbf16>, vector<8x512xf32> -> vector<8x512xf32>
    %265 = arith.addf %260, %264 : vector<8x512xf32>
    %266 = arith.truncf %250 : vector<8x128xf32> to vector<8x128xbf16>
    %cst_56 = arith.constant dense<0.000000e+00> : vector<8x512xf32>
    %267 = tpu.matmul %266, %8, %cst_56 {dimension_numbers = #tpu.dot_dimension_numbers<[1], [0], [0], [1], [0, 0, 1, 1], [], []>} : vector<8x128xbf16>, vector<128x512xbf16>, vector<8x512xf32> -> vector<8x512xf32>
    %268 = arith.addf %262, %267 : vector<8x512xf32>
    %269 = vector.extract_strided_slice %265 {offsets = [0, 0], sizes = [8, 128], strides = [1, 1]} : vector<8x512xf32> to vector<8x128xf32>
    %270 = arith.negf %269 : vector<8x128xf32>
    %271 = math.exp %270 : vector<8x128xf32>
    %cst_57 = arith.constant 1.000000e+00 : f32
    %272 = vector.broadcast %cst_57 : f32 to vector<8x128xf32>
    %273 = arith.addf %272, %271 : vector<8x128xf32>
    %274 = arith.divf %272, %273 : vector<8x128xf32>
    %275 = vector.extract_strided_slice %265 {offsets = [0, 128], sizes = [8, 128], strides = [1, 1]} : vector<8x512xf32> to vector<8x128xf32>
    %276 = arith.negf %275 : vector<8x128xf32>
    %277 = math.exp %276 : vector<8x128xf32>
    %cst_58 = arith.constant 1.000000e+00 : f32
    %278 = vector.broadcast %cst_58 : f32 to vector<8x128xf32>
    %279 = arith.addf %278, %277 : vector<8x128xf32>
    %280 = arith.divf %278, %279 : vector<8x128xf32>
    %281 = vector.extract_strided_slice %265 {offsets = [0, 256], sizes = [8, 128], strides = [1, 1]} : vector<8x512xf32> to vector<8x128xf32>
    %282 = math.tanh %281 : vector<8x128xf32>
    %283 = vector.extract_strided_slice %265 {offsets = [0, 384], sizes = [8, 128], strides = [1, 1]} : vector<8x512xf32> to vector<8x128xf32>
    %284 = arith.negf %283 : vector<8x128xf32>
    %285 = math.exp %284 : vector<8x128xf32>
    %cst_59 = arith.constant 1.000000e+00 : f32
    %286 = vector.broadcast %cst_59 : f32 to vector<8x128xf32>
    %287 = arith.addf %286, %285 : vector<8x128xf32>
    %288 = arith.divf %286, %287 : vector<8x128xf32>
    %289 = arith.mulf %280, %220 : vector<8x128xf32>
    %290 = arith.mulf %274, %282 : vector<8x128xf32>
    %291 = arith.addf %289, %290 : vector<8x128xf32>
    %292 = math.tanh %291 : vector<8x128xf32>
    %293 = arith.mulf %288, %292 : vector<8x128xf32>
    %294 = vector.broadcast %c3_i32 : i32 to vector<8x1xi32>
    %295 = arith.cmpi slt, %294, %9 : vector<8x1xi32>
    %296 = vector.shape_cast %295 : vector<8x1xi1> to vector<8x1xi1>
    %297 = vector.broadcast %296 : vector<8x1xi1> to vector<8x128xi1>
    %298 = arith.select %297, %293, %217 : vector<8x128xi1>, vector<8x128xf32>
    %299 = vector.shape_cast %295 : vector<8x1xi1> to vector<8x1xi1>
    %300 = vector.broadcast %299 : vector<8x1xi1> to vector<8x128xi1>
    %301 = arith.select %300, %291, %220 : vector<8x128xi1>, vector<8x128xf32>
    %302 = vector.extract_strided_slice %268 {offsets = [0, 0], sizes = [8, 128], strides = [1, 1]} : vector<8x512xf32> to vector<8x128xf32>
    %303 = arith.negf %302 : vector<8x128xf32>
    %304 = math.exp %303 : vector<8x128xf32>
    %cst_60 = arith.constant 1.000000e+00 : f32
    %305 = vector.broadcast %cst_60 : f32 to vector<8x128xf32>
    %306 = arith.addf %305, %304 : vector<8x128xf32>
    %307 = arith.divf %305, %306 : vector<8x128xf32>
    %308 = vector.extract_strided_slice %268 {offsets = [0, 128], sizes = [8, 128], strides = [1, 1]} : vector<8x512xf32> to vector<8x128xf32>
    %309 = arith.negf %308 : vector<8x128xf32>
    %310 = math.exp %309 : vector<8x128xf32>
    %cst_61 = arith.constant 1.000000e+00 : f32
    %311 = vector.broadcast %cst_61 : f32 to vector<8x128xf32>
    %312 = arith.addf %311, %310 : vector<8x128xf32>
    %313 = arith.divf %311, %312 : vector<8x128xf32>
    %314 = vector.extract_strided_slice %268 {offsets = [0, 256], sizes = [8, 128], strides = [1, 1]} : vector<8x512xf32> to vector<8x128xf32>
    %315 = math.tanh %314 : vector<8x128xf32>
    %316 = vector.extract_strided_slice %268 {offsets = [0, 384], sizes = [8, 128], strides = [1, 1]} : vector<8x512xf32> to vector<8x128xf32>
    %317 = arith.negf %316 : vector<8x128xf32>
    %318 = math.exp %317 : vector<8x128xf32>
    %cst_62 = arith.constant 1.000000e+00 : f32
    %319 = vector.broadcast %cst_62 : f32 to vector<8x128xf32>
    %320 = arith.addf %319, %318 : vector<8x128xf32>
    %321 = arith.divf %319, %320 : vector<8x128xf32>
    %322 = arith.mulf %313, %253 : vector<8x128xf32>
    %323 = arith.mulf %307, %315 : vector<8x128xf32>
    %324 = arith.addf %322, %323 : vector<8x128xf32>
    %325 = math.tanh %324 : vector<8x128xf32>
    %326 = arith.mulf %321, %325 : vector<8x128xf32>
    %327 = vector.broadcast %254 : i32 to vector<8x1xi32>
    %328 = arith.cmpi slt, %327, %9 : vector<8x1xi32>
    %329 = vector.shape_cast %328 : vector<8x1xi1> to vector<8x1xi1>
    %330 = vector.broadcast %329 : vector<8x1xi1> to vector<8x128xi1>
    %331 = arith.select %330, %326, %250 : vector<8x128xi1>, vector<8x128xf32>
    %332 = vector.shape_cast %328 : vector<8x1xi1> to vector<8x1xi1>
    %333 = vector.broadcast %332 : vector<8x1xi1> to vector<8x128xi1>
    %334 = arith.select %333, %324, %253 : vector<8x128xi1>, vector<8x128xf32>
    %c4_i32 = arith.constant 4 : i32
    %c7_i32_63 = arith.constant 7 : i32
    %335 = arith.subi %c7_i32_63, %c4_i32 : i32
    %c8_i32_64 = arith.constant 8 : i32
    %336 = arith.muli %c4_i32, %c8_i32_64 : i32
    %337 = tpu.assume_multiple %336, 8 : i32
    %c8_i32_65 = arith.constant 8 : i32
    %338 = arith.muli %335, %c8_i32_65 : i32
    %339 = tpu.assume_multiple %338, 8 : i32
    %340 = arith.index_cast %337 : i32 to index
    %c0_66 = arith.constant 0 : index
    %341 = vector.load %arg15[%340, %c0_66] : memref<64x1024xf32, #tpu.memory_space<vmem>>, vector<8x512xf32>
    %342 = arith.index_cast %339 : i32 to index
    %c512_67 = arith.constant 512 : index
    %343 = vector.load %arg15[%342, %c512_67] : memref<64x1024xf32, #tpu.memory_space<vmem>>, vector<8x512xf32>
    %344 = arith.truncf %298 : vector<8x128xf32> to vector<8x128xbf16>
    %cst_68 = arith.constant dense<0.000000e+00> : vector<8x512xf32>
    %345 = tpu.matmul %344, %7, %cst_68 {dimension_numbers = #tpu.dot_dimension_numbers<[1], [0], [0], [1], [0, 0, 1, 1], [], []>} : vector<8x128xbf16>, vector<128x512xbf16>, vector<8x512xf32> -> vector<8x512xf32>
    %346 = arith.addf %341, %345 : vector<8x512xf32>
    %347 = arith.truncf %331 : vector<8x128xf32> to vector<8x128xbf16>
    %cst_69 = arith.constant dense<0.000000e+00> : vector<8x512xf32>
    %348 = tpu.matmul %347, %8, %cst_69 {dimension_numbers = #tpu.dot_dimension_numbers<[1], [0], [0], [1], [0, 0, 1, 1], [], []>} : vector<8x128xbf16>, vector<128x512xbf16>, vector<8x512xf32> -> vector<8x512xf32>
    %349 = arith.addf %343, %348 : vector<8x512xf32>
    %350 = vector.extract_strided_slice %346 {offsets = [0, 0], sizes = [8, 128], strides = [1, 1]} : vector<8x512xf32> to vector<8x128xf32>
    %351 = arith.negf %350 : vector<8x128xf32>
    %352 = math.exp %351 : vector<8x128xf32>
    %cst_70 = arith.constant 1.000000e+00 : f32
    %353 = vector.broadcast %cst_70 : f32 to vector<8x128xf32>
    %354 = arith.addf %353, %352 : vector<8x128xf32>
    %355 = arith.divf %353, %354 : vector<8x128xf32>
    %356 = vector.extract_strided_slice %346 {offsets = [0, 128], sizes = [8, 128], strides = [1, 1]} : vector<8x512xf32> to vector<8x128xf32>
    %357 = arith.negf %356 : vector<8x128xf32>
    %358 = math.exp %357 : vector<8x128xf32>
    %cst_71 = arith.constant 1.000000e+00 : f32
    %359 = vector.broadcast %cst_71 : f32 to vector<8x128xf32>
    %360 = arith.addf %359, %358 : vector<8x128xf32>
    %361 = arith.divf %359, %360 : vector<8x128xf32>
    %362 = vector.extract_strided_slice %346 {offsets = [0, 256], sizes = [8, 128], strides = [1, 1]} : vector<8x512xf32> to vector<8x128xf32>
    %363 = math.tanh %362 : vector<8x128xf32>
    %364 = vector.extract_strided_slice %346 {offsets = [0, 384], sizes = [8, 128], strides = [1, 1]} : vector<8x512xf32> to vector<8x128xf32>
    %365 = arith.negf %364 : vector<8x128xf32>
    %366 = math.exp %365 : vector<8x128xf32>
    %cst_72 = arith.constant 1.000000e+00 : f32
    %367 = vector.broadcast %cst_72 : f32 to vector<8x128xf32>
    %368 = arith.addf %367, %366 : vector<8x128xf32>
    %369 = arith.divf %367, %368 : vector<8x128xf32>
    %370 = arith.mulf %361, %301 : vector<8x128xf32>
    %371 = arith.mulf %355, %363 : vector<8x128xf32>
    %372 = arith.addf %370, %371 : vector<8x128xf32>
    %373 = math.tanh %372 : vector<8x128xf32>
    %374 = arith.mulf %369, %373 : vector<8x128xf32>
    %375 = vector.broadcast %c4_i32 : i32 to vector<8x1xi32>
    %376 = arith.cmpi slt, %375, %9 : vector<8x1xi32>
    %377 = vector.shape_cast %376 : vector<8x1xi1> to vector<8x1xi1>
    %378 = vector.broadcast %377 : vector<8x1xi1> to vector<8x128xi1>
    %379 = arith.select %378, %374, %298 : vector<8x128xi1>, vector<8x128xf32>
    %380 = vector.shape_cast %376 : vector<8x1xi1> to vector<8x1xi1>
    %381 = vector.broadcast %380 : vector<8x1xi1> to vector<8x128xi1>
    %382 = arith.select %381, %372, %301 : vector<8x128xi1>, vector<8x128xf32>
    %383 = vector.extract_strided_slice %349 {offsets = [0, 0], sizes = [8, 128], strides = [1, 1]} : vector<8x512xf32> to vector<8x128xf32>
    %384 = arith.negf %383 : vector<8x128xf32>
    %385 = math.exp %384 : vector<8x128xf32>
    %cst_73 = arith.constant 1.000000e+00 : f32
    %386 = vector.broadcast %cst_73 : f32 to vector<8x128xf32>
    %387 = arith.addf %386, %385 : vector<8x128xf32>
    %388 = arith.divf %386, %387 : vector<8x128xf32>
    %389 = vector.extract_strided_slice %349 {offsets = [0, 128], sizes = [8, 128], strides = [1, 1]} : vector<8x512xf32> to vector<8x128xf32>
    %390 = arith.negf %389 : vector<8x128xf32>
    %391 = math.exp %390 : vector<8x128xf32>
    %cst_74 = arith.constant 1.000000e+00 : f32
    %392 = vector.broadcast %cst_74 : f32 to vector<8x128xf32>
    %393 = arith.addf %392, %391 : vector<8x128xf32>
    %394 = arith.divf %392, %393 : vector<8x128xf32>
    %395 = vector.extract_strided_slice %349 {offsets = [0, 256], sizes = [8, 128], strides = [1, 1]} : vector<8x512xf32> to vector<8x128xf32>
    %396 = math.tanh %395 : vector<8x128xf32>
    %397 = vector.extract_strided_slice %349 {offsets = [0, 384], sizes = [8, 128], strides = [1, 1]} : vector<8x512xf32> to vector<8x128xf32>
    %398 = arith.negf %397 : vector<8x128xf32>
    %399 = math.exp %398 : vector<8x128xf32>
    %cst_75 = arith.constant 1.000000e+00 : f32
    %400 = vector.broadcast %cst_75 : f32 to vector<8x128xf32>
    %401 = arith.addf %400, %399 : vector<8x128xf32>
    %402 = arith.divf %400, %401 : vector<8x128xf32>
    %403 = arith.mulf %394, %334 : vector<8x128xf32>
    %404 = arith.mulf %388, %396 : vector<8x128xf32>
    %405 = arith.addf %403, %404 : vector<8x128xf32>
    %406 = math.tanh %405 : vector<8x128xf32>
    %407 = arith.mulf %402, %406 : vector<8x128xf32>
    %408 = vector.broadcast %335 : i32 to vector<8x1xi32>
    %409 = arith.cmpi slt, %408, %9 : vector<8x1xi32>
    %410 = vector.shape_cast %409 : vector<8x1xi1> to vector<8x1xi1>
    %411 = vector.broadcast %410 : vector<8x1xi1> to vector<8x128xi1>
    %412 = arith.select %411, %407, %331 : vector<8x128xi1>, vector<8x128xf32>
    %413 = vector.shape_cast %409 : vector<8x1xi1> to vector<8x1xi1>
    %414 = vector.broadcast %413 : vector<8x1xi1> to vector<8x128xi1>
    %415 = arith.select %414, %405, %334 : vector<8x128xi1>, vector<8x128xf32>
    %c5_i32 = arith.constant 5 : i32
    %c7_i32_76 = arith.constant 7 : i32
    %416 = arith.subi %c7_i32_76, %c5_i32 : i32
    %c8_i32_77 = arith.constant 8 : i32
    %417 = arith.muli %c5_i32, %c8_i32_77 : i32
    %418 = tpu.assume_multiple %417, 8 : i32
    %c8_i32_78 = arith.constant 8 : i32
    %419 = arith.muli %416, %c8_i32_78 : i32
    %420 = tpu.assume_multiple %419, 8 : i32
    %421 = arith.index_cast %418 : i32 to index
    %c0_79 = arith.constant 0 : index
    %422 = vector.load %arg15[%421, %c0_79] : memref<64x1024xf32, #tpu.memory_space<vmem>>, vector<8x512xf32>
    %423 = arith.index_cast %420 : i32 to index
    %c512_80 = arith.constant 512 : index
    %424 = vector.load %arg15[%423, %c512_80] : memref<64x1024xf32, #tpu.memory_space<vmem>>, vector<8x512xf32>
    %425 = arith.truncf %379 : vector<8x128xf32> to vector<8x128xbf16>
    %cst_81 = arith.constant dense<0.000000e+00> : vector<8x512xf32>
    %426 = tpu.matmul %425, %7, %cst_81 {dimension_numbers = #tpu.dot_dimension_numbers<[1], [0], [0], [1], [0, 0, 1, 1], [], []>} : vector<8x128xbf16>, vector<128x512xbf16>, vector<8x512xf32> -> vector<8x512xf32>
    %427 = arith.addf %422, %426 : vector<8x512xf32>
    %428 = arith.truncf %412 : vector<8x128xf32> to vector<8x128xbf16>
    %cst_82 = arith.constant dense<0.000000e+00> : vector<8x512xf32>
    %429 = tpu.matmul %428, %8, %cst_82 {dimension_numbers = #tpu.dot_dimension_numbers<[1], [0], [0], [1], [0, 0, 1, 1], [], []>} : vector<8x128xbf16>, vector<128x512xbf16>, vector<8x512xf32> -> vector<8x512xf32>
    %430 = arith.addf %424, %429 : vector<8x512xf32>
    %431 = vector.extract_strided_slice %427 {offsets = [0, 0], sizes = [8, 128], strides = [1, 1]} : vector<8x512xf32> to vector<8x128xf32>
    %432 = arith.negf %431 : vector<8x128xf32>
    %433 = math.exp %432 : vector<8x128xf32>
    %cst_83 = arith.constant 1.000000e+00 : f32
    %434 = vector.broadcast %cst_83 : f32 to vector<8x128xf32>
    %435 = arith.addf %434, %433 : vector<8x128xf32>
    %436 = arith.divf %434, %435 : vector<8x128xf32>
    %437 = vector.extract_strided_slice %427 {offsets = [0, 128], sizes = [8, 128], strides = [1, 1]} : vector<8x512xf32> to vector<8x128xf32>
    %438 = arith.negf %437 : vector<8x128xf32>
    %439 = math.exp %438 : vector<8x128xf32>
    %cst_84 = arith.constant 1.000000e+00 : f32
    %440 = vector.broadcast %cst_84 : f32 to vector<8x128xf32>
    %441 = arith.addf %440, %439 : vector<8x128xf32>
    %442 = arith.divf %440, %441 : vector<8x128xf32>
    %443 = vector.extract_strided_slice %427 {offsets = [0, 256], sizes = [8, 128], strides = [1, 1]} : vector<8x512xf32> to vector<8x128xf32>
    %444 = math.tanh %443 : vector<8x128xf32>
    %445 = vector.extract_strided_slice %427 {offsets = [0, 384], sizes = [8, 128], strides = [1, 1]} : vector<8x512xf32> to vector<8x128xf32>
    %446 = arith.negf %445 : vector<8x128xf32>
    %447 = math.exp %446 : vector<8x128xf32>
    %cst_85 = arith.constant 1.000000e+00 : f32
    %448 = vector.broadcast %cst_85 : f32 to vector<8x128xf32>
    %449 = arith.addf %448, %447 : vector<8x128xf32>
    %450 = arith.divf %448, %449 : vector<8x128xf32>
    %451 = arith.mulf %442, %382 : vector<8x128xf32>
    %452 = arith.mulf %436, %444 : vector<8x128xf32>
    %453 = arith.addf %451, %452 : vector<8x128xf32>
    %454 = math.tanh %453 : vector<8x128xf32>
    %455 = arith.mulf %450, %454 : vector<8x128xf32>
    %456 = vector.broadcast %c5_i32 : i32 to vector<8x1xi32>
    %457 = arith.cmpi slt, %456, %9 : vector<8x1xi32>
    %458 = vector.shape_cast %457 : vector<8x1xi1> to vector<8x1xi1>
    %459 = vector.broadcast %458 : vector<8x1xi1> to vector<8x128xi1>
    %460 = arith.select %459, %455, %379 : vector<8x128xi1>, vector<8x128xf32>
    %461 = vector.shape_cast %457 : vector<8x1xi1> to vector<8x1xi1>
    %462 = vector.broadcast %461 : vector<8x1xi1> to vector<8x128xi1>
    %463 = arith.select %462, %453, %382 : vector<8x128xi1>, vector<8x128xf32>
    %464 = vector.extract_strided_slice %430 {offsets = [0, 0], sizes = [8, 128], strides = [1, 1]} : vector<8x512xf32> to vector<8x128xf32>
    %465 = arith.negf %464 : vector<8x128xf32>
    %466 = math.exp %465 : vector<8x128xf32>
    %cst_86 = arith.constant 1.000000e+00 : f32
    %467 = vector.broadcast %cst_86 : f32 to vector<8x128xf32>
    %468 = arith.addf %467, %466 : vector<8x128xf32>
    %469 = arith.divf %467, %468 : vector<8x128xf32>
    %470 = vector.extract_strided_slice %430 {offsets = [0, 128], sizes = [8, 128], strides = [1, 1]} : vector<8x512xf32> to vector<8x128xf32>
    %471 = arith.negf %470 : vector<8x128xf32>
    %472 = math.exp %471 : vector<8x128xf32>
    %cst_87 = arith.constant 1.000000e+00 : f32
    %473 = vector.broadcast %cst_87 : f32 to vector<8x128xf32>
    %474 = arith.addf %473, %472 : vector<8x128xf32>
    %475 = arith.divf %473, %474 : vector<8x128xf32>
    %476 = vector.extract_strided_slice %430 {offsets = [0, 256], sizes = [8, 128], strides = [1, 1]} : vector<8x512xf32> to vector<8x128xf32>
    %477 = math.tanh %476 : vector<8x128xf32>
    %478 = vector.extract_strided_slice %430 {offsets = [0, 384], sizes = [8, 128], strides = [1, 1]} : vector<8x512xf32> to vector<8x128xf32>
    %479 = arith.negf %478 : vector<8x128xf32>
    %480 = math.exp %479 : vector<8x128xf32>
    %cst_88 = arith.constant 1.000000e+00 : f32
    %481 = vector.broadcast %cst_88 : f32 to vector<8x128xf32>
    %482 = arith.addf %481, %480 : vector<8x128xf32>
    %483 = arith.divf %481, %482 : vector<8x128xf32>
    %484 = arith.mulf %475, %415 : vector<8x128xf32>
    %485 = arith.mulf %469, %477 : vector<8x128xf32>
    %486 = arith.addf %484, %485 : vector<8x128xf32>
    %487 = math.tanh %486 : vector<8x128xf32>
    %488 = arith.mulf %483, %487 : vector<8x128xf32>
    %489 = vector.broadcast %416 : i32 to vector<8x1xi32>
    %490 = arith.cmpi slt, %489, %9 : vector<8x1xi32>
    %491 = vector.shape_cast %490 : vector<8x1xi1> to vector<8x1xi1>
    %492 = vector.broadcast %491 : vector<8x1xi1> to vector<8x128xi1>
    %493 = arith.select %492, %488, %412 : vector<8x128xi1>, vector<8x128xf32>
    %494 = vector.shape_cast %490 : vector<8x1xi1> to vector<8x1xi1>
    %495 = vector.broadcast %494 : vector<8x1xi1> to vector<8x128xi1>
    %496 = arith.select %495, %486, %415 : vector<8x128xi1>, vector<8x128xf32>
    %c6_i32 = arith.constant 6 : i32
    %c7_i32_89 = arith.constant 7 : i32
    %497 = arith.subi %c7_i32_89, %c6_i32 : i32
    %c8_i32_90 = arith.constant 8 : i32
    %498 = arith.muli %c6_i32, %c8_i32_90 : i32
    %499 = tpu.assume_multiple %498, 8 : i32
    %c8_i32_91 = arith.constant 8 : i32
    %500 = arith.muli %497, %c8_i32_91 : i32
    %501 = tpu.assume_multiple %500, 8 : i32
    %502 = arith.index_cast %499 : i32 to index
    %c0_92 = arith.constant 0 : index
    %503 = vector.load %arg15[%502, %c0_92] : memref<64x1024xf32, #tpu.memory_space<vmem>>, vector<8x512xf32>
    %504 = arith.index_cast %501 : i32 to index
    %c512_93 = arith.constant 512 : index
    %505 = vector.load %arg15[%504, %c512_93] : memref<64x1024xf32, #tpu.memory_space<vmem>>, vector<8x512xf32>
    %506 = arith.truncf %460 : vector<8x128xf32> to vector<8x128xbf16>
    %cst_94 = arith.constant dense<0.000000e+00> : vector<8x512xf32>
    %507 = tpu.matmul %506, %7, %cst_94 {dimension_numbers = #tpu.dot_dimension_numbers<[1], [0], [0], [1], [0, 0, 1, 1], [], []>} : vector<8x128xbf16>, vector<128x512xbf16>, vector<8x512xf32> -> vector<8x512xf32>
    %508 = arith.addf %503, %507 : vector<8x512xf32>
    %509 = arith.truncf %493 : vector<8x128xf32> to vector<8x128xbf16>
    %cst_95 = arith.constant dense<0.000000e+00> : vector<8x512xf32>
    %510 = tpu.matmul %509, %8, %cst_95 {dimension_numbers = #tpu.dot_dimension_numbers<[1], [0], [0], [1], [0, 0, 1, 1], [], []>} : vector<8x128xbf16>, vector<128x512xbf16>, vector<8x512xf32> -> vector<8x512xf32>
    %511 = arith.addf %505, %510 : vector<8x512xf32>
    %512 = vector.extract_strided_slice %508 {offsets = [0, 0], sizes = [8, 128], strides = [1, 1]} : vector<8x512xf32> to vector<8x128xf32>
    %513 = arith.negf %512 : vector<8x128xf32>
    %514 = math.exp %513 : vector<8x128xf32>
    %cst_96 = arith.constant 1.000000e+00 : f32
    %515 = vector.broadcast %cst_96 : f32 to vector<8x128xf32>
    %516 = arith.addf %515, %514 : vector<8x128xf32>
    %517 = arith.divf %515, %516 : vector<8x128xf32>
    %518 = vector.extract_strided_slice %508 {offsets = [0, 128], sizes = [8, 128], strides = [1, 1]} : vector<8x512xf32> to vector<8x128xf32>
    %519 = arith.negf %518 : vector<8x128xf32>
    %520 = math.exp %519 : vector<8x128xf32>
    %cst_97 = arith.constant 1.000000e+00 : f32
    %521 = vector.broadcast %cst_97 : f32 to vector<8x128xf32>
    %522 = arith.addf %521, %520 : vector<8x128xf32>
    %523 = arith.divf %521, %522 : vector<8x128xf32>
    %524 = vector.extract_strided_slice %508 {offsets = [0, 256], sizes = [8, 128], strides = [1, 1]} : vector<8x512xf32> to vector<8x128xf32>
    %525 = math.tanh %524 : vector<8x128xf32>
    %526 = vector.extract_strided_slice %508 {offsets = [0, 384], sizes = [8, 128], strides = [1, 1]} : vector<8x512xf32> to vector<8x128xf32>
    %527 = arith.negf %526 : vector<8x128xf32>
    %528 = math.exp %527 : vector<8x128xf32>
    %cst_98 = arith.constant 1.000000e+00 : f32
    %529 = vector.broadcast %cst_98 : f32 to vector<8x128xf32>
    %530 = arith.addf %529, %528 : vector<8x128xf32>
    %531 = arith.divf %529, %530 : vector<8x128xf32>
    %532 = arith.mulf %523, %463 : vector<8x128xf32>
    %533 = arith.mulf %517, %525 : vector<8x128xf32>
    %534 = arith.addf %532, %533 : vector<8x128xf32>
    %535 = math.tanh %534 : vector<8x128xf32>
    %536 = arith.mulf %531, %535 : vector<8x128xf32>
    %537 = vector.broadcast %c6_i32 : i32 to vector<8x1xi32>
    %538 = arith.cmpi slt, %537, %9 : vector<8x1xi32>
    %539 = vector.shape_cast %538 : vector<8x1xi1> to vector<8x1xi1>
    %540 = vector.broadcast %539 : vector<8x1xi1> to vector<8x128xi1>
    %541 = arith.select %540, %536, %460 : vector<8x128xi1>, vector<8x128xf32>
    %542 = vector.shape_cast %538 : vector<8x1xi1> to vector<8x1xi1>
    %543 = vector.broadcast %542 : vector<8x1xi1> to vector<8x128xi1>
    %544 = arith.select %543, %534, %463 : vector<8x128xi1>, vector<8x128xf32>
    %545 = vector.extract_strided_slice %511 {offsets = [0, 0], sizes = [8, 128], strides = [1, 1]} : vector<8x512xf32> to vector<8x128xf32>
    %546 = arith.negf %545 : vector<8x128xf32>
    %547 = math.exp %546 : vector<8x128xf32>
    %cst_99 = arith.constant 1.000000e+00 : f32
    %548 = vector.broadcast %cst_99 : f32 to vector<8x128xf32>
    %549 = arith.addf %548, %547 : vector<8x128xf32>
    %550 = arith.divf %548, %549 : vector<8x128xf32>
    %551 = vector.extract_strided_slice %511 {offsets = [0, 128], sizes = [8, 128], strides = [1, 1]} : vector<8x512xf32> to vector<8x128xf32>
    %552 = arith.negf %551 : vector<8x128xf32>
    %553 = math.exp %552 : vector<8x128xf32>
    %cst_100 = arith.constant 1.000000e+00 : f32
    %554 = vector.broadcast %cst_100 : f32 to vector<8x128xf32>
    %555 = arith.addf %554, %553 : vector<8x128xf32>
    %556 = arith.divf %554, %555 : vector<8x128xf32>
    %557 = vector.extract_strided_slice %511 {offsets = [0, 256], sizes = [8, 128], strides = [1, 1]} : vector<8x512xf32> to vector<8x128xf32>
    %558 = math.tanh %557 : vector<8x128xf32>
    %559 = vector.extract_strided_slice %511 {offsets = [0, 384], sizes = [8, 128], strides = [1, 1]} : vector<8x512xf32> to vector<8x128xf32>
    %560 = arith.negf %559 : vector<8x128xf32>
    %561 = math.exp %560 : vector<8x128xf32>
    %cst_101 = arith.constant 1.000000e+00 : f32
    %562 = vector.broadcast %cst_101 : f32 to vector<8x128xf32>
    %563 = arith.addf %562, %561 : vector<8x128xf32>
    %564 = arith.divf %562, %563 : vector<8x128xf32>
    %565 = arith.mulf %556, %496 : vector<8x128xf32>
    %566 = arith.mulf %550, %558 : vector<8x128xf32>
    %567 = arith.addf %565, %566 : vector<8x128xf32>
    %568 = math.tanh %567 : vector<8x128xf32>
    %569 = arith.mulf %564, %568 : vector<8x128xf32>
    %570 = vector.broadcast %497 : i32 to vector<8x1xi32>
    %571 = arith.cmpi slt, %570, %9 : vector<8x1xi32>
    %572 = vector.shape_cast %571 : vector<8x1xi1> to vector<8x1xi1>
    %573 = vector.broadcast %572 : vector<8x1xi1> to vector<8x128xi1>
    %574 = arith.select %573, %569, %493 : vector<8x128xi1>, vector<8x128xf32>
    %575 = vector.shape_cast %571 : vector<8x1xi1> to vector<8x1xi1>
    %576 = vector.broadcast %575 : vector<8x1xi1> to vector<8x128xi1>
    %577 = arith.select %576, %567, %496 : vector<8x128xi1>, vector<8x128xf32>
    %c7_i32_102 = arith.constant 7 : i32
    %c7_i32_103 = arith.constant 7 : i32
    %578 = arith.subi %c7_i32_103, %c7_i32_102 : i32
    %c8_i32_104 = arith.constant 8 : i32
    %579 = arith.muli %c7_i32_102, %c8_i32_104 : i32
    %580 = tpu.assume_multiple %579, 8 : i32
    %c8_i32_105 = arith.constant 8 : i32
    %581 = arith.muli %578, %c8_i32_105 : i32
    %582 = tpu.assume_multiple %581, 8 : i32
    %583 = arith.index_cast %580 : i32 to index
    %c0_106 = arith.constant 0 : index
    %584 = vector.load %arg15[%583, %c0_106] : memref<64x1024xf32, #tpu.memory_space<vmem>>, vector<8x512xf32>
    %585 = arith.index_cast %582 : i32 to index
    %c512_107 = arith.constant 512 : index
    %586 = vector.load %arg15[%585, %c512_107] : memref<64x1024xf32, #tpu.memory_space<vmem>>, vector<8x512xf32>
    %587 = arith.truncf %541 : vector<8x128xf32> to vector<8x128xbf16>
    %cst_108 = arith.constant dense<0.000000e+00> : vector<8x512xf32>
    %588 = tpu.matmul %587, %7, %cst_108 {dimension_numbers = #tpu.dot_dimension_numbers<[1], [0], [0], [1], [0, 0, 1, 1], [], []>} : vector<8x128xbf16>, vector<128x512xbf16>, vector<8x512xf32> -> vector<8x512xf32>
    %589 = arith.addf %584, %588 : vector<8x512xf32>
    %590 = arith.truncf %574 : vector<8x128xf32> to vector<8x128xbf16>
    %cst_109 = arith.constant dense<0.000000e+00> : vector<8x512xf32>
    %591 = tpu.matmul %590, %8, %cst_109 {dimension_numbers = #tpu.dot_dimension_numbers<[1], [0], [0], [1], [0, 0, 1, 1], [], []>} : vector<8x128xbf16>, vector<128x512xbf16>, vector<8x512xf32> -> vector<8x512xf32>
    %592 = arith.addf %586, %591 : vector<8x512xf32>
    %593 = vector.extract_strided_slice %589 {offsets = [0, 0], sizes = [8, 128], strides = [1, 1]} : vector<8x512xf32> to vector<8x128xf32>
    %594 = arith.negf %593 : vector<8x128xf32>
    %595 = math.exp %594 : vector<8x128xf32>
    %cst_110 = arith.constant 1.000000e+00 : f32
    %596 = vector.broadcast %cst_110 : f32 to vector<8x128xf32>
    %597 = arith.addf %596, %595 : vector<8x128xf32>
    %598 = arith.divf %596, %597 : vector<8x128xf32>
    %599 = vector.extract_strided_slice %589 {offsets = [0, 128], sizes = [8, 128], strides = [1, 1]} : vector<8x512xf32> to vector<8x128xf32>
    %600 = arith.negf %599 : vector<8x128xf32>
    %601 = math.exp %600 : vector<8x128xf32>
    %cst_111 = arith.constant 1.000000e+00 : f32
    %602 = vector.broadcast %cst_111 : f32 to vector<8x128xf32>
    %603 = arith.addf %602, %601 : vector<8x128xf32>
    %604 = arith.divf %602, %603 : vector<8x128xf32>
    %605 = vector.extract_strided_slice %589 {offsets = [0, 256], sizes = [8, 128], strides = [1, 1]} : vector<8x512xf32> to vector<8x128xf32>
    %606 = math.tanh %605 : vector<8x128xf32>
    %607 = vector.extract_strided_slice %589 {offsets = [0, 384], sizes = [8, 128], strides = [1, 1]} : vector<8x512xf32> to vector<8x128xf32>
    %608 = arith.negf %607 : vector<8x128xf32>
    %609 = math.exp %608 : vector<8x128xf32>
    %cst_112 = arith.constant 1.000000e+00 : f32
    %610 = vector.broadcast %cst_112 : f32 to vector<8x128xf32>
    %611 = arith.addf %610, %609 : vector<8x128xf32>
    %612 = arith.divf %610, %611 : vector<8x128xf32>
    %613 = arith.mulf %604, %544 : vector<8x128xf32>
    %614 = arith.mulf %598, %606 : vector<8x128xf32>
    %615 = arith.addf %613, %614 : vector<8x128xf32>
    %616 = math.tanh %615 : vector<8x128xf32>
    %617 = arith.mulf %612, %616 : vector<8x128xf32>
    %618 = vector.broadcast %c7_i32_102 : i32 to vector<8x1xi32>
    %619 = arith.cmpi slt, %618, %9 : vector<8x1xi32>
    %620 = vector.shape_cast %619 : vector<8x1xi1> to vector<8x1xi1>
    %621 = vector.broadcast %620 : vector<8x1xi1> to vector<8x128xi1>
    %622 = arith.select %621, %617, %541 : vector<8x128xi1>, vector<8x128xf32>
    %623 = vector.shape_cast %619 : vector<8x1xi1> to vector<8x1xi1>
    %624 = vector.broadcast %623 : vector<8x1xi1> to vector<8x128xi1>
    %625 = arith.select %624, %615, %544 : vector<8x128xi1>, vector<8x128xf32>
    %626 = vector.extract_strided_slice %592 {offsets = [0, 0], sizes = [8, 128], strides = [1, 1]} : vector<8x512xf32> to vector<8x128xf32>
    %627 = arith.negf %626 : vector<8x128xf32>
    %628 = math.exp %627 : vector<8x128xf32>
    %cst_113 = arith.constant 1.000000e+00 : f32
    %629 = vector.broadcast %cst_113 : f32 to vector<8x128xf32>
    %630 = arith.addf %629, %628 : vector<8x128xf32>
    %631 = arith.divf %629, %630 : vector<8x128xf32>
    %632 = vector.extract_strided_slice %592 {offsets = [0, 128], sizes = [8, 128], strides = [1, 1]} : vector<8x512xf32> to vector<8x128xf32>
    %633 = arith.negf %632 : vector<8x128xf32>
    %634 = math.exp %633 : vector<8x128xf32>
    %cst_114 = arith.constant 1.000000e+00 : f32
    %635 = vector.broadcast %cst_114 : f32 to vector<8x128xf32>
    %636 = arith.addf %635, %634 : vector<8x128xf32>
    %637 = arith.divf %635, %636 : vector<8x128xf32>
    %638 = vector.extract_strided_slice %592 {offsets = [0, 256], sizes = [8, 128], strides = [1, 1]} : vector<8x512xf32> to vector<8x128xf32>
    %639 = math.tanh %638 : vector<8x128xf32>
    %640 = vector.extract_strided_slice %592 {offsets = [0, 384], sizes = [8, 128], strides = [1, 1]} : vector<8x512xf32> to vector<8x128xf32>
    %641 = arith.negf %640 : vector<8x128xf32>
    %642 = math.exp %641 : vector<8x128xf32>
    %cst_115 = arith.constant 1.000000e+00 : f32
    %643 = vector.broadcast %cst_115 : f32 to vector<8x128xf32>
    %644 = arith.addf %643, %642 : vector<8x128xf32>
    %645 = arith.divf %643, %644 : vector<8x128xf32>
    %646 = arith.mulf %637, %577 : vector<8x128xf32>
    %647 = arith.mulf %631, %639 : vector<8x128xf32>
    %648 = arith.addf %646, %647 : vector<8x128xf32>
    %649 = math.tanh %648 : vector<8x128xf32>
    %650 = arith.mulf %645, %649 : vector<8x128xf32>
    %651 = vector.broadcast %578 : i32 to vector<8x1xi32>
    %652 = arith.cmpi slt, %651, %9 : vector<8x1xi32>
    %653 = vector.shape_cast %652 : vector<8x1xi1> to vector<8x1xi1>
    %654 = vector.broadcast %653 : vector<8x1xi1> to vector<8x128xi1>
    %655 = arith.select %654, %650, %574 : vector<8x128xi1>, vector<8x128xf32>
    %656 = vector.shape_cast %652 : vector<8x1xi1> to vector<8x1xi1>
    %657 = vector.broadcast %656 : vector<8x1xi1> to vector<8x128xi1>
    %658 = arith.select %657, %648, %577 : vector<8x128xi1>, vector<8x128xf32>
    %c8_i32_116 = arith.constant 8 : i32
    %659 = arith.truncf %622 : vector<8x128xf32> to vector<8x128xbf16>
    %c0_117 = arith.constant 0 : index
    %c0_118 = arith.constant 0 : index
    %660 = vector.load %arg7[%c0_117, %c0_118] : memref<128x128xbf16, #tpu.memory_space<vmem>>, vector<128x128xbf16>
    %cst_119 = arith.constant dense<0.000000e+00> : vector<8x128xf32>
    %661 = tpu.matmul %659, %660, %cst_119 {dimension_numbers = #tpu.dot_dimension_numbers<[1], [0], [0], [1], [0, 0, 1, 1], [], []>} : vector<8x128xbf16>, vector<128x128xbf16>, vector<8x128xf32> -> vector<8x128xf32>
    %662 = arith.truncf %655 : vector<8x128xf32> to vector<8x128xbf16>
    %c0_120 = arith.constant 0 : index
    %c0_121 = arith.constant 0 : index
    %663 = vector.load %arg8[%c0_120, %c0_121] : memref<128x128xbf16, #tpu.memory_space<vmem>>, vector<128x128xbf16>
    %cst_122 = arith.constant dense<0.000000e+00> : vector<8x128xf32>
    %664 = tpu.matmul %662, %663, %cst_122 {dimension_numbers = #tpu.dot_dimension_numbers<[1], [0], [0], [1], [0, 0, 1, 1], [], []>} : vector<8x128xbf16>, vector<128x128xbf16>, vector<8x128xf32> -> vector<8x128xf32>
    %665 = arith.addf %661, %664 : vector<8x128xf32>
    %c0_123 = arith.constant 0 : index
    %c0_124 = arith.constant 0 : index
    %666 = vector.load %arg2[%c0_123, %c0_124] : memref<8x128xbf16, #tpu.memory_space<vmem>>, vector<8x128xbf16>
    %c0_125 = arith.constant 0 : index
    %c0_126 = arith.constant 0 : index
    %667 = vector.load %arg9[%c0_125, %c0_126] : memref<128x128xbf16, #tpu.memory_space<vmem>>, vector<128x128xbf16>
    %cst_127 = arith.constant dense<0.000000e+00> : vector<8x128xf32>
    %668 = tpu.matmul %666, %667, %cst_127 {dimension_numbers = #tpu.dot_dimension_numbers<[1], [0], [0], [1], [0, 0, 1, 1], [], []>} : vector<8x128xbf16>, vector<128x128xbf16>, vector<8x128xf32> -> vector<8x128xf32>
    %669 = arith.addf %665, %668 : vector<8x128xf32>
    %c0_128 = arith.constant 0 : index
    %c0_129 = arith.constant 0 : index
    %670 = vector.load %arg10[%c0_128, %c0_129] : memref<1x128xf32, #tpu.memory_space<vmem>>, vector<1x128xf32>
    %671 = vector.broadcast %670 : vector<1x128xf32> to vector<8x128xf32>
    %672 = arith.addf %669, %671 : vector<8x128xf32>
    %c0_130 = arith.constant 0 : index
    %c0_131 = arith.constant 0 : index
    %673 = vector.load %arg14[%c0_130, %c0_131] : memref<8x128xf32, #tpu.memory_space<vmem>>, vector<8x128xf32>
    tpu.vector_store %arg14[%c0_130, %c0_131], %672 {strides = array<i32>} : memref<8x128xf32, #tpu.memory_space<vmem>>, vector<8x128xf32>,
    %cst_132 = arith.constant 0.000000e+00 : f32
    %674 = vector.broadcast %cst_132 : f32 to vector<8x128xf32>
    %675 = arith.maximumf %672, %674 : vector<8x128xf32>
    %c0_133 = arith.constant 0 : index
    %c0_134 = arith.constant 0 : index
    %676 = vector.load %arg11[%c0_133, %c0_134] : memref<1x128xf32, #tpu.memory_space<vmem>>, vector<1x128xf32>
    %677 = vector.broadcast %676 : vector<1x128xf32> to vector<8x128xf32>
    %678 = arith.mulf %675, %677 : vector<8x128xf32>
    %cst_135 = arith.constant dense<0.000000e+00> : vector<8xf32>
    %679 = vector.multi_reduction <add>, %678, %cst_135 [1] : vector<8x128xf32> to vector<8xf32>
    %680 = vector.shape_cast %679 : vector<8xf32> to vector<8x1xf32>
    %c0_136 = arith.constant 0 : index
    %c0_137 = arith.constant 0 : index
    %681 = vector.load %arg12[%c0_136, %c0_137] : memref<1x1xf32, #tpu.memory_space<vmem>>, vector<1x1xf32>
    %682 = vector.broadcast %681 : vector<1x1xf32> to vector<8x1xf32>
    %683 = arith.addf %680, %682 : vector<8x1xf32>
    %c0_138 = arith.constant 0 : index
    %c0_139 = arith.constant 0 : index
    %684 = vector.load %arg13[%c0_138, %c0_139] : memref<8x1xf32, #tpu.memory_space<vmem>>, vector<8x1xf32>
    tpu.vector_store %arg13[%c0_138, %c0_139], %683 {strides = array<i32>} : memref<8x1xf32, #tpu.memory_space<vmem>>, vector<8x1xf32>,
    return
  }
}

</mosaic_0001>

<bundles_post_ra>
// kernel: lstm_mlp_ensemble_forward.1
= control target key start
LH: loop header
LB: loop body
LE: loop exit
PB: predicated region body
PF: predicated region fallthrough
CT: control target
= control target key end

     0   :  { %v6213_v2 = vmov 0   ;;  %vm167_vm0 = vcmask 130048   ;;  %s6198_s3 = inlined_call_operand.vmem [shape: bf16[16,1024], index: 3, kind: input, shape index: {}]   ;;  %s6199_s0 = inlined_call_operand.vmem [shape: bf16[64,16], index: 0, kind: input, shape index: {}]   ;;  %s6200_s4 = inlined_call_operand.vmem [shape: bf16[128,512], index: 4, kind: input, shape index: {}]   ;;  %s6201_s5 = inlined_call_operand.vmem [shape: bf16[128,512], index: 5, kind: input, shape index: {}]   ;;  %s6202_s1 = inlined_call_operand.vmem [shape: s32[8,1], index: 1, kind: input, shape index: {}]   ;;  %s6203_s6 = inlined_call_operand.vmem [shape: f32[1,1024], index: 6, kind: input, shape index: {}]   ;;  %s6204_s7 = inlined_call_operand.vmem [shape: bf16[128,128], index: 7, kind: input, shape index: {}]   ;;  %s6205_s8 = inlined_call_operand.vmem [shape: bf16[128,128], index: 8, kind: input, shape index: {}]   ;;  %s6206_s9 = inlined_call_operand.vmem [shape: bf16[128,128], index: 9, kind: input, shape index: {}]   ;;  %s6207_s2 = inlined_call_operand.vmem [shape: bf16[8,128], index: 2, kind: input, shape index: {}]   ;;  %s6208_s12 = inlined_call_operand.<no memory space> [shape: f32[1,1], index: 12, kind: input, shape index: {}]   ;;  %s6209_s10 = inlined_call_operand.vmem [shape: f32[1,128], index: 10, kind: input, shape index: {}]   ;;  %s6210_s11 = inlined_call_operand.vmem [shape: f32[1,128], index: 11, kind: input, shape index: {}]   ;;  %s6211_s14 = inlined_call_operand.vmem [shape: f32[8,128], index: 14, kind: output, shape index: {1}]   ;;  %s6212_s13 = inlined_call_operand.vmem [shape: f32[8,1], index: 13, kind: output, shape index: {0}]  }
   0x1   :  { %v57_v0 = vld [vmem:[%s6198_s3] sm:$0xff]  ;;  %212 = vmatprep.mubr.bf16.mxu0 %v6213_v2  ;;  %232 = vmatprep.mubr.bf16.mxu1 %v6213_v2  ;;  %v4099_v6 = vld [vmem:[%s6199_s0 + $0x10] sm:$0xff]   ;;  %v58_v7 = vld [vmem:[%s6198_s3 + $0x8] sm:$0xff] }
   0x2   :  { %v61_v1 = vld [vmem:[%s6198_s3 + $0x20] sm:$0xff]  ;;  %3493 = vset.pattern.permute.xlu0 %v6213_v2  ;;  %3494 = vset.pattern.permute.xlu1 %v6213_v2  ;;  %v62_v8 = vld [vmem:[%s6198_s3 + $0x28] sm:$0xff]  ;;  %v59_v11 = vld [vmem:[%s6198_s3 + $0x10] sm:$0xff] }
   0x3   :  { %v3227_v3 = vcombine.high %v57_v0, %v61_v1  ;;  %v3226_v4 = vcombine.low %v57_v0, %v61_v1  ;;  %v4092_v5 = vld [vmem:[%s6199_s0] sm:$0xff]   ;;  %v3228_v9 = vcombine.low %v58_v7, %v62_v8  ;;  %v3229_v10 = vcombine.high %v58_v7, %v62_v8  ;;  %v63_v12 = vld [vmem:[%s6198_s3 + $0x30] sm:$0xff]  ;;  %v60_v16 = vld [vmem:[%s6198_s3 + $0x18] sm:$0xff] }
   0x4   :  { %v3230_v13 = vcombine.low %v59_v11, %v63_v12  ;;  %v3231_v14 = vcombine.high %v59_v11, %v63_v12  ;;  %v4120_v15 = vld [vmem:[%s6200_s4 + $0x4] ss:$16 sps:$4 sm:$0xff]   ;;  %v64_v17 = vld [vmem:[%s6198_s3 + $0x38] sm:$0xff]  ;;  %v4133_v19 = vld [vmem:[%s6199_s0 + $0x8] sm:$0xff]  }
   0x5   :  { %180 = vmatprep.subr.bf16.mxu0 %v3227_v3  ;;  %3488 = vmatprep.subr.bf16.mxu1 %v3227_v3  ;;  %v3233_v18 = vcombine.high %v60_v16, %v64_v17  ;;  %v4138_v20 = vld [vmem:[%s6199_s0 + $0x18] sm:$0xff]   ;;  %v3232_v21 = vcombine.low %v60_v16, %v64_v17  ;;  %v4150_v22 = vld [vmem:[%s6200_s4] ss:$16 sps:$4 sm:$0xff]   ;;  %v4155_v23 = vld [vmem:[%s6200_s4 + $0x24] ss:$16 sps:$4 sm:$0xff]  }
   0x6   :  { %181 = vmatpush1.bf16.msra.mxu0 %v3226_v4  ;;  %3489 = vmatpush1.bf16.msra.mxu1 %v3226_v4  ;;  %v4160_v24 = vld [vmem:[%s6200_s4 + $0xc] ss:$16 sps:$4 sm:$0xff]   ;;  %v4170_v25 = vld [vmem:[%s6200_s4 + $0x20] ss:$16 sps:$4 sm:$0xff]   ;;  %v4177_v26 = vld [vmem:[%s6200_s4 + $0x44] ss:$16 sps:$4 sm:$0xff]  }
   0x7   :  { %253 = vmatprep.subr.bf16.mxu1 %v3229_v10  ;;  %326 = vmatprep.subr.bf16.mxu0 %v3231_v14  ;;  %v4185_v27 = vld [vmem:[%s6200_s4 + $0x40] ss:$16 sps:$4 sm:$0xff]   ;;  %v4191_v28 = vld [vmem:[%s6200_s4 + $0x64] ss:$16 sps:$4 sm:$0xff]   ;;  %v4282_v41 = vld [vmem:[%s6200_s4 + $0x8] ss:$16 sps:$4 sm:$0xff]  }
   0x8   :  { %v4201_v29 = vld [vmem:[%s6200_s4 + $0x60] ss:$16 sps:$4 sm:$0xff]   ;;  %v4209_v30 = vld [vmem:[%s6200_s4 + $0x84] ss:$16 sps:$4 sm:$0xff]   ;;  %v4293_v43 = vld [vmem:[%s6200_s4 + $0x2c] ss:$16 sps:$4 sm:$0xff]  }
   0x9   :  { %3234 = vmatmul.mubr.msk.bf16.vlgmr.msra.gmra.mrb[0].mxu0 %vm167_vm0, %v4092_v5  ;;  %3236 = vmatmul.mubr.msk.bf16.vlgmr.msra.gmra.mrb[0].mxu1 %vm167_vm0, %v4099_v6  ;;  %6295 = vst [vmem:[#allocation4_spill] sm:$0xff] %v4201_v29  ;;  %6296 = vst [vmem:[#allocation5_spill] sm:$0xff] %v4209_v30  ;;  %v4215_v31 = vld [vmem:[%s6200_s4 + $0x80] ss:$16 sps:$4 sm:$0xff]   ;;  %v4221_v32 = vld [vmem:[%s6200_s4 + $0xa4] ss:$16 sps:$4 sm:$0xff]  }
   0xa   :  { %254 = vmatpush1.bf16.msra.mxu1 %v3228_v9  ;;  %222 = vmatprep.mubr.bf16.mxu0 %v6213_v2  ;;  %6297 = vst [vmem:[#allocation6_spill] sm:$0xff] %v4215_v31  ;;  %6298 = vst [vmem:[#allocation7_spill] sm:$0xff] %v4221_v32  ;;  %v4231_v33 = vld [vmem:[%s6200_s4 + $0xa0] ss:$16 sps:$4 sm:$0xff]   ;;  %v4239_v34 = vld [vmem:[%s6200_s4 + $0xc4] ss:$16 sps:$4 sm:$0xff]  }
   0xb   :  { %242 = vmatprep.mubr.bf16.mxu1 %v6213_v2  ;;  %327 = vmatpush1.bf16.msra.mxu0 %v3230_v13  ;;  %6299 = vst [vmem:[#allocation8_spill] sm:$0xff] %v4231_v33  ;;  %6300 = vst [vmem:[#allocation9_spill] sm:$0xff] %v4239_v34  ;;  %v4245_v35 = vld [vmem:[%s6200_s4 + $0xc0] ss:$16 sps:$4 sm:$0xff]   ;;  %v4251_v36 = vld [vmem:[%s6200_s4 + $0xe4] ss:$16 sps:$4 sm:$0xff]  }
   0xc   :  { %399 = vmatprep.subr.bf16.mxu1 %v3233_v18  ;;  %775 = vmatprep.subr.bf16.mxu0 %v4120_v15  ;;  %6301 = vst [vmem:[#allocation10_spill] sm:$0xff] %v4245_v35  ;;  %6302 = vst [vmem:[#allocation11_spill] sm:$0xff] %v4251_v36  ;;  %v4261_v37 = vld [vmem:[%s6200_s4 + $0xe0] ss:$16 sps:$4 sm:$0xff]   ;;  %v4269_v38 = vld [vmem:[%s6201_s5 + $0x4] ss:$16 sps:$4 sm:$0xff]  }
   0xd   :  { %6303 = vst [vmem:[#allocation12_spill] sm:$0xff] %v4261_v37  ;;  %6304 = vst [vmem:[#allocation13_spill] sm:$0xff] %v4269_v38  ;;  %v4274_v39 = vld [vmem:[%s6202_s1] sm:$0xff]  ;;  %v4309_v45 = vld [vmem:[%s6200_s4 + $0x28] ss:$16 sps:$4 sm:$0xff]  }
   0xe   :  { %vm1131_vm1 = vcmp.gt.s32.totalorder %v4274_v39, 0  ;;  %v4287_v42 = vld [vmem:[%s6201_s5] ss:$16 sps:$4 sm:$0xff]   ;;  %v4298_v44 = vld [vmem:[%s6201_s5 + $0x24] ss:$16 sps:$4 sm:$0xff]   ;;  %vm1163_vm2 = vcmp.gt.s32.totalorder %v4274_v39, 7 }
   0xf   :  { %v1132_v40 = vsel %vm1131_vm1, 1, %v6213_v2  ;;  %v4314_v46 = vld [vmem:[%s6201_s5 + $0x20] ss:$16 sps:$4 sm:$0xff]   ;;  %v1164_v47 = vsel %vm1163_vm2, 1, %v6213_v2  ;;  %v4322_v48 = vld [vmem:[%s6200_s4 + $0x4c] ss:$16 sps:$4 sm:$0xff]  }
  0x10   :  { %1134 = vperm.xlu0 %3493, %v1132_v40   ;;  %v4327_v49 = vld [vmem:[%s6201_s5 + $0x44] ss:$16 sps:$4 sm:$0xff]   ;;  %vm1635_vm3 = vcmp.gt.s32.totalorder %v4274_v39, 2  ;;  %v4337_v50 = vld [vmem:[%s6200_s4 + $0x48] ss:$16 sps:$4 sm:$0xff]   ;;  %vm1887_vm4 = vcmp.gt.s32.totalorder %v4274_v39, 3 }
  0x11   :  { %3235 = vmatmul.mubr.msk.bf16.gmra.mrb[4].mxu0 %vm167_vm0, %v4133_v19  ;;  %3237 = vmatmul.mubr.msk.bf16.gmra.mrb[4].mxu1 %vm167_vm0, %v4138_v20  ;;  %v4342_v51 = vld [vmem:[%s6201_s5 + $0x40] ss:$16 sps:$4 sm:$0xff]   ;;  %v1636_v52 = vsel %vm1635_vm3, 1, %v6213_v2  ;;  %v4350_v53 = vld [vmem:[%s6200_s4 + $0x6c] ss:$16 sps:$4 sm:$0xff]   ;;  %v1888_v57 = vsel %vm1887_vm4, 1, %v6213_v2 }
  0x12   :  { %285 = vmatprep.mubr.bf16.mxu1 %v6213_v2  ;;  %358 = vmatprep.mubr.bf16.mxu0 %v6213_v2  ;;  %6305 = vst [vmem:[#allocation14_spill] sm:$0xff] %v4350_v53  ;;  %v4355_v54 = vld [vmem:[%s6201_s5 + $0x64] ss:$16 sps:$4 sm:$0xff]   ;;  %v4365_v55 = vld [vmem:[%s6200_s4 + $0x68] ss:$16 sps:$4 sm:$0xff]   ;;  %vm1383_vm5 = vcmp.gt.s32.totalorder %v4274_v39, 1 }
  0x13   :  { %6306 = vst [vmem:[#allocation15_spill] sm:$0xff] %v4365_v55  ;;  %v4370_v56 = vld [vmem:[%s6201_s5 + $0x60] ss:$16 sps:$4 sm:$0xff]   ;;  %v4378_v58 = vld [vmem:[%s6200_s4 + $0x8c] ss:$16 sps:$4 sm:$0xff]   ;;  %vm1415_vm6 = vcmp.gt.s32.totalorder %v4274_v39, 6 }
  0x14   :  { %1166 = vperm.xlu0 %3493, %v1164_v47   ;;  %6307 = vst [vmem:[#allocation16_spill] sm:$0xff] %v4378_v58  ;;  %v4383_v59 = vld [vmem:[%s6201_s5 + $0x84] ss:$16 sps:$4 sm:$0xff]   ;;  %v4391_v60 = vld [vmem:[%s6200_s4 + $0x88] ss:$16 sps:$4 sm:$0xff]   ;;  %vm1667_vm7 = vcmp.gt.s32.totalorder %v4274_v39, 5 }
  0x15   :  { %6308 = vst [vmem:[#allocation17_spill] sm:$0xff] %v4391_v60  ;;  %v4396_v61 = vld [vmem:[%s6201_s5 + $0x80] ss:$16 sps:$4 sm:$0xff]   ;;  %v4403_v62 = vld [vmem:[%s6200_s4 + $0xac] ss:$16 sps:$4 sm:$0xff]   ;;  %vm1919_vm8 = vcmp.gt.s32.totalorder %v4274_v39, 4 }
  0x16   :  { %6309 = vst [vmem:[#allocation18_spill] sm:$0xff] %v4403_v62  ;;  %v4408_v63 = vld [vmem:[%s6201_s5 + $0xa4] ss:$16 sps:$4 sm:$0xff]   ;;  %v4417_v0 = vld [vmem:[%s6200_s4 + $0xa8] ss:$16 sps:$4 sm:$0xff]   ;;  %vm4005_vm3 = vmmov 0  }
  0x17   :  { %6310 = vst [vmem:[#allocation19_spill] sm:$0xff] %v4417_v0  ;;  %v4422_v1 = vld [vmem:[%s6201_s5 + $0xa0] ss:$16 sps:$4 sm:$0xff]   ;;  %v4429_v3 = vld [vmem:[%s6200_s4 + $0xcc] ss:$16 sps:$4 sm:$0xff]   ;;  %vm3205_vm4 = vcmask 7168  }
  0x18   :  { %1638 = vperm.xlu0 %3493, %v1636_v52   ;;  %6311 = vst [vmem:[#allocation20_spill] sm:$0xff] %v4429_v3  ;;  %v4434_v4 = vld [vmem:[%s6201_s5 + $0xc4] ss:$16 sps:$4 sm:$0xff]   ;;  %v4454_v7 = vld [vmem:[%s6200_s4 + $0xec] ss:$16 sps:$4 sm:$0xff]  }
  0x19   :  { %3238 = vmatmul.mubr.msk.bf16.vlgmr.msra.gmra.mrb[8].mxu1 %vm167_vm0, %v4092_v5  ;;  %3242 = vmatmul.mubr.msk.bf16.vlgmr.msra.gmra.mrb[8].mxu0 %vm167_vm0, %v4092_v5  ;;  %6313 = vst [vmem:[#allocation22_spill] sm:$0xff] %v4454_v7  ;;  %v4459_v8 = vld [vmem:[%s6201_s5 + $0xe4] ss:$16 sps:$4 sm:$0xff]   ;;  %v4468_v9 = vld [vmem:[%s6200_s4 + $0xe8] ss:$16 sps:$4 sm:$0xff]  }
  0x1a   :  { %776 = vmatpush1.bf16.msra.mxu0 %v4150_v22  ;;  %400 = vmatpush1.bf16.msra.mxu1 %v3232_v21  ;;  %6314 = vst [vmem:[#allocation23_spill] sm:$0xff] %v4468_v9  ;;  %v4473_v10 = vld [vmem:[%s6201_s5 + $0xe0] ss:$16 sps:$4 sm:$0xff]   ;;  %v4480_v11 = vld [vmem:[%s6201_s5 + $0xc] ss:$16 sps:$4 sm:$0xff]  }
  0x1b   :  { %777 = vmatprep.subr.bf16.mxu0 %v4155_v23  ;;  %295 = vmatprep.mubr.bf16.mxu1 %v6213_v2  ;;  %6315 = vst [vmem:[#allocation24_spill] sm:$0xff] %v4480_v11  ;;  %v4488_v12 = vld [vmem:[%s6201_s5 + $0x8] ss:$16 sps:$4 sm:$0xff]   ;;  %v4494_v13 = vld [vmem:[%s6201_s5 + $0x2c] ss:$16 sps:$4 sm:$0xff]   ;;  %v4622_v47 = vld [vmem:[%s6203_s6] sm:$0xff] }
  0x1c   :  { %368 = vmatprep.mubr.bf16.mxu0 %v6213_v2  ;;  %816 = vmatprep.subr.bf16.mxu1 %v4160_v24  ;;  %v4503_v14 = vld [vmem:[%s6201_s5 + $0x28] ss:$16 sps:$4 sm:$0xff]   ;;  %v4510_v16 = vld [vmem:[%s6201_s5 + $0x4c] ss:$16 sps:$4 sm:$0xff]  }
  0x1d   :  { %1890 = vperm.xlu0 %3493, %v1888_v57   ;;  %v4525_v17 = vld [vmem:[%s6201_s5 + $0x6c] ss:$16 sps:$4 sm:$0xff]   ;;  %v4533_v18 = vld [vmem:[%s6201_s5 + $0x68] ss:$16 sps:$4 sm:$0xff]  }
  0x1e   :  { %778 = vmatpush1.bf16.msra.mxu0 %v4170_v25  ;;  %v4553_v21 = vld [vmem:[%s6201_s5 + $0xac] ss:$16 sps:$4 sm:$0xff]  }
  0x1f   :  { %779 = vmatprep.subr.bf16.mxu0 %v4177_v26 }
  0x21   :  { %3239 = vmatmul.mubr.msk.bf16.gmra.mrb[12].mxu1 %vm167_vm0, %v4133_v19  ;;  %3243 = vmatmul.mubr.msk.bf16.gmra.mrb[12].mxu0 %vm167_vm0, %v4133_v19 }
  0x22   :  { %780 = vmatpush1.bf16.msra.mxu0 %v4185_v27  ;;  %305 = vmatprep.mubr.bf16.mxu1 %v6213_v2 }
  0x23   :  { %781 = vmatprep.subr.bf16.mxu0 %v4191_v28  ;;  %378 = vmatprep.mubr.bf16.mxu0 %v6213_v2 }
  0x26   :  { %782 = vmatpush1.bf16.msra.mxu0 %v4201_v29 }
  0x27   :  { %783 = vmatprep.subr.bf16.mxu0 %v4209_v30 }
  0x29   :  { %3240 = vmatmul.mubr.msk.bf16.gmra.mrb[16].mxu1 %vm167_vm0, %v4099_v6  ;;  %3244 = vmatmul.mubr.msk.bf16.gmra.mrb[16].mxu0 %vm167_vm0, %v4099_v6 }
  0x2a   :  { %784 = vmatpush1.bf16.msra.mxu0 %v4215_v31  ;;  %315 = vmatprep.mubr.bf16.mxu1 %v6213_v2 }
  0x2b   :  { %785 = vmatprep.subr.bf16.mxu0 %v4221_v32  ;;  %388 = vmatprep.mubr.bf16.mxu0 %v6213_v2 }
  0x2e   :  { %786 = vmatpush1.bf16.msra.mxu0 %v4231_v33 }
  0x2f   :  { %787 = vmatprep.subr.bf16.mxu0 %v4239_v34 }
  0x31   :  { %3241 = vmatmul.mubr.msk.bf16.gmra.mrb[20].mxu1 %vm167_vm0, %v4138_v20  ;;  %3245 = vmatmul.mubr.msk.bf16.gmra.mrb[20].mxu0 %vm167_vm0, %v4138_v20 }
  0x32   :  { %788 = vmatpush1.bf16.msra.mxu0 %v4245_v35  ;;  %431 = vmatprep.mubr.bf16.mxu1 %v6213_v2 }
  0x33   :  { %789 = vmatprep.subr.bf16.mxu0 %v4251_v36  ;;  %807 = vmatprep.mubr.bf16.mxu0 %v6213_v2 }
  0x36   :  { %790 = vmatpush1.bf16.msra.mxu0 %v4261_v37 }
  0x37   :  { %1021 = vmatprep.subr.bf16.mxu0 %v4269_v38 }
  0x39   :  { %3246 = vmatmul.mubr.msk.bf16.vlgmr.msra.gmra.mrb[24].mxu1 %vm167_vm0, %v4092_v5  ;;  %808 = vmatmul.mubr.bf16.vlgmr.msra.gmra.mrb[24].mxu0 %v6213_v2  ;;  %v4442_v5 = vld [vmem:[%s6200_s4 + $0xc8] ss:$16 sps:$4 sm:$0xff]  }
  0x3a   :  { %817 = vmatpush1.bf16.msra.mxu1 %v4282_v41  ;;  %1022 = vmatpush1.bf16.msra.mxu0 %v4287_v42  ;;  %6312 = vst [vmem:[#allocation21_spill] sm:$0xff] %v4442_v5 }
  0x3b   :  { %818 = vmatprep.subr.bf16.mxu1 %v4293_v43  ;;  %1023 = vmatprep.subr.bf16.mxu0 %v4298_v44 }
  0x3c   :  { %441 = vmatprep.mubr.bf16.mxu1 %v6213_v2  ;;  %1053 = vmatprep.mubr.bf16.mxu0 %v6213_v2 }
  0x3e   :  { %819 = vmatpush1.bf16.msra.mxu1 %v4309_v45  ;;  %1024 = vmatpush1.bf16.msra.mxu0 %v4314_v46 }
  0x3f   :  { %820 = vmatprep.subr.bf16.mxu1 %v4322_v48  ;;  %1025 = vmatprep.subr.bf16.mxu0 %v4327_v49 }
  0x41   :  { %3247 = vmatmul.mubr.msk.bf16.gmra.mrb[28].mxu1 %vm167_vm0, %v4133_v19  ;;  %v4539_v19 = vld [vmem:[%s6201_s5 + $0x8c] ss:$16 sps:$4 sm:$0xff]  }
  0x42   :  { %821 = vmatpush1.bf16.msra.mxu1 %v4337_v50  ;;  %1026 = vmatpush1.bf16.msra.mxu0 %v4342_v51 }
  0x43   :  { %822 = vmatprep.subr.bf16.mxu1 %v4350_v53  ;;  %1027 = vmatprep.subr.bf16.mxu0 %v4355_v54 }
  0x44   :  { %451 = vmatprep.mubr.bf16.mxu1 %v6213_v2 }
  0x46   :  { %823 = vmatpush1.bf16.msra.mxu1 %v4365_v55  ;;  %1028 = vmatpush1.bf16.msra.mxu0 %v4370_v56 }
  0x47   :  { %824 = vmatprep.subr.bf16.mxu1 %v4378_v58  ;;  %1029 = vmatprep.subr.bf16.mxu0 %v4383_v59 }
  0x49   :  { %3248 = vmatmul.mubr.msk.bf16.gmra.mrb[32].mxu1 %vm167_vm0, %v4099_v6  ;;  %v4447_v6 = vld [vmem:[%s6201_s5 + $0xc0] ss:$16 sps:$4 sm:$0xff]  }
  0x4a   :  { %825 = vmatpush1.bf16.msra.mxu1 %v4391_v60  ;;  %1030 = vmatpush1.bf16.msra.mxu0 %v4396_v61 }
  0x4b   :  { %826 = vmatprep.subr.bf16.mxu1 %v4403_v62  ;;  %1031 = vmatprep.subr.bf16.mxu0 %v4408_v63 }
  0x4c   :  { %461 = vmatprep.mubr.bf16.mxu1 %v6213_v2 }
  0x4e   :  { %827 = vmatpush1.bf16.msra.mxu1 %v4417_v0  ;;  %1032 = vmatpush1.bf16.msra.mxu0 %v4422_v1 }
  0x4f   :  { %828 = vmatprep.subr.bf16.mxu1 %v4429_v3  ;;  %1033 = vmatprep.subr.bf16.mxu0 %v4434_v4 }
  0x51   :  { %3249 = vmatmul.mubr.msk.bf16.gmra.mrb[36].mxu1 %vm167_vm0, %v4138_v20  ;;  %v4547_v20 = vld [vmem:[%s6201_s5 + $0x88] ss:$16 sps:$4 sm:$0xff]  }
  0x52   :  { %829 = vmatpush1.bf16.msra.mxu1 %v4442_v5  ;;  %1034 = vmatpush1.bf16.msra.mxu0 %v4447_v6 }
  0x53   :  { %830 = vmatprep.subr.bf16.mxu1 %v4454_v7  ;;  %1035 = vmatprep.subr.bf16.mxu0 %v4459_v8 }
  0x54   :  { %848 = vmatprep.mubr.bf16.mxu1 %v6213_v2 }
  0x56   :  { %831 = vmatpush1.bf16.msra.mxu1 %v4468_v9  ;;  %1036 = vmatpush1.bf16.msra.mxu0 %v4473_v10 }
  0x57   :  { %1062 = vmatprep.subr.bf16.mxu1 %v4480_v11  ;;  %1186 = vmatprep.subr.bf16.mxu0 %v4120_v15  ;;  %v4519_v15 = vld [vmem:[%s6201_s5 + $0x48] ss:$16 sps:$4 sm:$0xff]  }
  0x59   :  { %1054 = vmatmul.mubr.bf16.vlgmr.msra.gmra.mrb[28].mxu0 %v6213_v2  ;;  %849 = vmatmul.mubr.bf16.vlgmr.msra.gmra.mrb[40].mxu1 %v6213_v2 }
  0x5a   :  { %1063 = vmatpush1.bf16.msra.mxu1 %v4488_v12  ;;  %1094 = vmatprep.mubr.bf16.mxu1 %v6213_v2 }
  0x5b   :  { %1064 = vmatprep.subr.bf16.mxu1 %v4494_v13  ;;  %1187 = vmatpush1.bf16.msra.mxu0 %v4150_v22  ;;  %v4561_v22 = vld [vmem:[%s6201_s5 + $0xa8] ss:$16 sps:$4 sm:$0xff]  }
  0x5c   :  { %1188 = vmatprep.subr.bf16.mxu0 %v4155_v23  ;;  %1218 = vmatprep.mubr.bf16.mxu0 %v6213_v2  ;;  %v4567_v23 = vld [vmem:[%s6201_s5 + $0xcc] ss:$16 sps:$4 sm:$0xff]  }
  0x5e   :  { %1065 = vmatpush1.bf16.msra.mxu1 %v4503_v14 }
  0x5f   :  { %1066 = vmatprep.subr.bf16.mxu1 %v4510_v16  ;;  %1189 = vmatpush1.bf16.msra.mxu0 %v4170_v25  ;;  %v4575_v25 = vld [vmem:[%s6201_s5 + $0xc8] ss:$16 sps:$4 sm:$0xff]  }
  0x60   :  { %1190 = vmatprep.subr.bf16.mxu0 %v4177_v26  ;;  %v4581_v26 = vld [vmem:[%s6201_s5 + $0xec] ss:$16 sps:$4 sm:$0xff]  }
  0x62   :  { %1067 = vmatpush1.bf16.msra.mxu1 %v4519_v15 }
  0x63   :  { %1068 = vmatprep.subr.bf16.mxu1 %v4525_v17  ;;  %1191 = vmatpush1.bf16.msra.mxu0 %v4185_v27  ;;  %v4589_v27 = vld [vmem:[%s6201_s5 + $0xe8] ss:$16 sps:$4 sm:$0xff]  }
  0x64   :  { %1192 = vmatprep.subr.bf16.mxu0 %v4191_v28 }
  0x66   :  { %1069 = vmatpush1.bf16.msra.mxu1 %v4533_v18 }
  0x67   :  { %1070 = vmatprep.subr.bf16.mxu1 %v4539_v19  ;;  %1193 = vmatpush1.bf16.msra.mxu0 %v4201_v29 }
  0x68   :  { %1194 = vmatprep.subr.bf16.mxu0 %v4209_v30 }
  0x6a   :  { %1071 = vmatpush1.bf16.msra.mxu1 %v4547_v20 }
  0x6b   :  { %1072 = vmatprep.subr.bf16.mxu1 %v4553_v21  ;;  %1195 = vmatpush1.bf16.msra.mxu0 %v4215_v31 }
  0x6c   :  { %1196 = vmatprep.subr.bf16.mxu0 %v4221_v32 }
  0x6e   :  { %1073 = vmatpush1.bf16.msra.mxu1 %v4561_v22 }
  0x6f   :  { %1074 = vmatprep.subr.bf16.mxu1 %v4567_v23  ;;  %1197 = vmatpush1.bf16.msra.mxu0 %v4231_v33 }
  0x70   :  { %1198 = vmatprep.subr.bf16.mxu0 %v4239_v34 }
  0x72   :  { %1075 = vmatpush1.bf16.msra.mxu1 %v4575_v25 }
  0x73   :  { %1076 = vmatprep.subr.bf16.mxu1 %v4581_v26  ;;  %1199 = vmatpush1.bf16.msra.mxu0 %v4245_v35 }
  0x74   :  { %1200 = vmatprep.subr.bf16.mxu0 %v4251_v36 }
  0x76   :  { %1077 = vmatpush1.bf16.msra.mxu1 %v4589_v27 }
  0x77   :  { %1227 = vmatprep.subr.bf16.mxu1 %v4160_v24  ;;  %1201 = vmatpush1.bf16.msra.mxu0 %v4261_v37  ;;  %v67_v24 = vlaneseq }
  0x78   :  { %1273 = vmatprep.subr.bf16.mxu0 %v4269_v38 }
  0x79   :  { %1095 = vmatmul.mubr.bf16.vlgmr.msra.gmra.mrb[44].mxu1 %v6213_v2  ;;  %v4616_v28 = vshrl.u32 %v67_v24, 7 }
  0x7a   :  { %1228 = vmatpush1.bf16.msra.mxu1 %v4282_v41  ;;  %1259 = vmatprep.mubr.bf16.mxu1 %v6213_v2 }
  0x7b   :  { %1229 = vmatprep.subr.bf16.mxu1 %v4293_v43  ;;  %v69_v40 = vsub.s32 0, %v4616_v28  ;;  %v73_v52 = vsub.s32 1, %v4616_v28 }
  0x7d   :  { %v4626_v57 = vrot.slane %v4622_v47, %v69_v40  ;;  %v4629_v2 = vrot.slane %v4622_v47, %v73_v52 }
  0x7e   :  { %1230 = vmatpush1.bf16.msra.mxu1 %v4309_v45 }
  0x7f   :  { %1231 = vmatprep.subr.bf16.mxu1 %v4322_v48 }
  0x82   :  { %1232 = vmatpush1.bf16.msra.mxu1 %v4337_v50 }
  0x83   :  { %1233 = vmatprep.subr.bf16.mxu1 %v4350_v53 }
  0x86   :  { %1234 = vmatpush1.bf16.msra.mxu1 %v4365_v55 }
  0x87   :  { %1235 = vmatprep.subr.bf16.mxu1 %v4378_v58 }
  0x8a   :  { %1236 = vmatpush1.bf16.msra.mxu1 %v4391_v60 }
  0x8b   :  { %1237 = vmatprep.subr.bf16.mxu1 %v4403_v62 }
  0x8e   :  { %1238 = vmatpush1.bf16.msra.mxu1 %v4417_v0 }
  0x8f   :  { %1239 = vmatprep.subr.bf16.mxu1 %v4429_v3 }
  0x92   :  { %1240 = vmatpush1.bf16.msra.mxu1 %v4442_v5 }
  0x93   :  { %1241 = vmatprep.subr.bf16.mxu1 %v4454_v7 }
  0x96   :  { %1242 = vmatpush1.bf16.msra.mxu1 %v4468_v9 }
  0x97   :  { %1314 = vmatprep.subr.bf16.mxu1 %v4480_v11 }
  0xdc   :  { %v234_v38 = vpop.f32.mrb[0].mxu1  ;;  %v4631_v11 = vpop.f32.mrb[0].mxu0 }
  0xdd   :  { %v4634_v24 = vadd.f32 %v234_v38, %v4626_v57  ;;  %v236_v9 = vpop.f32.mrb[1].mxu1  ;;  %v4636_v37 = vpop.f32.mrb[1].mxu0 }
  0xde   :  { %v4639_v7 = vadd.f32 %v236_v9, %v4629_v2  ;;  %v238_v36 = vpop.f32.mrb[2].mxu1  ;;  %v218_v5 = vpop.f32.mrb[2].mxu0 }
  0xdf   :  { %6316 = vst [vmem:[#allocation25_spill] sm:$0xff] %v4634_v24  ;;  %v4642_v40 = vadd.f32 %v238_v36, %v4626_v57  ;;  %v240_v35 = vpop.f32.mrb[3].mxu1  ;;  %v4645_v52 = vadd.f32 %v218_v5, %v4626_v57  ;;  %v220_v3 = vpop.f32.mrb[3].mxu0  ;;  %v85_v5 = vsub.s32 4, %v4616_v28 }
  0xe0   :  { %6317 = vst [vmem:[#allocation26_spill] sm:$0xff] %v4639_v7  ;;  %v4648_v34 = vadd.f32 %v240_v35, %v4629_v2  ;;  %v4651_v38 = vadd.f32 %v220_v3, %v4629_v2 }
  0xe1   :  { %6318 = vst [vmem:[#allocation27_spill] sm:$0xff] %v4642_v40  ;;  %6319 = vst [vmem:[#allocation28_spill] sm:$0xff] %v4645_v52 }
  0xe2   :  { %6320 = vst [vmem:[#allocation29_spill] sm:$0xff] %v4648_v34  ;;  %6321 = vst [vmem:[#allocation30_spill] sm:$0xff] %v4651_v38  ;;  %v89_v38 = vsub.s32 5, %v4616_v28 }
  0xe4   :  { %v244_v24 = vpop.f32.mrb[4].mxu1  ;;  %v224_v0 = vpop.f32.mrb[4].mxu0 }
  0xe5   :  { %v4654_v9 = vadd.f32 %v244_v24, %v4626_v57  ;;  %v246_v7 = vpop.f32.mrb[5].mxu1  ;;  %v4657_v36 = vadd.f32 %v224_v0, %v4626_v57  ;;  %v226_v40 = vpop.f32.mrb[5].mxu0 }
  0xe6   :  { %v4661_v52 = vadd.f32 %v246_v7, %v4629_v2  ;;  %v248_v35 = vpop.f32.mrb[6].mxu1  ;;  %v4664_v34 = vadd.f32 %v226_v40, %v4629_v2  ;;  %v228_v3 = vpop.f32.mrb[6].mxu0  ;;  %v77_v40 = vsub.s32 2, %v4616_v28 }
  0xe7   :  { %6322 = vst [vmem:[#allocation31_spill] sm:$0xff] %v4654_v9  ;;  %6323 = vst [vmem:[#allocation32_spill] sm:$0xff] %v4657_v36  ;;  %v4668_v24 = vadd.f32 %v248_v35, %v4626_v57  ;;  %v250_v9 = vpop.f32.mrb[7].mxu1  ;;  %v4671_v0 = vadd.f32 %v228_v3, %v4626_v57  ;;  %v230_v36 = vpop.f32.mrb[7].mxu0  ;;  %v4685_v35 = vrot.slane %v4622_v47, %v89_v38 }
  0xe8   :  { %6324 = vst [vmem:[#allocation33_spill] sm:$0xff] %v4661_v52  ;;  %6325 = vst [vmem:[#allocation34_spill] sm:$0xff] %v4664_v34  ;;  %v4674_v33 = vadd.f32 %v250_v9, %v4629_v2  ;;  %v4677_v7 = vadd.f32 %v230_v36, %v4629_v2  ;;  %v4681_v52 = vrot.slane %v4622_v47, %v85_v5  ;;  %v81_v34 = vsub.s32 3, %v4616_v28 }
  0xe9   :  { %6326 = vst [vmem:[#allocation35_spill] sm:$0xff] %v4668_v24  ;;  %6327 = vst [vmem:[#allocation36_spill] sm:$0xff] %v4671_v0  ;;  %v4690_v0 = vrot.slane %v4622_v47, %v77_v40 }
  0xea   :  { %6328 = vst [vmem:[#allocation37_spill] sm:$0xff] %v4674_v33  ;;  %6329 = vst [vmem:[#allocation38_spill] sm:$0xff] %v4677_v7  ;;  %v4698_v5 = vrot.slane %v4622_v47, %v81_v34 }
  0xec   :  { %v4687_v24 = vpop.f32.mrb[8].mxu1  ;;  %v360_v3 = vpop.f32.mrb[8].mxu0 }
  0xed   :  { %v4692_v9 = vpop.f32.mrb[9].mxu1  ;;  %v4695_v36 = vadd.f32 %v360_v3, %v4681_v52  ;;  %v362_v33 = vpop.f32.mrb[9].mxu0 }
  0xee   :  { %v291_v7 = vpop.f32.mrb[10].mxu1  ;;  %v4701_v62 = vadd.f32 %v362_v33, %v4685_v35  ;;  %v364_v38 = vpop.f32.mrb[10].mxu0  ;;  %v6336_v33 = vmov 0  }
  0xef   :  { %6330 = vst [vmem:[#allocation39_spill] sm:$0xff] %v4695_v36  ;;  %v4704_v32 = vadd.f32 %v291_v7, %v4690_v0  ;;  %v293_v60 = vpop.f32.mrb[11].mxu1  ;;  %v4707_v40 = vadd.f32 %v364_v38, %v4681_v52  ;;  %v366_v31 = vpop.f32.mrb[11].mxu0  ;;  %v1384_v34 = vsel %vm1383_vm5, 1, %v6336_v33  ;;  %v1416_v7 = vsel %vm1415_vm6, 1, %v6336_v33 }
  0xf0   :  { %6331 = vst [vmem:[#allocation40_spill] sm:$0xff] %v4701_v62  ;;  %v4710_v3 = vadd.f32 %v293_v60, %v4698_v5  ;;  %v4713_v36 = vadd.f32 %v366_v31, %v4685_v35  ;;  %1386 = vperm.xlu1 %3494, %v1384_v34  }
  0xf1   :  { %6332 = vst [vmem:[#allocation41_spill] sm:$0xff] %v4704_v32  ;;  %6333 = vst [vmem:[#allocation42_spill] sm:$0xff] %v4707_v40 }
  0xf2   :  { %6334 = vst [vmem:[#allocation43_spill] sm:$0xff] %v4710_v3  ;;  %6335 = vst [vmem:[#allocation44_spill] sm:$0xff] %v4713_v36 }
  0xf4   :  { %v297_v62 = vpop.f32.mrb[12].mxu1  ;;  %v370_v32 = vpop.f32.mrb[12].mxu0  ;;  %1418 = vperm.xlu1 %3494, %v1416_v7  }
  0xf5   :  { %v4721_v38 = vadd.f32 %v297_v62, %v4690_v0  ;;  %v299_v60 = vpop.f32.mrb[13].mxu1  ;;  %v4724_v31 = vadd.f32 %v370_v32, %v4681_v52  ;;  %v372_v36 = vpop.f32.mrb[13].mxu0  ;;  %v1668_v32 = vsel %vm1667_vm7, 1, %v6336_v33 }
  0xf6   :  { %v4727_v40 = vadd.f32 %v299_v60, %v4698_v5  ;;  %v301_v3 = vpop.f32.mrb[14].mxu1  ;;  %v4730_v34 = vadd.f32 %v372_v36, %v4685_v35  ;;  %v374_v58 = vpop.f32.mrb[14].mxu0  ;;  %v1920_v36 = vsel %vm1919_vm8, 1, %v6336_v33 }
  0xf7   :  { %6337 = vst [vmem:[#allocation45_spill] sm:$0xff] %v4721_v38  ;;  %6338 = vst [vmem:[#allocation46_spill] sm:$0xff] %v4724_v31  ;;  %v4733_v30 = vadd.f32 %v301_v3, %v4690_v0  ;;  %v303_v55 = vpop.f32.mrb[15].mxu1  ;;  %v4736_v62 = vadd.f32 %v374_v58, %v4681_v52  ;;  %v376_v38 = vpop.f32.mrb[15].mxu0 }
  0xf8   :  { %6339 = vst [vmem:[#allocation47_spill] sm:$0xff] %v4727_v40  ;;  %6340 = vst [vmem:[#allocation48_spill] sm:$0xff] %v4730_v34  ;;  %v4740_v31 = vadd.f32 %v303_v55, %v4698_v5  ;;  %v4743_v60 = vadd.f32 %v376_v38, %v4685_v35  ;;  %1670 = vperm.xlu1 %3494, %v1668_v32  }
  0xf9   :  { %6341 = vst [vmem:[#allocation49_spill] sm:$0xff] %v4733_v30  ;;  %6342 = vst [vmem:[#allocation50_spill] sm:$0xff] %v4736_v62 }
  0xfa   :  { %6343 = vst [vmem:[#allocation51_spill] sm:$0xff] %v4740_v31  ;;  %6344 = vst [vmem:[#allocation52_spill] sm:$0xff] %v4743_v60 }
  0xfc   :  { %v307_v3 = vpop.f32.mrb[16].mxu1  ;;  %v380_v7 = vpop.f32.mrb[16].mxu0  ;;  %1922 = vperm.xlu1 %3494, %v1920_v36  }
  0xfd   :  { %v4748_v34 = vadd.f32 %v307_v3, %v4690_v0  ;;  %v309_v58 = vpop.f32.mrb[17].mxu1  ;;  %v4751_v62 = vadd.f32 %v380_v7, %v4681_v52  ;;  %v382_v30 = vpop.f32.mrb[17].mxu0 }
  0xfe   :  { %v4754_v55 = vadd.f32 %v309_v58, %v4698_v5  ;;  %v311_v38 = vpop.f32.mrb[18].mxu1  ;;  %v4757_v60 = vadd.f32 %v382_v30, %v4685_v35  ;;  %v384_v39 = vpop.f32.mrb[18].mxu0 }
  0xff   :  { %6345 = vst [vmem:[#allocation53_spill] sm:$0xff] %v4748_v34  ;;  %6346 = vst [vmem:[#allocation54_spill] sm:$0xff] %v4751_v62  ;;  %v4760_v32 = vadd.f32 %v311_v38, %v4690_v0  ;;  %v313_v31 = vpop.f32.mrb[19].mxu1  ;;  %v4763_v3 = vadd.f32 %v384_v39, %v4681_v52  ;;  %v386_v34 = vpop.f32.mrb[19].mxu0  ;;  %v93_v39 = vsub.s32 6, %v4616_v28 }
 0x100   :  { %6347 = vst [vmem:[#allocation55_spill] sm:$0xff] %v4754_v55  ;;  %6348 = vst [vmem:[#allocation56_spill] sm:$0xff] %v4757_v60  ;;  %v4766_v7 = vadd.f32 %v313_v31, %v4698_v5  ;;  %v4769_v58 = vadd.f32 %v386_v34, %v4685_v35 }
 0x101   :  { %6349 = vst [vmem:[#allocation57_spill] sm:$0xff] %v4760_v32  ;;  %6350 = vst [vmem:[#allocation58_spill] sm:$0xff] %v4763_v3  ;;  %v4792_v40 = vrot.slane %v4622_v47, %v93_v39 }
 0x102   :  { %6351 = vst [vmem:[#allocation59_spill] sm:$0xff] %v4766_v7  ;;  %6352 = vst [vmem:[#allocation60_spill] sm:$0xff] %v4769_v58  ;;  %v97_v58 = vsub.s32 7, %v4616_v28  ;;  %v217_v28 = vadd.f32 %v4636_v37, %v4629_v2 }
 0x104   :  { %v317_v55 = vpop.f32.mrb[20].mxu1  ;;  %v390_v62 = vpop.f32.mrb[20].mxu0 }
 0x105   :  { %v4772_v30 = vadd.f32 %v317_v55, %v4690_v0  ;;  %v319_v36 = vpop.f32.mrb[21].mxu1  ;;  %v4775_v38 = vadd.f32 %v390_v62, %v4681_v52  ;;  %v392_v32 = vpop.f32.mrb[21].mxu0 }
 0x106   :  { %v4779_v60 = vadd.f32 %v319_v36, %v4698_v5  ;;  %v321_v31 = vpop.f32.mrb[22].mxu1  ;;  %v4782_v7 = vadd.f32 %v392_v32, %v4685_v35  ;;  %v394_v34 = vpop.f32.mrb[22].mxu0  ;;  %v4795_v36 = vrot.slane %v4622_v47, %v97_v58  ;;  %v215_v32 = vadd.f32 %v4631_v11, %v4626_v57 }
 0x107   :  { %6353 = vst [vmem:[#allocation61_spill] sm:$0xff] %v4772_v30  ;;  %6354 = vst [vmem:[#allocation62_spill] sm:$0xff] %v4775_v38  ;;  %v4786_v55 = vadd.f32 %v321_v31, %v4690_v0  ;;  %v323_v30 = vpop.f32.mrb[23].mxu1  ;;  %v396_v3 = vpop.f32.mrb[23].mxu0 }
 0x108   :  { %6355 = vst [vmem:[#allocation63_spill] sm:$0xff] %v4779_v60  ;;  %6356 = vst [vmem:[#allocation64_spill] sm:$0xff] %v4782_v7  ;;  %v4789_v62 = vadd.f32 %v323_v30, %v4698_v5 }
 0x109   :  { %6357 = vst [vmem:[#allocation65_spill] sm:$0xff] %v4786_v55 }
 0x10a   :  { %6358 = vst [vmem:[#allocation66_spill] sm:$0xff] %v4789_v62 }
 0x10c   :  { %v433_v60 = vpop.f32.mrb[24].mxu1  ;;  %v809_v31 = vpop.f32.mrb[24].mxu0 }
 0x10d   :  { %v4802_v55 = vadd.f32 %v433_v60, %v4792_v40  ;;  %v857_v7 = vadd.f32 %v809_v31, %v215_v32  ;;  %v435_v30 = vpop.f32.mrb[25].mxu1  ;;  %v811_v62 = vpop.f32.mrb[25].mxu0 }
 0x10e   :  { %v4805_v39 = vadd.f32 %v435_v30, %v4795_v36  ;;  %v858_v38 = vadd.f32 %v811_v62, %v217_v28  ;;  %v437_v47 = vpop.f32.mrb[26].mxu1  ;;  %v813_v58 = vpop.f32.mrb[26].mxu0 }
 0x10f   :  { %6359 = vst [vmem:[#allocation67_spill] sm:$0xff] %v4802_v55  ;;  %v4808_v29 = vadd.f32 %v437_v47, %v4792_v40  ;;  %v439_v11 = vpop.f32.mrb[27].mxu1  ;;  %v814_v57 = vpop.f32.mrb[27].mxu0 }
 0x110   :  { %6360 = vst [vmem:[#allocation68_spill] sm:$0xff] %v4805_v39  ;;  %v4811_v2 = vadd.f32 %v439_v11, %v4795_v36  ;;  %v3315_v47 = vmul.f32 -1.442695, %v858_v38  ;;  %v3314_v57 = vmul.f32 -1.442695, %v857_v7 }
 0x111   :  { %6361 = vst [vmem:[#allocation69_spill] sm:$0xff] %v4808_v29 }
 0x112   :  { %6362 = vst [vmem:[#allocation70_spill] sm:$0xff] %v4811_v2  ;;  %3619 = vpow2.f32 %v3315_v47 }
 0x113   :  { %3621 = vpow2.f32 %v3314_v57 }
 0x114   :  { %v443_v37 = vpop.f32.mrb[28].mxu1 }
 0x115   :  { %v4814_v60 = vadd.f32 %v443_v37, %v4792_v40  ;;  %v445_v32 = vpop.f32.mrb[29].mxu1 }
 0x116   :  { %v4817_v31 = vadd.f32 %v445_v32, %v4795_v36  ;;  %v447_v30 = vpop.f32.mrb[30].mxu1 }
 0x117   :  { %6363 = vst [vmem:[#allocation71_spill] sm:$0xff] %v4814_v60  ;;  %v4820_v62 = vadd.f32 %v447_v30, %v4792_v40  ;;  %v449_v28 = vpop.f32.mrb[31].mxu1 }
 0x118   :  { %6364 = vst [vmem:[#allocation72_spill] sm:$0xff] %v4817_v31  ;;  %v4823_v58 = vadd.f32 %v449_v28, %v4795_v36 }
 0x119   :  { %6365 = vst [vmem:[#allocation73_spill] sm:$0xff] %v4820_v62  ;;  %v290_v62 = vadd.f32 %v4692_v9, %v4698_v5 }
 0x11a   :  { %6366 = vst [vmem:[#allocation74_spill] sm:$0xff] %v4823_v58 }
 0x11c   :  { %v453_v11 = vpop.f32.mrb[32].mxu1  ;;  %v3620_v57 = vpop.eup %3619 }
 0x11d   :  { %v4826_v37 = vadd.f32 %v453_v11, %v4792_v40  ;;  %v455_v39 = vpop.f32.mrb[33].mxu1  ;;  %v1116_v60 = vadd.f32 1.0, %v3620_v57 }
 0x11e   :  { %v4829_v32 = vadd.f32 %v455_v39, %v4795_v36  ;;  %v457_v55 = vpop.f32.mrb[34].mxu1  ;;  %v3622_v39 = vpop.eup %3621 }
 0x11f   :  { %6367 = vst [vmem:[#allocation75_spill] sm:$0xff] %v4826_v37  ;;  %v4832_v30 = vadd.f32 %v457_v55, %v4792_v40  ;;  %v459_v2 = vpop.f32.mrb[35].mxu1  ;;  %v1110_v58 = vadd.f32 1.0, %v3622_v39  ;;  %v288_v55 = vadd.f32 %v4687_v24, %v4690_v0  ;;  %3623 = vrcp.f32 %v1116_v60 }
 0x120   :  { %6368 = vst [vmem:[#allocation76_spill] sm:$0xff] %v4829_v32  ;;  %v4835_v38 = vadd.f32 %v459_v2, %v4795_v36  ;;  %v395_v2 = vadd.f32 %v394_v34, %v4681_v52 }
 0x121   :  { %6369 = vst [vmem:[#allocation77_spill] sm:$0xff] %v4832_v30  ;;  %3625 = vrcp.f32 %v1110_v58 }
 0x122   :  { %6370 = vst [vmem:[#allocation78_spill] sm:$0xff] %v4835_v38 }
 0x124   :  { %v463_v28 = vpop.f32.mrb[36].mxu1 }
 0x125   :  { %v4838_v7 = vadd.f32 %v463_v28, %v4792_v40  ;;  %v465_v47 = vpop.f32.mrb[37].mxu1  ;;  %v397_v28 = vadd.f32 %v396_v3, %v4685_v35 }
 0x126   :  { %v4841_v11 = vadd.f32 %v465_v47, %v4795_v36  ;;  %v467_v29 = vpop.f32.mrb[38].mxu1 }
 0x127   :  { %6371 = vst [vmem:[#allocation79_spill] sm:$0xff] %v4838_v7  ;;  %v469_v31 = vpop.f32.mrb[39].mxu1 }
 0x128   :  { %6372 = vst [vmem:[#allocation80_spill] sm:$0xff] %v4841_v11 }
 0x129   :  { %v3624_v9 = vpop.eup %3623 }
 0x12a   :  { %v1126_v60 = vmul.f32 0.0, %v3624_v9 }
 0x12b   :  { %v3626_v5 = vpop.eup %3625 }
 0x12c   :  { %v1055_v32 = vpop.f32.mrb[28].mxu0  ;;  %v850_v37 = vpop.f32.mrb[40].mxu1 }
 0x12d   :  { %v1103_v47 = vadd.f32 %v1055_v32, %v395_v2  ;;  %v859_v38 = vadd.f32 %v850_v37, %v288_v55  ;;  %v1057_v30 = vpop.f32.mrb[29].mxu0  ;;  %v852_v11 = vpop.f32.mrb[41].mxu1 }
 0x12e   :  { %v1104_v57 = vadd.f32 %v1057_v30, %v397_v28  ;;  %v860_v39 = vadd.f32 %v852_v11, %v290_v62  ;;  %v854_v7 = vpop.f32.mrb[42].mxu1  ;;  %v1059_v53 = vpop.f32.mrb[30].mxu0  ;;  %v468_v28 = vadd.f32 %v467_v29, %v4792_v40 }
 0x12f   :  { %3627 = vtanh.f32 %v859_v38  ;;  %v855_v24 = vpop.f32.mrb[43].mxu1  ;;  %v1060_v52 = vpop.f32.mrb[31].mxu0  ;;  %v3317_v34 = vmul.f32 -1.442695, %v1103_v47  ;;  %v470_v47 = vadd.f32 %v469_v31, %v4795_v36 }
 0x130   :  { %v3316_v0 = vmul.f32 -1.442695, %v860_v39  ;;  %v3318_v35 = vmul.f32 -1.442695, %v1104_v57  ;;  %v4852_v7 = vpop.permute.xlu0 %1134 }
 0x131   :  { %6373 = vst [vmem:[#allocation81_spill] sm:$0xff] %v4852_v7  ;;  %vm1136_vm9 = vcmp.eq.s32.totalorder %v4852_v7, 1 }
 0x132   :  { %3629 = vpow2.f32 %v3316_v0  ;;  %vm3320_vm10 = vmpackc.low %vm1136_vm9, %vm1136_vm9 }
 0x133   :  { %3631 = vpow2.f32 %v3318_v35 }
 0x134   :  { %3633 = vpow2.f32 %v3317_v34 }
 0x139   :  { %v3628_v3 = vpop.eup %3627 }
 0x13a   :  { %v1127_v32 = vmul.f32 %v3628_v3, %v3626_v5 }
 0x13c   :  { %v4849_v37 = vadd.f32 %v1127_v32, %v1126_v60  ;;  %v3630_v58 = vpop.eup %3629  ;;  %v6381_v60 = vld [vmem:[#allocation5_spill] sm:$0xff]  ;;  %v6382_v32 = vld [vmem:[#allocation16_spill] sm:$0xff] }
 0x13d   :  { %v1123_v62 = vadd.f32 1.0, %v3630_v58  ;;  %v3632_v53 = vpop.eup %3631  ;;  %v6383_v58 = vld [vmem:[#allocation6_spill] sm:$0xff] }
 0x13e   :  { %v3634_v30 = vpop.eup %3633  ;;  %v1148_v38 = vadd.f32 1.0, %v3632_v53  ;;  %v6386_v53 = vld [vmem:[#allocation18_spill] sm:$0xff] }
 0x13f   :  { %3635 = vrcp.f32 %v1123_v62  ;;  %v1142_v55 = vadd.f32 1.0, %v3634_v30  ;;  %v6385_v62 = vld [vmem:[#allocation7_spill] sm:$0xff]  ;;  %v6387_v30 = vld [vmem:[#allocation8_spill] sm:$0xff] }
 0x140   :  { %3637 = vtanh.f32 %v4849_v37 }
 0x141   :  { %3639 = vrcp.f32 %v1148_v38  ;;  %v6388_v38 = vld [vmem:[#allocation19_spill] sm:$0xff] }
 0x142   :  { %3641 = vrcp.f32 %v1142_v55  ;;  %v6390_v55 = vld [vmem:[#allocation20_spill] sm:$0xff] }
 0x149   :  { %v3636_v11 = vpop.eup %3635 }
 0x14a   :  { %v3638_v2 = vpop.eup %3637 }
 0x14b   :  { %v4856_v57 = vmul.f32 %v3638_v2, %v3636_v11  ;;  %v6389_v11 = vld [vmem:[#allocation9_spill] sm:$0xff]  ;;  %v6391_v2 = vld [vmem:[#allocation10_spill] sm:$0xff] }
 0x14c   :  { %v1096_v39 = vpop.f32.mrb[44].mxu1 }
 0x14d   :  { %v1105_v24 = vadd.f32 %v1096_v39, %v468_v28  ;;  %v1098_v52 = vpop.f32.mrb[45].mxu1  ;;  %v3321_v0 = vpack.c.bf16 %v4856_v57, %v4856_v57  ;;  %v6392_v28 = vld [vmem:[#allocation21_spill] sm:$0xff]  ;;  %v6394_v39 = vld [vmem:[#allocation22_spill] sm:$0xff] }
 0x14e   :  { %v1106_v9 = vadd.f32 %v1098_v52, %v470_v47  ;;  %v1100_v29 = vpop.f32.mrb[46].mxu1  ;;  %v6393_v47 = vld [vmem:[#allocation11_spill] sm:$0xff] }
 0x14f   :  { %3643 = vtanh.f32 %v1105_v24  ;;  %v1101_v40 = vpop.f32.mrb[47].mxu1  ;;  %3322 = vmatmul.mubr.msk.bf16.vlgmr.msra.gmra.mrb[32].mxu0 %vm3320_vm10, %v3321_v0  ;;  %3325 = vmatmul.mubr.msk.bf16.vlgmr.msra.gmra.mrb[48].mxu1 %vm3320_vm10, %v3321_v0  ;;  %v6395_v24 = vld [vmem:[#allocation12_spill] sm:$0xff]  ;;  %v6396_v52 = vld [vmem:[#allocation23_spill] sm:$0xff]  ;;  %v6397_v0 = vld [vmem:[#allocation13_spill] sm:$0xff] }
 0x150   :  { %v3319_v36 = vmul.f32 -1.442695, %v1106_v9  ;;  %1274 = vmatpush1.bf16.msra.mxu0 %v4287_v42  ;;  %1315 = vmatpush1.bf16.msra.mxu1 %v4488_v12  ;;  %v3640_v42 = vpop.eup %3639  ;;  %v6398_v9 = vld [vmem:[#allocation24_spill] sm:$0xff] }
 0x151   :  { %1275 = vmatprep.subr.bf16.mxu0 %v4298_v44  ;;  %1316 = vmatprep.subr.bf16.mxu1 %v4494_v13  ;;  %v3642_v31 = vpop.eup %3641  ;;  %v1158_v44 = vmul.f32 0.0, %v3640_v42 }
 0x152   :  { %3645 = vpow2.f32 %v3319_v36  ;;  %1305 = vmatprep.mubr.bf16.mxu0 %v6336_v33  ;;  %1346 = vmatprep.mubr.bf16.mxu1 %v6336_v33  ;;  %v6399_v36 = vld [vmem:[#allocation28_spill] sm:$0xff] }
 0x154   :  { %1276 = vmatpush1.bf16.msra.mxu0 %v4314_v46  ;;  %1317 = vmatpush1.bf16.msra.mxu1 %v4503_v14 }
 0x155   :  { %1277 = vmatprep.subr.bf16.mxu0 %v4327_v49  ;;  %1318 = vmatprep.subr.bf16.mxu1 %v4510_v16 }
 0x158   :  { %1278 = vmatpush1.bf16.msra.mxu0 %v4342_v51  ;;  %1319 = vmatpush1.bf16.msra.mxu1 %v4519_v15 }
 0x159   :  { %v3644_v5 = vpop.eup %3643  ;;  %1279 = vmatprep.subr.bf16.mxu0 %v4355_v54  ;;  %1320 = vmatprep.subr.bf16.mxu1 %v4525_v17 }
 0x15a   :  { %v1159_v35 = vmul.f32 %v3644_v5, %v3642_v31  ;;  %v6400_v31 = vld [vmem:[#allocation41_spill] sm:$0xff] }
 0x15c   :  { %v3646_v46 = vpop.eup %3645  ;;  %v4878_v3 = vadd.f32 %v1159_v35, %v1158_v44  ;;  %1280 = vmatpush1.bf16.msra.mxu0 %v4370_v56  ;;  %1321 = vmatpush1.bf16.msra.mxu1 %v4533_v18  ;;  %v4899_v56 = vpop.permute.xlu0 %1166 }
 0x15d   :  { %v1155_v34 = vadd.f32 1.0, %v3646_v46  ;;  %1281 = vmatprep.subr.bf16.mxu0 %v4383_v59  ;;  %1322 = vmatprep.subr.bf16.mxu1 %v4539_v19  ;;  %6374 = vst [vmem:[#allocation82_spill] sm:$0xff] %v4899_v56  ;;  %vm1168_vm11 = vcmp.eq.s32.totalorder %v4899_v56, 1  ;;  %v6401_v46 = vld [vmem:[#allocation30_spill] sm:$0xff] }
 0x15e   :  { %3647 = vtanh.f32 %v4878_v3  ;;  %vm3326_vm12 = vmpackc.low %vm1168_vm11, %vm1168_vm11 }
 0x15f   :  { %3649 = vrcp.f32 %v1155_v34 }
 0x160   :  { %1282 = vmatpush1.bf16.msra.mxu0 %v4396_v61  ;;  %1323 = vmatpush1.bf16.msra.mxu1 %v4547_v20  ;;  %v4909_v61 = vld [vmem:[%s6200_s4 + $0x4] ss:$16 sps:$4 sm:$0xff]  }
 0x161   :  { %1283 = vmatprep.subr.bf16.mxu0 %v4408_v63  ;;  %1324 = vmatprep.subr.bf16.mxu1 %v4553_v21  ;;  %v4915_v63 = vld [vmem:[%s6200_s4 + $0xc] ss:$16 sps:$4 sm:$0xff]  }
 0x164   :  { %1284 = vmatpush1.bf16.msra.mxu0 %v4422_v1  ;;  %1325 = vmatpush1.bf16.msra.mxu1 %v4561_v22  ;;  %v4924_v1 = vld [vmem:[%s6200_s4] ss:$16 sps:$4 sm:$0xff]  }
 0x165   :  { %1285 = vmatprep.subr.bf16.mxu0 %v4434_v4  ;;  %1326 = vmatprep.subr.bf16.mxu1 %v4567_v23  ;;  %v4931_v4 = vld [vmem:[%s6200_s4 + $0x24] ss:$16 sps:$4 sm:$0xff]  }
 0x168   :  { %v3648_v49 = vpop.eup %3647  ;;  %1286 = vmatpush1.bf16.msra.mxu0 %v4447_v6  ;;  %1327 = vmatpush1.bf16.msra.mxu1 %v4575_v25  ;;  %v4940_v6 = vld [vmem:[%s6200_s4 + $0x20] ss:$16 sps:$4 sm:$0xff]  }
 0x169   :  { %v3650_v51 = vpop.eup %3649  ;;  %1287 = vmatprep.subr.bf16.mxu0 %v4459_v8  ;;  %1328 = vmatprep.subr.bf16.mxu1 %v4581_v26  ;;  %v6378_v8 = vld [vmem:[#allocation14_spill] sm:$0xff] }
 0x16a   :  { %v4897_v54 = vmul.f32 %v3650_v51, %v3648_v49  ;;  %v6402_v49 = vld [vmem:[#allocation43_spill] sm:$0xff] }
 0x16c   :  { %v3327_v59 = vpack.c.bf16 %v4897_v54, %v4897_v54  ;;  %1288 = vmatpush1.bf16.msra.mxu0 %v4473_v10  ;;  %1329 = vmatpush1.bf16.msra.mxu1 %v4589_v27  ;;  %v6379_v10 = vld [vmem:[#allocation4_spill] sm:$0xff] }
 0x16d   :  { %1438 = vmatprep.subr.bf16.mxu0 %v4909_v61  ;;  %1479 = vmatprep.subr.bf16.mxu1 %v4915_v63 }
 0x16f   :  { %3328 = vmatmul.mubr.msk.bf16.vlgmr.msra.gmra.mrb[36].mxu0 %vm3326_vm12, %v3327_v59  ;;  %3331 = vmatmul.mubr.msk.bf16.vlgmr.msra.gmra.mrb[52].mxu1 %vm3326_vm12, %v3327_v59 }
 0x170   :  { %1439 = vmatpush1.bf16.msra.mxu0 %v4924_v1  ;;  %1480 = vmatpush1.bf16.msra.mxu1 %v4282_v41  ;;  %v4947_v41 = vld [vmem:[%s6200_s4 + $0x44] ss:$16 sps:$4 sm:$0xff]  }
 0x171   :  { %1440 = vmatprep.subr.bf16.mxu0 %v4931_v4  ;;  %1481 = vmatprep.subr.bf16.mxu1 %v4293_v43  ;;  %6375 = vst [vmem:[#allocation83_spill] sm:$0xff] %v4947_v41  ;;  %v4954_v43 = vld [vmem:[%s6200_s4 + $0x40] ss:$16 sps:$4 sm:$0xff]  }
 0x172   :  { %1470 = vmatprep.mubr.bf16.mxu0 %v6336_v33  ;;  %1511 = vmatprep.mubr.bf16.mxu1 %v6336_v33  ;;  %6376 = vst [vmem:[#allocation84_spill] sm:$0xff] %v4954_v43 }
 0x174   :  { %1441 = vmatpush1.bf16.msra.mxu0 %v4940_v6  ;;  %1482 = vmatpush1.bf16.msra.mxu1 %v4309_v45  ;;  %v4961_v45 = vld [vmem:[%s6200_s4 + $0x64] ss:$16 sps:$4 sm:$0xff]  }
 0x175   :  { %1442 = vmatprep.subr.bf16.mxu0 %v4947_v41  ;;  %1483 = vmatprep.subr.bf16.mxu1 %v4322_v48  ;;  %6377 = vst [vmem:[#allocation85_spill] sm:$0xff] %v4961_v45  ;;  %v6380_v48 = vld [vmem:[#allocation15_spill] sm:$0xff] }
 0x178   :  { %1443 = vmatpush1.bf16.msra.mxu0 %v4954_v43  ;;  %1484 = vmatpush1.bf16.msra.mxu1 %v4337_v50  ;;  %v6384_v50 = vld [vmem:[#allocation17_spill] sm:$0xff] }
 0x179   :  { %1444 = vmatprep.subr.bf16.mxu0 %v4961_v45  ;;  %1485 = vmatprep.subr.bf16.mxu1 %v6378_v8 }
 0x17c   :  { %1445 = vmatpush1.bf16.msra.mxu0 %v6379_v10  ;;  %1486 = vmatpush1.bf16.msra.mxu1 %v6380_v48 }
 0x17d   :  { %1446 = vmatprep.subr.bf16.mxu0 %v6381_v60  ;;  %1487 = vmatprep.subr.bf16.mxu1 %v6382_v32 }
 0x180   :  { %1447 = vmatpush1.bf16.msra.mxu0 %v6383_v58  ;;  %1488 = vmatpush1.bf16.msra.mxu1 %v6384_v50 }
 0x181   :  { %1448 = vmatprep.subr.bf16.mxu0 %v6385_v62  ;;  %1489 = vmatprep.subr.bf16.mxu1 %v6386_v53 }
 0x184   :  { %1449 = vmatpush1.bf16.msra.mxu0 %v6387_v30  ;;  %1490 = vmatpush1.bf16.msra.mxu1 %v6388_v38 }
 0x185   :  { %1450 = vmatprep.subr.bf16.mxu0 %v6389_v11  ;;  %1491 = vmatprep.subr.bf16.mxu1 %v6390_v55 }
 0x188   :  { %1451 = vmatpush1.bf16.msra.mxu0 %v6391_v2  ;;  %1492 = vmatpush1.bf16.msra.mxu1 %v6392_v28  ;;  %v4989_v2 = vpop.permute.xlu1 %1386 }
 0x189   :  { %1452 = vmatprep.subr.bf16.mxu0 %v6393_v47  ;;  %1493 = vmatprep.subr.bf16.mxu1 %v6394_v39  ;;  %6403 = vst [vmem:[#allocation14_spill] sm:$0xff] %v4989_v2  ;;  %v1138_v47 = vsel %vm1136_vm9, %v4849_v37, 0.0  ;;  %vm1388_vm13 = vcmp.eq.s32.totalorder %v4989_v2, 1  ;;  %v6406_v37 = vld [vmem:[#allocation64_spill] sm:$0xff]  ;;  %v6434_v2 = vld [vmem:[#allocation34_spill] sm:$0xff] }
 0x18c   :  { %1453 = vmatpush1.bf16.msra.mxu0 %v6395_v24  ;;  %1494 = vmatpush1.bf16.msra.mxu1 %v6396_v52 }
 0x18d   :  { %1525 = vmatprep.subr.bf16.mxu0 %v6397_v0  ;;  %1566 = vmatprep.subr.bf16.mxu1 %v6398_v9 }
 0x222   :  { %v1220_v29 = vpop.f32.mrb[32].mxu0  ;;  %v1261_v40 = vpop.f32.mrb[48].mxu1 }
 0x223   :  { %v1268_v42 = vadd.f32 %v1220_v29, %v6399_v36  ;;  %v1270_v5 = vadd.f32 %v1261_v40, %v6400_v31  ;;  %v1222_v44 = vpop.f32.mrb[33].mxu0  ;;  %v1263_v35 = vpop.f32.mrb[49].mxu1  ;;  %v6404_v40 = vld [vmem:[#allocation62_spill] sm:$0xff] }
 0x224   :  { %v1269_v34 = vadd.f32 %v1222_v44, %v6401_v46  ;;  %v1271_v51 = vadd.f32 %v1263_v35, %v6402_v49  ;;  %v1224_v59 = vpop.f32.mrb[34].mxu0  ;;  %v1265_v8 = vpop.f32.mrb[50].mxu1 }
 0x225   :  { %v3332_v10 = vmul.f32 -1.442695, %v1268_v42  ;;  %v1225_v48 = vpop.f32.mrb[35].mxu0  ;;  %v1266_v60 = vpop.f32.mrb[51].mxu1  ;;  %v6405_v42 = vld [vmem:[#allocation79_spill] sm:$0xff] }
 0x226   :  { %v3333_v32 = vmul.f32 -1.442695, %v1269_v34  ;;  %v3334_v58 = vmul.f32 -1.442695, %v1271_v51  ;;  %v6407_v34 = vld [vmem:[#allocation80_spill] sm:$0xff] }
 0x227   :  { %3651 = vpow2.f32 %v3332_v10 }
 0x228   :  { %3653 = vpow2.f32 %v3333_v32 }
 0x229   :  { %3655 = vpow2.f32 %v3334_v58 }
 0x22a   :  { %3657 = vtanh.f32 %v1270_v5 }
 0x231   :  { %v3652_v50 = vpop.eup %3651 }
 0x232   :  { %v3654_v62 = vpop.eup %3653  ;;  %v1362_v53 = vadd.f32 1.0, %v3652_v50 }
 0x233   :  { %v1368_v30 = vadd.f32 1.0, %v3654_v62  ;;  %v3656_v38 = vpop.eup %3655 }
 0x234   :  { %3659 = vrcp.f32 %v1362_v53  ;;  %v3658_v11 = vpop.eup %3657  ;;  %v1375_v39 = vadd.f32 1.0, %v3656_v38  ;;  %v1137_v53 = vsel %vm1136_vm9, %v4856_v57, 0.0  ;;  %v5015_v57 = vld [vmem:[%s6201_s5] ss:$16 sps:$4 sm:$0xff]  }
 0x235   :  { %3661 = vrcp.f32 %v1368_v30 }
 0x236   :  { %3663 = vrcp.f32 %v1375_v39  ;;  %v5022_v39 = vld [vmem:[%s6201_s5 + $0x24] ss:$16 sps:$4 sm:$0xff]  }
 0x23e   :  { %v3660_v55 = vpop.eup %3659 }
 0x23f   :  { %v3662_v28 = vpop.eup %3661  ;;  %v1379_v24 = vmul.f32 %v3660_v55, %v3658_v11 }
 0x240   :  { %v1378_v52 = vmul.f32 %v3662_v28, %v1138_v47  ;;  %v3664_v32 = vpop.eup %3663 }
 0x242   :  { %v1307_v0 = vpop.f32.mrb[36].mxu0  ;;  %v1348_v9 = vpop.f32.mrb[52].mxu1  ;;  %v1380_v29 = vadd.f32 %v1379_v24, %v1378_v52  ;;  %v5031_v24 = vld [vmem:[%s6201_s5 + $0x20] ss:$16 sps:$4 sm:$0xff]  }
 0x243   :  { %v1355_v36 = vadd.f32 %v1307_v0, %v6404_v40  ;;  %v1357_v31 = vadd.f32 %v1348_v9, %v6405_v42  ;;  %v1309_v5 = vpop.f32.mrb[37].mxu0  ;;  %v1350_v44 = vpop.f32.mrb[53].mxu1  ;;  %v5045_v0 = vld [vmem:[%s6201_s5 + $0x40] ss:$16 sps:$4 sm:$0xff]   ;;  %v5052_v9 = vld [vmem:[%s6201_s5 + $0x64] ss:$16 sps:$4 sm:$0xff]  }
 0x244   :  { %3665 = vtanh.f32 %v1380_v29  ;;  %v4999_v35 = vsel %vm1388_vm13, %v1380_v29, %v1138_v47  ;;  %v1356_v46 = vadd.f32 %v1309_v5, %v6406_v37  ;;  %v1358_v49 = vadd.f32 %v1350_v44, %v6407_v34  ;;  %v1311_v51 = vpop.f32.mrb[38].mxu0  ;;  %v1352_v59 = vpop.f32.mrb[54].mxu1  ;;  %v5071_v5 = vld [vmem:[%s6201_s5 + $0x84] ss:$16 sps:$4 sm:$0xff]   ;;  %v5097_v44 = vld [vmem:[%s6201_s5 + $0xa0] ss:$16 sps:$4 sm:$0xff]  }
 0x245   :  { %v3335_v8 = vmul.f32 -1.442695, %v1355_v36  ;;  %v1312_v10 = vpop.f32.mrb[39].mxu0  ;;  %v1353_v48 = vpop.f32.mrb[55].mxu1  ;;  %v1170_v40 = vsel %vm1168_vm11, %v4878_v3, 0.0  ;;  %v1169_v34 = vsel %vm1168_vm11, %v4897_v54, 0.0 }
 0x246   :  { %v3336_v60 = vmul.f32 -1.442695, %v1356_v46  ;;  %v3337_v50 = vmul.f32 -1.442695, %v1358_v49  ;;  %v5118_v46 = vld [vmem:[%s6201_s5 + $0xe4] ss:$16 sps:$4 sm:$0xff]  }
 0x247   :  { %3667 = vpow2.f32 %v3335_v8  ;;  %v5144_v54 = vld [vmem:[%s6200_s4 + $0x8] ss:$16 sps:$4 sm:$0xff]   ;;  %v5167_v59 = vld [vmem:[%s6200_s4 + $0x4c] ss:$16 sps:$4 sm:$0xff]   ;;  %v5187_v48 = vld [vmem:[%s6200_s4 + $0x60] ss:$16 sps:$4 sm:$0xff]  }
 0x248   :  { %3669 = vpow2.f32 %v3336_v60  ;;  %v5160_v51 = vld [vmem:[%s6200_s4 + $0x28] ss:$16 sps:$4 sm:$0xff]   ;;  %6409 = vst [vmem:[#allocation15_spill] sm:$0xff] %v5167_v59  ;;  %v5181_v10 = vld [vmem:[%s6200_s4 + $0x6c] ss:$16 sps:$4 sm:$0xff]   ;;  %6412 = vst [vmem:[#allocation6_spill] sm:$0xff] %v5187_v48 }
 0x249   :  { %3671 = vpow2.f32 %v3337_v50  ;;  %v5174_v8 = vld [vmem:[%s6200_s4 + $0x48] ss:$16 sps:$4 sm:$0xff]   ;;  %6411 = vst [vmem:[#allocation16_spill] sm:$0xff] %v5181_v10  ;;  %v5211_v50 = vld [vmem:[%s6200_s4 + $0x80] ss:$16 sps:$4 sm:$0xff]  }
 0x24a   :  { %3673 = vtanh.f32 %v1357_v31  ;;  %v5066_v31 = vpop.permute.xlu1 %1418  ;;  %6410 = vst [vmem:[#allocation5_spill] sm:$0xff] %v5174_v8  ;;  %v5193_v60 = vld [vmem:[%s6200_s4 + $0x68] ss:$16 sps:$4 sm:$0xff]   ;;  %6416 = vst [vmem:[#allocation8_spill] sm:$0xff] %v5211_v50 }
 0x24b   :  { %6408 = vst [vmem:[#allocation4_spill] sm:$0xff] %v5066_v31  ;;  %vm1420_vm14 = vcmp.eq.s32.totalorder %v5066_v31, 1  ;;  %6413 = vst [vmem:[#allocation17_spill] sm:$0xff] %v5193_v60 }
 0x24e   :  { %v3666_v58 = vpop.eup %3665 }
 0x24f   :  { %v1382_v62 = vmul.f32 %v3666_v58, %v3664_v32  ;;  %v5199_v32 = vld [vmem:[%s6200_s4 + $0x84] ss:$16 sps:$4 sm:$0xff]   ;;  %v5205_v58 = vld [vmem:[%s6200_s4 + $0x8c] ss:$16 sps:$4 sm:$0xff]  }
 0x250   :  { %6414 = vst [vmem:[#allocation7_spill] sm:$0xff] %v5199_v32  ;;  %6415 = vst [vmem:[#allocation18_spill] sm:$0xff] %v5205_v58 }
 0x251   :  { %v3668_v30 = vpop.eup %3667  ;;  %v5008_v38 = vsel %vm1388_vm13, %v1382_v62, %v1137_v53  ;;  %v5217_v62 = vld [vmem:[%s6200_s4 + $0x88] ss:$16 sps:$4 sm:$0xff]   ;;  %v5223_v53 = vld [vmem:[%s6200_s4 + $0xa4] ss:$16 sps:$4 sm:$0xff]  }
 0x252   :  { %v3670_v11 = vpop.eup %3669  ;;  %v1394_v55 = vadd.f32 1.0, %v3668_v30  ;;  %v1437_v28 = vpack.c.bf16 %v5008_v38, %v5008_v38  ;;  %6417 = vst [vmem:[#allocation19_spill] sm:$0xff] %v5217_v62  ;;  %6418 = vst [vmem:[#allocation9_spill] sm:$0xff] %v5223_v53  ;;  %v5229_v30 = vld [vmem:[%s6200_s4 + $0xac] ss:$16 sps:$4 sm:$0xff]  }
 0x253   :  { %v1400_v47 = vadd.f32 1.0, %v3670_v11  ;;  %6419 = vst [vmem:[#allocation20_spill] sm:$0xff] %v5229_v30  ;;  %v5235_v11 = vld [vmem:[%s6200_s4 + $0xa0] ss:$16 sps:$4 sm:$0xff]  }
 0x254   :  { %3675 = vrcp.f32 %v1394_v55  ;;  %1471 = vmatmul.mubr.bf16.vlgmr.msra.gmra.mrb[40].mxu0 %v1437_v28  ;;  %1512 = vmatmul.mubr.bf16.vlgmr.msra.gmra.mrb[56].mxu1 %v1437_v28  ;;  %6420 = vst [vmem:[#allocation10_spill] sm:$0xff] %v5235_v11  ;;  %v5241_v55 = vld [vmem:[%s6200_s4 + $0xa8] ss:$16 sps:$4 sm:$0xff]   ;;  %v5247_v28 = vld [vmem:[%s6200_s4 + $0xc4] ss:$16 sps:$4 sm:$0xff]  }
 0x255   :  { %3677 = vrcp.f32 %v1400_v47  ;;  %1526 = vmatpush1.bf16.msra.mxu0 %v5015_v57  ;;  %1567 = vmatpush1.bf16.msra.mxu1 %v4488_v12  ;;  %v5038_v12 = vld [vmem:[%s6201_s5 + $0x44] ss:$16 sps:$4 sm:$0xff]   ;;  %6421 = vst [vmem:[#allocation21_spill] sm:$0xff] %v5241_v55  ;;  %6422 = vst [vmem:[#allocation11_spill] sm:$0xff] %v5247_v28  ;;  %v5253_v47 = vld [vmem:[%s6200_s4 + $0xcc] ss:$16 sps:$4 sm:$0xff]  }
 0x256   :  { %1527 = vmatprep.subr.bf16.mxu0 %v5022_v39  ;;  %1568 = vmatprep.subr.bf16.mxu1 %v4494_v13  ;;  %v3672_v13 = vpop.eup %3671  ;;  %6423 = vst [vmem:[#allocation22_spill] sm:$0xff] %v5253_v47 }
 0x257   :  { %1557 = vmatprep.mubr.bf16.mxu0 %v6336_v33  ;;  %1598 = vmatprep.mubr.bf16.mxu1 %v6336_v33  ;;  %v3674_v52 = vpop.eup %3673  ;;  %v1407_v29 = vadd.f32 1.0, %v3672_v13  ;;  %v5259_v13 = vld [vmem:[%s6200_s4 + $0xc0] ss:$16 sps:$4 sm:$0xff]  }
 0x258   :  { %6424 = vst [vmem:[#allocation12_spill] sm:$0xff] %v5259_v13 }
 0x259   :  { %1528 = vmatpush1.bf16.msra.mxu0 %v5031_v24  ;;  %1569 = vmatpush1.bf16.msra.mxu1 %v4503_v14  ;;  %3679 = vrcp.f32 %v1407_v29  ;;  %v5283_v29 = vld [vmem:[%s6200_s4 + $0xe0] ss:$16 sps:$4 sm:$0xff]  }
 0x25a   :  { %1529 = vmatprep.subr.bf16.mxu0 %v5038_v12  ;;  %1570 = vmatprep.subr.bf16.mxu1 %v4510_v16  ;;  %6428 = vst [vmem:[#allocation28_spill] sm:$0xff] %v5283_v29 }
 0x25d   :  { %1530 = vmatpush1.bf16.msra.mxu0 %v5045_v0  ;;  %1571 = vmatpush1.bf16.msra.mxu1 %v4519_v15  ;;  %v5062_v15 = vld [vmem:[%s6201_s5 + $0x60] ss:$16 sps:$4 sm:$0xff]  }
 0x25e   :  { %v3676_v14 = vpop.eup %3675  ;;  %1531 = vmatprep.subr.bf16.mxu0 %v5052_v9  ;;  %1572 = vmatprep.subr.bf16.mxu1 %v4525_v17 }
 0x25f   :  { %v3678_v16 = vpop.eup %3677  ;;  %v1411_v36 = vmul.f32 %v3676_v14, %v3674_v52  ;;  %v5265_v52 = vld [vmem:[%s6200_s4 + $0xc8] ss:$16 sps:$4 sm:$0xff]   ;;  %v5271_v14 = vld [vmem:[%s6200_s4 + $0xe4] ss:$16 sps:$4 sm:$0xff]  }
 0x260   :  { %v1410_v42 = vmul.f32 %v3678_v16, %v1170_v40  ;;  %6425 = vst [vmem:[#allocation23_spill] sm:$0xff] %v5265_v52  ;;  %6426 = vst [vmem:[#allocation13_spill] sm:$0xff] %v5271_v14  ;;  %v5277_v16 = vld [vmem:[%s6200_s4 + $0xec] ss:$16 sps:$4 sm:$0xff]  }
 0x261   :  { %1532 = vmatpush1.bf16.msra.mxu0 %v5062_v15  ;;  %1573 = vmatpush1.bf16.msra.mxu1 %v4533_v18  ;;  %v5083_v18 = vld [vmem:[%s6201_s5 + $0x80] ss:$16 sps:$4 sm:$0xff]   ;;  %6427 = vst [vmem:[#allocation24_spill] sm:$0xff] %v5277_v16 }
 0x262   :  { %v1412_v17 = vadd.f32 %v1411_v36, %v1410_v42  ;;  %1533 = vmatprep.subr.bf16.mxu0 %v5071_v5  ;;  %1574 = vmatprep.subr.bf16.mxu1 %v4539_v19  ;;  %v5090_v19 = vld [vmem:[%s6201_s5 + $0xa4] ss:$16 sps:$4 sm:$0xff]   ;;  %v5301_v42 = vld [vmem:[%s6201_s5 + $0xc] ss:$16 sps:$4 sm:$0xff]  }
 0x263   :  { %v3680_v37 = vpop.eup %3679  ;;  %v5295_v36 = vld [vmem:[%s6201_s5 + $0x4] ss:$16 sps:$4 sm:$0xff]   ;;  %6431 = vst [vmem:[#allocation43_spill] sm:$0xff] %v5301_v42 }
 0x264   :  { %3681 = vtanh.f32 %v1412_v17  ;;  %v5078_v3 = vsel %vm1420_vm14, %v1412_v17, %v1170_v40  ;;  %v5289_v40 = vld [vmem:[%s6200_s4 + $0xe8] ss:$16 sps:$4 sm:$0xff]   ;;  %6430 = vst [vmem:[#allocation30_spill] sm:$0xff] %v5295_v36 }
 0x265   :  { %1534 = vmatpush1.bf16.msra.mxu0 %v5083_v18  ;;  %1575 = vmatpush1.bf16.msra.mxu1 %v4547_v20  ;;  %v5104_v20 = vld [vmem:[%s6201_s5 + $0xc4] ss:$16 sps:$4 sm:$0xff]   ;;  %6429 = vst [vmem:[#allocation41_spill] sm:$0xff] %v5289_v40 }
 0x266   :  { %1535 = vmatprep.subr.bf16.mxu0 %v5090_v19  ;;  %1576 = vmatprep.subr.bf16.mxu1 %v4553_v21  ;;  %v5111_v21 = vld [vmem:[%s6201_s5 + $0xc0] ss:$16 sps:$4 sm:$0xff]  }
 0x269   :  { %1536 = vmatpush1.bf16.msra.mxu0 %v5097_v44  ;;  %1577 = vmatpush1.bf16.msra.mxu1 %v4561_v22 }
 0x26a   :  { %1537 = vmatprep.subr.bf16.mxu0 %v5104_v20  ;;  %1578 = vmatprep.subr.bf16.mxu1 %v4567_v23 }
 0x26d   :  { %1538 = vmatpush1.bf16.msra.mxu0 %v5111_v21  ;;  %1579 = vmatpush1.bf16.msra.mxu1 %v4575_v25  ;;  %v5132_v25 = vld [vmem:[%s6201_s5 + $0xe0] ss:$16 sps:$4 sm:$0xff]  }
 0x26e   :  { %v3682_v22 = vpop.eup %3681  ;;  %1539 = vmatprep.subr.bf16.mxu0 %v5118_v46  ;;  %1580 = vmatprep.subr.bf16.mxu1 %v4581_v26 }
 0x26f   :  { %v1414_v23 = vmul.f32 %v3682_v22, %v3680_v37  ;;  %v6432_v22 = vld [vmem:[#allocation32_spill] sm:$0xff] }
 0x271   :  { %v5127_v49 = vsel %vm1420_vm14, %v1414_v23, %v1169_v34  ;;  %1540 = vmatpush1.bf16.msra.mxu0 %v5132_v25  ;;  %1581 = vmatpush1.bf16.msra.mxu1 %v4589_v27  ;;  %v5151_v27 = vld [vmem:[%s6200_s4 + $0x2c] ss:$16 sps:$4 sm:$0xff]  }
 0x272   :  { %v1524_v26 = vpack.c.bf16 %v5127_v49, %v5127_v49  ;;  %1690 = vmatprep.subr.bf16.mxu0 %v4909_v61  ;;  %1731 = vmatprep.subr.bf16.mxu1 %v4915_v63  ;;  %v6433_v34 = vld [vmem:[#allocation45_spill] sm:$0xff] }
 0x274   :  { %1558 = vmatmul.mubr.bf16.vlgmr.msra.gmra.mrb[44].mxu0 %v1524_v26  ;;  %1599 = vmatmul.mubr.bf16.vlgmr.msra.gmra.mrb[60].mxu1 %v1524_v26 }
 0x275   :  { %1691 = vmatpush1.bf16.msra.mxu0 %v4924_v1  ;;  %1732 = vmatpush1.bf16.msra.mxu1 %v5144_v54 }
 0x276   :  { %1692 = vmatprep.subr.bf16.mxu0 %v4931_v4  ;;  %1733 = vmatprep.subr.bf16.mxu1 %v5151_v27 }
 0x277   :  { %1722 = vmatprep.mubr.bf16.mxu0 %v6336_v33  ;;  %1763 = vmatprep.mubr.bf16.mxu1 %v6336_v33 }
 0x279   :  { %1693 = vmatpush1.bf16.msra.mxu0 %v4940_v6  ;;  %1734 = vmatpush1.bf16.msra.mxu1 %v5160_v51 }
 0x27a   :  { %1694 = vmatprep.subr.bf16.mxu0 %v4947_v41  ;;  %1735 = vmatprep.subr.bf16.mxu1 %v5167_v59 }
 0x27d   :  { %1695 = vmatpush1.bf16.msra.mxu0 %v4954_v43  ;;  %1736 = vmatpush1.bf16.msra.mxu1 %v5174_v8 }
 0x27e   :  { %1696 = vmatprep.subr.bf16.mxu0 %v4961_v45  ;;  %1737 = vmatprep.subr.bf16.mxu1 %v5181_v10 }
 0x281   :  { %1697 = vmatpush1.bf16.msra.mxu0 %v5187_v48  ;;  %1738 = vmatpush1.bf16.msra.mxu1 %v5193_v60 }
 0x282   :  { %1698 = vmatprep.subr.bf16.mxu0 %v5199_v32  ;;  %1739 = vmatprep.subr.bf16.mxu1 %v5205_v58 }
 0x285   :  { %1699 = vmatpush1.bf16.msra.mxu0 %v5211_v50  ;;  %1740 = vmatpush1.bf16.msra.mxu1 %v5217_v62 }
 0x286   :  { %1700 = vmatprep.subr.bf16.mxu0 %v5223_v53  ;;  %1741 = vmatprep.subr.bf16.mxu1 %v5229_v30 }
 0x289   :  { %1701 = vmatpush1.bf16.msra.mxu0 %v5235_v11  ;;  %1742 = vmatpush1.bf16.msra.mxu1 %v5241_v55 }
 0x28a   :  { %1702 = vmatprep.subr.bf16.mxu0 %v5247_v28  ;;  %1743 = vmatprep.subr.bf16.mxu1 %v5253_v47 }
 0x28d   :  { %1703 = vmatpush1.bf16.msra.mxu0 %v5259_v13  ;;  %1744 = vmatpush1.bf16.msra.mxu1 %v5265_v52 }
 0x28e   :  { %1704 = vmatprep.subr.bf16.mxu0 %v5271_v14  ;;  %1745 = vmatprep.subr.bf16.mxu1 %v5277_v16 }
 0x291   :  { %1705 = vmatpush1.bf16.msra.mxu0 %v5283_v29  ;;  %1746 = vmatpush1.bf16.msra.mxu1 %v5289_v40  ;;  %v6435_v40 = vld [vmem:[#allocation47_spill] sm:$0xff] }
 0x292   :  { %1777 = vmatprep.subr.bf16.mxu0 %v5295_v36  ;;  %1818 = vmatprep.subr.bf16.mxu1 %v5301_v42 }
 0x327   :  { %v1472_v17 = vpop.f32.mrb[40].mxu0  ;;  %v1513_v37 = vpop.f32.mrb[56].mxu1 }
 0x328   :  { %v1520_v23 = vadd.f32 %v1472_v17, %v6432_v22  ;;  %v1522_v26 = vadd.f32 %v1513_v37, %v6433_v34  ;;  %v1474_v7 = vpop.f32.mrb[41].mxu0  ;;  %v1515_v56 = vpop.f32.mrb[57].mxu1  ;;  %v6439_v34 = vld [vmem:[#allocation60_spill] sm:$0xff] }
 0x329   :  { %v1521_v31 = vadd.f32 %v1474_v7, %v6434_v2  ;;  %v1523_v29 = vadd.f32 %v1515_v56, %v6435_v40  ;;  %v1476_v36 = vpop.f32.mrb[42].mxu0  ;;  %v1517_v16 = vpop.f32.mrb[58].mxu1 }
 0x32a   :  { %v3338_v14 = vmul.f32 -1.442695, %v1520_v23  ;;  %v1477_v52 = vpop.f32.mrb[43].mxu0  ;;  %v1518_v13 = vpop.f32.mrb[59].mxu1 }
 0x32b   :  { %v3339_v47 = vmul.f32 -1.442695, %v1521_v31  ;;  %v3340_v42 = vmul.f32 -1.442695, %v1523_v29  ;;  %v5309_v31 = vpop.permute.xlu0 %1638  ;;  %v6438_v29 = vld [vmem:[#allocation77_spill] sm:$0xff] }
 0x32c   :  { %3683 = vpow2.f32 %v3338_v14  ;;  %6436 = vst [vmem:[#allocation62_spill] sm:$0xff] %v5309_v31  ;;  %vm1640_vm15 = vcmp.eq.s32.totalorder %v5309_v31, 1 }
 0x32d   :  { %3685 = vpow2.f32 %v3339_v47 }
 0x32e   :  { %3687 = vpow2.f32 %v3340_v42 }
 0x32f   :  { %3689 = vtanh.f32 %v1522_v26 }
 0x336   :  { %v3684_v28 = vpop.eup %3683 }
 0x337   :  { %v3686_v55 = vpop.eup %3685  ;;  %v1614_v17 = vadd.f32 1.0, %v3684_v28  ;;  %v6437_v28 = vld [vmem:[#allocation58_spill] sm:$0xff] }
 0x338   :  { %v1620_v37 = vadd.f32 1.0, %v3686_v55  ;;  %v3688_v7 = vpop.eup %3687 }
 0x339   :  { %3691 = vrcp.f32 %v1614_v17  ;;  %v3690_v2 = vpop.eup %3689  ;;  %v1627_v36 = vadd.f32 1.0, %v3688_v7  ;;  %v6440_v17 = vld [vmem:[#allocation78_spill] sm:$0xff] }
 0x33a   :  { %3693 = vrcp.f32 %v1620_v37 }
 0x33b   :  { %3695 = vrcp.f32 %v1627_v36 }
 0x343   :  { %v3692_v56 = vpop.eup %3691 }
 0x344   :  { %v3694_v40 = vpop.eup %3693  ;;  %v1631_v16 = vmul.f32 %v3692_v56, %v3690_v2 }
 0x345   :  { %v1630_v13 = vmul.f32 %v3694_v40, %v4999_v35 }
 0x347   :  { %v1632_v47 = vadd.f32 %v1631_v16, %v1630_v13  ;;  %v1559_v52 = vpop.f32.mrb[44].mxu0  ;;  %v1600_v14 = vpop.f32.mrb[60].mxu1 }
 0x348   :  { %v1607_v55 = vadd.f32 %v1559_v52, %v6437_v28  ;;  %v1609_v42 = vadd.f32 %v1600_v14, %v6438_v29  ;;  %v1561_v22 = vpop.f32.mrb[45].mxu0  ;;  %v1602_v23 = vpop.f32.mrb[61].mxu1 }
 0x349   :  { %3697 = vtanh.f32 %v1632_v47  ;;  %v1608_v26 = vadd.f32 %v1561_v22, %v6439_v34  ;;  %v1610_v37 = vadd.f32 %v1602_v23, %v6440_v17  ;;  %v1563_v7 = vpop.f32.mrb[46].mxu0  ;;  %v1604_v2 = vpop.f32.mrb[62].mxu1  ;;  %v5319_v56 = vsel %vm1640_vm15, %v1632_v47, %v4999_v35 }
 0x34a   :  { %v3341_v40 = vmul.f32 -1.442695, %v1607_v55  ;;  %v1564_v16 = vpop.f32.mrb[47].mxu0  ;;  %v1605_v36 = vpop.f32.mrb[63].mxu1  ;;  %v5332_v55 = vld [vmem:[%s6201_s5 + $0x8] ss:$16 sps:$4 sm:$0xff]  }
 0x34b   :  { %v3342_v13 = vmul.f32 -1.442695, %v1608_v26  ;;  %v3696_v52 = vpop.eup %3695  ;;  %v3343_v28 = vmul.f32 -1.442695, %v1610_v37  ;;  %v5355_v26 = vld [vmem:[%s6201_s5 + $0x4c] ss:$16 sps:$4 sm:$0xff]  }
 0x34c   :  { %3699 = vpow2.f32 %v3341_v40  ;;  %v5362_v2 = vld [vmem:[%s6201_s5 + $0x48] ss:$16 sps:$4 sm:$0xff]   ;;  %v5369_v16 = vld [vmem:[%s6201_s5 + $0x6c] ss:$16 sps:$4 sm:$0xff]  }
 0x34d   :  { %3701 = vpow2.f32 %v3342_v13 }
 0x34e   :  { %3703 = vpow2.f32 %v3343_v28  ;;  %v5377_v28 = vld [vmem:[%s6201_s5 + $0x68] ss:$16 sps:$4 sm:$0xff]  }
 0x34f   :  { %3705 = vtanh.f32 %v1609_v42  ;;  %v5348_v42 = vld [vmem:[%s6201_s5 + $0x28] ss:$16 sps:$4 sm:$0xff]  }
 0x353   :  { %v3698_v14 = vpop.eup %3697 }
 0x354   :  { %v1634_v29 = vmul.f32 %v3698_v14, %v3696_v52 }
 0x356   :  { %v3700_v22 = vpop.eup %3699  ;;  %v5324_v23 = vsel %vm1640_vm15, %v1634_v29, %v5008_v38  ;;  %v5339_v38 = vld [vmem:[%s6201_s5 + $0x2c] ss:$16 sps:$4 sm:$0xff]   ;;  %v5380_v29 = vpop.permute.xlu1 %1670 }
 0x357   :  { %v3702_v34 = vpop.eup %3701  ;;  %v1646_v17 = vadd.f32 1.0, %v3700_v22  ;;  %v1689_v35 = vpack.c.bf16 %v5324_v23, %v5324_v23  ;;  %6441 = vst [vmem:[#allocation79_spill] sm:$0xff] %v5380_v29  ;;  %vm1672_vm0 = vcmp.eq.s32.totalorder %v5380_v29, 1  ;;  %v6447_v29 = vld [vmem:[#allocation13_spill] sm:$0xff] }
 0x358   :  { %v1652_v47 = vadd.f32 1.0, %v3702_v34  ;;  %v3704_v37 = vpop.eup %3703  ;;  %v5386_v34 = vld [vmem:[%s6201_s5 + $0x8c] ss:$16 sps:$4 sm:$0xff]  }
 0x359   :  { %3707 = vrcp.f32 %v1646_v17  ;;  %1723 = vmatmul.mubr.bf16.vlgmr.msra.gmra.mrb[48].mxu0 %v1689_v35  ;;  %1764 = vmatmul.mubr.bf16.vlgmr.msra.gmra.mrb[64].mxu1 %v1689_v35  ;;  %v3706_v7 = vpop.eup %3705  ;;  %v1659_v52 = vadd.f32 1.0, %v3704_v37  ;;  %v5399_v35 = vld [vmem:[%s6201_s5 + $0x88] ss:$16 sps:$4 sm:$0xff]   ;;  %v5420_v37 = vld [vmem:[%s6201_s5 + $0xcc] ss:$16 sps:$4 sm:$0xff]  }
 0x35a   :  { %3709 = vrcp.f32 %v1652_v47  ;;  %1778 = vmatpush1.bf16.msra.mxu0 %v5015_v57  ;;  %1819 = vmatpush1.bf16.msra.mxu1 %v5332_v55  ;;  %v5406_v47 = vld [vmem:[%s6201_s5 + $0xac] ss:$16 sps:$4 sm:$0xff]  }
 0x35b   :  { %1779 = vmatprep.subr.bf16.mxu0 %v5022_v39  ;;  %1820 = vmatprep.subr.bf16.mxu1 %v5339_v38  ;;  %3711 = vrcp.f32 %v1659_v52 }
 0x35c   :  { %1809 = vmatprep.mubr.bf16.mxu0 %v6336_v33  ;;  %1850 = vmatprep.mubr.bf16.mxu1 %v6336_v33 }
 0x35e   :  { %1780 = vmatpush1.bf16.msra.mxu0 %v5031_v24  ;;  %1821 = vmatpush1.bf16.msra.mxu1 %v5348_v42 }
 0x35f   :  { %1781 = vmatprep.subr.bf16.mxu0 %v5038_v12  ;;  %1822 = vmatprep.subr.bf16.mxu1 %v5355_v26 }
 0x362   :  { %1782 = vmatpush1.bf16.msra.mxu0 %v5045_v0  ;;  %1823 = vmatpush1.bf16.msra.mxu1 %v5362_v2 }
 0x363   :  { %v3708_v40 = vpop.eup %3707  ;;  %1783 = vmatprep.subr.bf16.mxu0 %v5052_v9  ;;  %1824 = vmatprep.subr.bf16.mxu1 %v5369_v16 }
 0x364   :  { %v3710_v36 = vpop.eup %3709  ;;  %v1663_v13 = vmul.f32 %v3708_v40, %v3706_v7  ;;  %v5427_v40 = vld [vmem:[%s6201_s5 + $0xc8] ss:$16 sps:$4 sm:$0xff]  }
 0x365   :  { %v1662_v14 = vmul.f32 %v3710_v36, %v5078_v3  ;;  %v3712_v7 = vpop.eup %3711 }
 0x366   :  { %1784 = vmatpush1.bf16.msra.mxu0 %v5062_v15  ;;  %1825 = vmatpush1.bf16.msra.mxu1 %v5377_v28 }
 0x367   :  { %v1664_v22 = vadd.f32 %v1663_v13, %v1662_v14  ;;  %1785 = vmatprep.subr.bf16.mxu0 %v5071_v5  ;;  %1826 = vmatprep.subr.bf16.mxu1 %v5386_v34  ;;  %v5434_v13 = vld [vmem:[%s6201_s5 + $0xec] ss:$16 sps:$4 sm:$0xff]   ;;  %v5441_v14 = vld [vmem:[%s6201_s5 + $0xe8] ss:$16 sps:$4 sm:$0xff]  }
 0x369   :  { %3713 = vtanh.f32 %v1664_v22  ;;  %v5393_v17 = vsel %vm1672_vm0, %v1664_v22, %v5078_v3  ;;  %v5413_v3 = vld [vmem:[%s6201_s5 + $0xa8] ss:$16 sps:$4 sm:$0xff]  }
 0x36a   :  { %1786 = vmatpush1.bf16.msra.mxu0 %v5083_v18  ;;  %1827 = vmatpush1.bf16.msra.mxu1 %v5399_v35 }
 0x36b   :  { %1787 = vmatprep.subr.bf16.mxu0 %v5090_v19  ;;  %1828 = vmatprep.subr.bf16.mxu1 %v5406_v47 }
 0x36e   :  { %1788 = vmatpush1.bf16.msra.mxu0 %v5097_v44  ;;  %1829 = vmatpush1.bf16.msra.mxu1 %v5413_v3 }
 0x36f   :  { %1789 = vmatprep.subr.bf16.mxu0 %v5104_v20  ;;  %1830 = vmatprep.subr.bf16.mxu1 %v5420_v37 }
 0x372   :  { %1790 = vmatpush1.bf16.msra.mxu0 %v5111_v21  ;;  %1831 = vmatpush1.bf16.msra.mxu1 %v5427_v40 }
 0x373   :  { %v3714_v36 = vpop.eup %3713  ;;  %1791 = vmatprep.subr.bf16.mxu0 %v5118_v46  ;;  %1832 = vmatprep.subr.bf16.mxu1 %v5434_v13 }
 0x374   :  { %v1666_v52 = vmul.f32 %v3714_v36, %v3712_v7  ;;  %v6444_v7 = vld [vmem:[#allocation22_spill] sm:$0xff]  ;;  %v6445_v36 = vld [vmem:[#allocation12_spill] sm:$0xff] }
 0x376   :  { %1792 = vmatpush1.bf16.msra.mxu0 %v5132_v25  ;;  %1833 = vmatpush1.bf16.msra.mxu1 %v5441_v14  ;;  %v5447_v22 = vsel %vm1672_vm0, %v1666_v52, %v5127_v49  ;;  %v6442_v49 = vld [vmem:[#allocation21_spill] sm:$0xff]  ;;  %v6446_v52 = vld [vmem:[#allocation23_spill] sm:$0xff] }
 0x377   :  { %v1776_v31 = vpack.c.bf16 %v5447_v22, %v5447_v22  ;;  %1936 = vmatprep.subr.bf16.mxu0 %v4909_v61  ;;  %1977 = vmatprep.subr.bf16.mxu1 %v4915_v63 }
 0x379   :  { %1810 = vmatmul.mubr.bf16.vlgmr.msra.gmra.mrb[52].mxu0 %v1776_v31  ;;  %1851 = vmatmul.mubr.bf16.vlgmr.msra.gmra.mrb[68].mxu1 %v1776_v31  ;;  %v6443_v31 = vld [vmem:[#allocation11_spill] sm:$0xff] }
 0x37a   :  { %1937 = vmatpush1.bf16.msra.mxu0 %v4924_v1  ;;  %1978 = vmatpush1.bf16.msra.mxu1 %v5144_v54 }
 0x37b   :  { %1938 = vmatprep.subr.bf16.mxu0 %v4931_v4  ;;  %1979 = vmatprep.subr.bf16.mxu1 %v5151_v27 }
 0x37c   :  { %1968 = vmatprep.mubr.bf16.mxu0 %v6336_v33  ;;  %2009 = vmatprep.mubr.bf16.mxu1 %v6336_v33 }
 0x37e   :  { %1939 = vmatpush1.bf16.msra.mxu0 %v4940_v6  ;;  %1980 = vmatpush1.bf16.msra.mxu1 %v5160_v51 }
 0x37f   :  { %1940 = vmatprep.subr.bf16.mxu0 %v4947_v41  ;;  %1981 = vmatprep.subr.bf16.mxu1 %v5167_v59 }
 0x382   :  { %1941 = vmatpush1.bf16.msra.mxu0 %v4954_v43  ;;  %1982 = vmatpush1.bf16.msra.mxu1 %v5174_v8 }
 0x383   :  { %1942 = vmatprep.subr.bf16.mxu0 %v4961_v45  ;;  %1983 = vmatprep.subr.bf16.mxu1 %v5181_v10  ;;  %v6456_v10 = vld [vmem:[#allocation51_spill] sm:$0xff] }
 0x386   :  { %1943 = vmatpush1.bf16.msra.mxu0 %v5187_v48  ;;  %1984 = vmatpush1.bf16.msra.mxu1 %v5193_v60  ;;  %v6455_v48 = vld [vmem:[#allocation38_spill] sm:$0xff] }
 0x387   :  { %1944 = vmatprep.subr.bf16.mxu0 %v5199_v32  ;;  %1985 = vmatprep.subr.bf16.mxu1 %v5205_v58  ;;  %v6453_v58 = vld [vmem:[#allocation36_spill] sm:$0xff]  ;;  %v6454_v32 = vld [vmem:[#allocation49_spill] sm:$0xff] }
 0x38a   :  { %1945 = vmatpush1.bf16.msra.mxu0 %v5211_v50  ;;  %1986 = vmatpush1.bf16.msra.mxu1 %v5217_v62  ;;  %v6448_v50 = vld [vmem:[#allocation24_spill] sm:$0xff] }
 0x38b   :  { %1946 = vmatprep.subr.bf16.mxu0 %v5223_v53  ;;  %1987 = vmatprep.subr.bf16.mxu1 %v5229_v30  ;;  %v6449_v62 = vld [vmem:[#allocation28_spill] sm:$0xff]  ;;  %v6450_v53 = vld [vmem:[#allocation41_spill] sm:$0xff]  ;;  %v6451_v30 = vld [vmem:[#allocation30_spill] sm:$0xff] }
 0x38e   :  { %1947 = vmatpush1.bf16.msra.mxu0 %v5235_v11  ;;  %1988 = vmatpush1.bf16.msra.mxu1 %v6442_v49  ;;  %v6452_v11 = vld [vmem:[#allocation43_spill] sm:$0xff] }
 0x38f   :  { %1948 = vmatprep.subr.bf16.mxu0 %v6443_v31  ;;  %1989 = vmatprep.subr.bf16.mxu1 %v6444_v7 }
 0x392   :  { %1949 = vmatpush1.bf16.msra.mxu0 %v6445_v36  ;;  %1990 = vmatpush1.bf16.msra.mxu1 %v6446_v52 }
 0x393   :  { %1950 = vmatprep.subr.bf16.mxu0 %v6447_v29  ;;  %1991 = vmatprep.subr.bf16.mxu1 %v6448_v50 }
 0x396   :  { %1951 = vmatpush1.bf16.msra.mxu0 %v6449_v62  ;;  %1992 = vmatpush1.bf16.msra.mxu1 %v6450_v53 }
 0x397   :  { %2023 = vmatprep.subr.bf16.mxu0 %v6451_v30  ;;  %2064 = vmatprep.subr.bf16.mxu1 %v6452_v11 }
 0x42c   :  { %v1724_v49 = vpop.f32.mrb[48].mxu0  ;;  %v1765_v31 = vpop.f32.mrb[64].mxu1 }
 0x42d   :  { %v1772_v7 = vadd.f32 %v1724_v49, %v6453_v58  ;;  %v1774_v36 = vadd.f32 %v1765_v31, %v6454_v32  ;;  %v1726_v60 = vpop.f32.mrb[49].mxu0  ;;  %v1767_v52 = vpop.f32.mrb[65].mxu1 }
 0x42e   :  { %v1773_v29 = vadd.f32 %v1726_v60, %v6455_v48  ;;  %v1775_v50 = vadd.f32 %v1767_v52, %v6456_v10  ;;  %v1728_v45 = vpop.f32.mrb[50].mxu0  ;;  %v1769_v62 = vpop.f32.mrb[66].mxu1 }
 0x42f   :  { %v3344_v8 = vmul.f32 -1.442695, %v1772_v7  ;;  %v1729_v53 = vpop.f32.mrb[51].mxu0  ;;  %v1770_v43 = vpop.f32.mrb[67].mxu1 }
 0x430   :  { %v3345_v30 = vmul.f32 -1.442695, %v1773_v29  ;;  %v3346_v11 = vmul.f32 -1.442695, %v1775_v50  ;;  %v5491_v53 = vpop.permute.xlu0 %1890 }
 0x431   :  { %3715 = vpow2.f32 %v3344_v8  ;;  %vm1892_vm1 = vcmp.eq.s32.totalorder %v5491_v53, 1  ;;  %v6495_v53 = vld [vmem:[#allocation6_spill] sm:$0xff] }
 0x432   :  { %3717 = vpow2.f32 %v3345_v30 }
 0x433   :  { %3719 = vpow2.f32 %v3346_v11  ;;  %v6458_v11 = vld [vmem:[#allocation75_spill] sm:$0xff] }
 0x434   :  { %3721 = vtanh.f32 %v1774_v36  ;;  %v6459_v36 = vld [vmem:[#allocation56_spill] sm:$0xff] }
 0x43b   :  { %v3716_v59 = vpop.eup %3715 }
 0x43c   :  { %v3718_v41 = vpop.eup %3717  ;;  %v1866_v58 = vadd.f32 1.0, %v3716_v59  ;;  %v6457_v59 = vld [vmem:[#allocation54_spill] sm:$0xff] }
 0x43d   :  { %v1872_v32 = vadd.f32 1.0, %v3718_v41  ;;  %v3720_v48 = vpop.eup %3719 }
 0x43e   :  { %3723 = vrcp.f32 %v1866_v58  ;;  %v3722_v60 = vpop.eup %3721  ;;  %v1879_v49 = vadd.f32 1.0, %v3720_v48  ;;  %v6460_v58 = vld [vmem:[#allocation76_spill] sm:$0xff] }
 0x43f   :  { %3725 = vrcp.f32 %v1872_v32 }
 0x440   :  { %3727 = vrcp.f32 %v1879_v49 }
 0x448   :  { %v3724_v10 = vpop.eup %3723 }
 0x449   :  { %v3726_v45 = vpop.eup %3725  ;;  %v1883_v62 = vmul.f32 %v3724_v10, %v3722_v60 }
 0x44a   :  { %v1882_v43 = vmul.f32 %v3726_v45, %v5319_v56 }
 0x44c   :  { %v1884_v8 = vadd.f32 %v1883_v62, %v1882_v43  ;;  %v1811_v50 = vpop.f32.mrb[52].mxu0  ;;  %v1852_v30 = vpop.f32.mrb[68].mxu1 }
 0x44d   :  { %v1859_v41 = vadd.f32 %v1811_v50, %v6457_v59  ;;  %v1861_v29 = vadd.f32 %v1852_v30, %v6458_v11  ;;  %v1813_v31 = vpop.f32.mrb[53].mxu0  ;;  %v1854_v7 = vpop.f32.mrb[69].mxu1 }
 0x44e   :  { %3729 = vtanh.f32 %v1884_v8  ;;  %v1860_v52 = vadd.f32 %v1813_v31, %v6459_v36  ;;  %v1862_v32 = vadd.f32 %v1854_v7, %v6460_v58  ;;  %v1815_v48 = vpop.f32.mrb[54].mxu0  ;;  %v1856_v60 = vpop.f32.mrb[70].mxu1  ;;  %v5502_v10 = vsel %vm1892_vm1, %v1884_v8, %v5319_v56 }
 0x44f   :  { %v3347_v45 = vmul.f32 -1.442695, %v1859_v41  ;;  %v1816_v62 = vpop.f32.mrb[55].mxu0  ;;  %v1857_v49 = vpop.f32.mrb[71].mxu1 }
 0x450   :  { %v3348_v43 = vmul.f32 -1.442695, %v1860_v52  ;;  %v3728_v50 = vpop.eup %3727  ;;  %v3349_v59 = vmul.f32 -1.442695, %v1862_v32  ;;  %v5525_v60 = vpop.permute.xlu1 %1922 }
 0x451   :  { %3731 = vpow2.f32 %v3347_v45  ;;  %vm1924_vm2 = vcmp.eq.s32.totalorder %v5525_v60, 1 }
 0x452   :  { %3733 = vpow2.f32 %v3348_v43 }
 0x453   :  { %3735 = vpow2.f32 %v3349_v59 }
 0x454   :  { %3737 = vtanh.f32 %v1861_v29 }
 0x458   :  { %v3730_v30 = vpop.eup %3729 }
 0x459   :  { %v1886_v11 = vmul.f32 %v3730_v30, %v3728_v50 }
 0x45b   :  { %v3732_v31 = vpop.eup %3731  ;;  %v5507_v7 = vsel %vm1892_vm1, %v1886_v11, %v5324_v23  ;;  %v6465_v11 = vld [vmem:[#allocation85_spill] sm:$0xff] }
 0x45c   :  { %v3734_v36 = vpop.eup %3733  ;;  %v1898_v58 = vadd.f32 1.0, %v3732_v31  ;;  %v1935_v56 = vpack.c.bf16 %v5507_v7, %v5507_v7  ;;  %v6467_v31 = vld [vmem:[#allocation6_spill] sm:$0xff] }
 0x45d   :  { %v1904_v8 = vadd.f32 1.0, %v3734_v36  ;;  %v3736_v23 = vpop.eup %3735  ;;  %v6468_v36 = vld [vmem:[#allocation17_spill] sm:$0xff] }
 0x45e   :  { %3739 = vrcp.f32 %v1898_v58  ;;  %1969 = vmatmul.mubr.bf16.vlgmr.msra.gmra.mrb[56].mxu0 %v1935_v56  ;;  %2010 = vmatmul.mubr.bf16.vlgmr.msra.gmra.mrb[72].mxu1 %v1935_v56  ;;  %v3738_v41 = vpop.eup %3737  ;;  %v1911_v48 = vadd.f32 1.0, %v3736_v23  ;;  %v6469_v58 = vld [vmem:[#allocation7_spill] sm:$0xff]  ;;  %v6471_v56 = vld [vmem:[#allocation8_spill] sm:$0xff]  ;;  %v6473_v23 = vld [vmem:[#allocation9_spill] sm:$0xff] }
 0x45f   :  { %3741 = vrcp.f32 %v1904_v8  ;;  %2024 = vmatpush1.bf16.msra.mxu0 %v5015_v57  ;;  %2065 = vmatpush1.bf16.msra.mxu1 %v5332_v55  ;;  %v6472_v8 = vld [vmem:[#allocation19_spill] sm:$0xff] }
 0x460   :  { %2025 = vmatprep.subr.bf16.mxu0 %v5022_v39  ;;  %2066 = vmatprep.subr.bf16.mxu1 %v5339_v38  ;;  %3743 = vrcp.f32 %v1911_v48  ;;  %v6478_v48 = vld [vmem:[#allocation22_spill] sm:$0xff] }
 0x461   :  { %2055 = vmatprep.mubr.bf16.mxu0 %v6336_v33  ;;  %2096 = vmatprep.mubr.bf16.mxu1 %v6336_v33 }
 0x463   :  { %2026 = vmatpush1.bf16.msra.mxu0 %v5031_v24  ;;  %2067 = vmatpush1.bf16.msra.mxu1 %v5348_v42 }
 0x464   :  { %2027 = vmatprep.subr.bf16.mxu0 %v5038_v12  ;;  %2068 = vmatprep.subr.bf16.mxu1 %v5355_v26 }
 0x467   :  { %2028 = vmatpush1.bf16.msra.mxu0 %v5045_v0  ;;  %2069 = vmatpush1.bf16.msra.mxu1 %v5362_v2 }
 0x468   :  { %v3740_v29 = vpop.eup %3739  ;;  %2029 = vmatprep.subr.bf16.mxu0 %v5052_v9  ;;  %2070 = vmatprep.subr.bf16.mxu1 %v5369_v16 }
 0x469   :  { %v3742_v52 = vpop.eup %3741  ;;  %v1915_v32 = vmul.f32 %v3740_v29, %v3738_v41  ;;  %v6474_v41 = vld [vmem:[#allocation20_spill] sm:$0xff]  ;;  %v6475_v29 = vld [vmem:[#allocation10_spill] sm:$0xff] }
 0x46a   :  { %v1914_v45 = vmul.f32 %v3742_v52, %v5393_v17  ;;  %v3744_v43 = vpop.eup %3743  ;;  %v6476_v52 = vld [vmem:[#allocation21_spill] sm:$0xff] }
 0x46b   :  { %2030 = vmatpush1.bf16.msra.mxu0 %v5062_v15  ;;  %2071 = vmatpush1.bf16.msra.mxu1 %v5377_v28 }
 0x46c   :  { %v1916_v62 = vadd.f32 %v1915_v32, %v1914_v45  ;;  %2031 = vmatprep.subr.bf16.mxu0 %v5071_v5  ;;  %2072 = vmatprep.subr.bf16.mxu1 %v5386_v34  ;;  %v6477_v32 = vld [vmem:[#allocation11_spill] sm:$0xff]  ;;  %v6479_v45 = vld [vmem:[#allocation12_spill] sm:$0xff] }
 0x46e   :  { %3745 = vtanh.f32 %v1916_v62  ;;  %v5536_v49 = vsel %vm1924_vm2, %v1916_v62, %v5393_v17  ;;  %v6480_v62 = vld [vmem:[#allocation23_spill] sm:$0xff] }
 0x46f   :  { %2032 = vmatpush1.bf16.msra.mxu0 %v5083_v18  ;;  %2073 = vmatpush1.bf16.msra.mxu1 %v5399_v35 }
 0x470   :  { %2033 = vmatprep.subr.bf16.mxu0 %v5090_v19  ;;  %2074 = vmatprep.subr.bf16.mxu1 %v5406_v47 }
 0x473   :  { %2034 = vmatpush1.bf16.msra.mxu0 %v5097_v44  ;;  %2075 = vmatpush1.bf16.msra.mxu1 %v5413_v3 }
 0x474   :  { %2035 = vmatprep.subr.bf16.mxu0 %v5104_v20  ;;  %2076 = vmatprep.subr.bf16.mxu1 %v5420_v37 }
 0x477   :  { %2036 = vmatpush1.bf16.msra.mxu0 %v5111_v21  ;;  %2077 = vmatpush1.bf16.msra.mxu1 %v5427_v40 }
 0x478   :  { %v3746_v17 = vpop.eup %3745  ;;  %2037 = vmatprep.subr.bf16.mxu0 %v5118_v46  ;;  %2078 = vmatprep.subr.bf16.mxu1 %v5434_v13 }
 0x479   :  { %v1918_v50 = vmul.f32 %v3746_v17, %v3744_v43  ;;  %v6481_v43 = vld [vmem:[#allocation13_spill] sm:$0xff]  ;;  %v6482_v17 = vld [vmem:[#allocation24_spill] sm:$0xff] }
 0x47b   :  { %2038 = vmatpush1.bf16.msra.mxu0 %v5132_v25  ;;  %2079 = vmatpush1.bf16.msra.mxu1 %v5441_v14  ;;  %v5555_v30 = vsel %vm1924_vm2, %v1918_v50, %v5447_v22  ;;  %v6463_v22 = vld [vmem:[#allocation84_spill] sm:$0xff] }
 0x47c   :  { %v2022_v59 = vpack.c.bf16 %v5555_v30, %v5555_v30  ;;  %2170 = vmatprep.subr.bf16.mxu0 %v4909_v61  ;;  %2211 = vmatprep.subr.bf16.mxu1 %v4915_v63  ;;  %v6461_v61 = vld [vmem:[#allocation83_spill] sm:$0xff]  ;;  %v6483_v50 = vld [vmem:[#allocation28_spill] sm:$0xff] }
 0x47d   :  { %v6462_v63 = vld [vmem:[#allocation15_spill] sm:$0xff] }
 0x47e   :  { %2056 = vmatmul.mubr.bf16.vlgmr.msra.gmra.mrb[60].mxu0 %v2022_v59  ;;  %2097 = vmatmul.mubr.bf16.vlgmr.msra.gmra.mrb[76].mxu1 %v2022_v59  ;;  %v6484_v59 = vld [vmem:[#allocation41_spill] sm:$0xff] }
 0x47f   :  { %2171 = vmatpush1.bf16.msra.mxu0 %v4924_v1  ;;  %2212 = vmatpush1.bf16.msra.mxu1 %v5144_v54  ;;  %v6464_v1 = vld [vmem:[#allocation5_spill] sm:$0xff] }
 0x480   :  { %2172 = vmatprep.subr.bf16.mxu0 %v4931_v4  ;;  %2213 = vmatprep.subr.bf16.mxu1 %v5151_v27  ;;  %v6466_v4 = vld [vmem:[#allocation16_spill] sm:$0xff] }
 0x481   :  { %2202 = vmatprep.mubr.bf16.mxu0 %v6336_v33  ;;  %2243 = vmatprep.mubr.bf16.mxu1 %v6336_v33 }
 0x483   :  { %2173 = vmatpush1.bf16.msra.mxu0 %v4940_v6  ;;  %2214 = vmatpush1.bf16.msra.mxu1 %v5160_v51  ;;  %v6470_v6 = vld [vmem:[#allocation18_spill] sm:$0xff] }
 0x484   :  { %2174 = vmatprep.subr.bf16.mxu0 %v6461_v61  ;;  %2215 = vmatprep.subr.bf16.mxu1 %v6462_v63  ;;  %v6485_v61 = vld [vmem:[#allocation30_spill] sm:$0xff] }
 0x487   :  { %2175 = vmatpush1.bf16.msra.mxu0 %v6463_v22  ;;  %2216 = vmatpush1.bf16.msra.mxu1 %v6464_v1  ;;  %v6486_v22 = vld [vmem:[#allocation43_spill] sm:$0xff] }
 0x488   :  { %2176 = vmatprep.subr.bf16.mxu0 %v6465_v11  ;;  %2217 = vmatprep.subr.bf16.mxu1 %v6466_v4 }
 0x48b   :  { %2177 = vmatpush1.bf16.msra.mxu0 %v6467_v31  ;;  %2218 = vmatpush1.bf16.msra.mxu1 %v6468_v36 }
 0x48c   :  { %2178 = vmatprep.subr.bf16.mxu0 %v6469_v58  ;;  %2219 = vmatprep.subr.bf16.mxu1 %v6470_v6 }
 0x48f   :  { %2179 = vmatpush1.bf16.msra.mxu0 %v6471_v56  ;;  %2220 = vmatpush1.bf16.msra.mxu1 %v6472_v8  ;;  %v6490_v8 = vld [vmem:[#allocation55_spill] sm:$0xff] }
 0x490   :  { %2180 = vmatprep.subr.bf16.mxu0 %v6473_v23  ;;  %2221 = vmatprep.subr.bf16.mxu1 %v6474_v41  ;;  %v6489_v23 = vld [vmem:[#allocation26_spill] sm:$0xff] }
 0x493   :  { %2181 = vmatpush1.bf16.msra.mxu0 %v6475_v29  ;;  %2222 = vmatpush1.bf16.msra.mxu1 %v6476_v52  ;;  %v6487_v52 = vld [vmem:[#allocation25_spill] sm:$0xff] }
 0x494   :  { %2182 = vmatprep.subr.bf16.mxu0 %v6477_v32  ;;  %2223 = vmatprep.subr.bf16.mxu1 %v6478_v48  ;;  %v6488_v29 = vld [vmem:[#allocation53_spill] sm:$0xff] }
 0x497   :  { %2183 = vmatpush1.bf16.msra.mxu0 %v6479_v45  ;;  %2224 = vmatpush1.bf16.msra.mxu1 %v6480_v62 }
 0x498   :  { %2184 = vmatprep.subr.bf16.mxu0 %v6481_v43  ;;  %2225 = vmatprep.subr.bf16.mxu1 %v6482_v17 }
 0x49b   :  { %2185 = vmatpush1.bf16.msra.mxu0 %v6483_v50  ;;  %2226 = vmatpush1.bf16.msra.mxu1 %v6484_v59 }
 0x49c   :  { %2257 = vmatprep.subr.bf16.mxu0 %v6485_v61  ;;  %2298 = vmatprep.subr.bf16.mxu1 %v6486_v22 }
 0x531   :  { %v1970_v11 = vpop.f32.mrb[56].mxu0  ;;  %v2011_v32 = vpop.f32.mrb[72].mxu1 }
 0x532   :  { %v2018_v48 = vadd.f32 %v1970_v11, %v6487_v52  ;;  %v2020_v45 = vadd.f32 %v2011_v32, %v6488_v29  ;;  %v1972_v41 = vpop.f32.mrb[57].mxu0  ;;  %v2013_v62 = vpop.f32.mrb[73].mxu1  ;;  %v6494_v11 = vld [vmem:[#allocation74_spill] sm:$0xff] }
 0x533   :  { %v2019_v43 = vadd.f32 %v1972_v41, %v6489_v23  ;;  %v2021_v17 = vadd.f32 %v2013_v62, %v6490_v8  ;;  %v1974_v56 = vpop.f32.mrb[58].mxu0  ;;  %v2015_v50 = vpop.f32.mrb[74].mxu1 }
 0x534   :  { %v3350_v6 = vmul.f32 -1.442695, %v2018_v48  ;;  %v1975_v59 = vpop.f32.mrb[59].mxu0  ;;  %v2016_v58 = vpop.f32.mrb[75].mxu1 }
 0x535   :  { %v3351_v61 = vmul.f32 -1.442695, %v2019_v43  ;;  %v3352_v22 = vmul.f32 -1.442695, %v2021_v17  ;;  %v6491_v17 = vld [vmem:[#allocation50_spill] sm:$0xff] }
 0x536   :  { %3747 = vpow2.f32 %v3350_v6 }
 0x537   :  { %3749 = vpow2.f32 %v3351_v61  ;;  %v6493_v61 = vld [vmem:[#allocation52_spill] sm:$0xff] }
 0x538   :  { %3751 = vpow2.f32 %v3352_v22 }
 0x539   :  { %3753 = vtanh.f32 %v2020_v45 }
 0x540   :  { %v3748_v36 = vpop.eup %3747 }
 0x541   :  { %v3750_v31 = vpop.eup %3749  ;;  %v2112_v52 = vadd.f32 1.0, %v3748_v36  ;;  %v6492_v36 = vld [vmem:[#allocation73_spill] sm:$0xff] }
 0x542   :  { %v2118_v29 = vadd.f32 1.0, %v3750_v31  ;;  %v3752_v23 = vpop.eup %3751 }
 0x543   :  { %3755 = vrcp.f32 %v2112_v52  ;;  %v3754_v41 = vpop.eup %3753  ;;  %v2125_v48 = vadd.f32 1.0, %v3752_v23 }
 0x544   :  { %3757 = vrcp.f32 %v2118_v29 }
 0x545   :  { %3759 = vrcp.f32 %v2125_v48 }
 0x54d   :  { %v3756_v8 = vpop.eup %3755 }
 0x54e   :  { %v3758_v56 = vpop.eup %3757  ;;  %v2129_v32 = vmul.f32 %v3756_v8, %v3754_v41 }
 0x54f   :  { %v2128_v58 = vmul.f32 %v3758_v56, %v5502_v10 }
 0x551   :  { %v2130_v62 = vadd.f32 %v2129_v32, %v2128_v58  ;;  %v2057_v6 = vpop.f32.mrb[60].mxu0  ;;  %v2098_v43 = vpop.f32.mrb[76].mxu1 }
 0x552   :  { %v2105_v50 = vadd.f32 %v2057_v6, %v6491_v17  ;;  %v2107_v59 = vadd.f32 %v2098_v43, %v6492_v36  ;;  %v2059_v45 = vpop.f32.mrb[61].mxu0  ;;  %v2100_v31 = vpop.f32.mrb[77].mxu1 }
 0x553   :  { %3761 = vtanh.f32 %v2130_v62  ;;  %v2106_v22 = vadd.f32 %v2059_v45, %v6493_v61  ;;  %v2108_v52 = vadd.f32 %v2100_v31, %v6494_v11  ;;  %v2061_v29 = vpop.f32.mrb[62].mxu0  ;;  %v2102_v41 = vpop.f32.mrb[78].mxu1  ;;  %v5607_v23 = vsel %vm1924_vm2, %v2130_v62, %v5502_v10  ;;  %v6501_v11 = vld [vmem:[#allocation9_spill] sm:$0xff] }
 0x554   :  { %v3353_v8 = vmul.f32 -1.442695, %v2105_v50  ;;  %v2062_v56 = vpop.f32.mrb[63].mxu0  ;;  %v2103_v32 = vpop.f32.mrb[79].mxu1  ;;  %v6503_v29 = vld [vmem:[#allocation10_spill] sm:$0xff]  ;;  %v6504_v41 = vld [vmem:[#allocation21_spill] sm:$0xff] }
 0x555   :  { %v3354_v48 = vmul.f32 -1.442695, %v2106_v22  ;;  %v3760_v58 = vpop.eup %3759  ;;  %v3355_v43 = vmul.f32 -1.442695, %v2108_v52  ;;  %v6499_v22 = vld [vmem:[#allocation8_spill] sm:$0xff]  ;;  %v6508_v32 = vld [vmem:[#allocation23_spill] sm:$0xff] }
 0x556   :  { %3763 = vpow2.f32 %v3353_v8  ;;  %v6502_v52 = vld [vmem:[#allocation20_spill] sm:$0xff]  ;;  %v6506_v8 = vld [vmem:[#allocation22_spill] sm:$0xff] }
 0x557   :  { %3765 = vpow2.f32 %v3354_v48  ;;  %v6507_v56 = vld [vmem:[#allocation12_spill] sm:$0xff]  ;;  %v6509_v48 = vld [vmem:[#allocation13_spill] sm:$0xff] }
 0x558   :  { %3767 = vpow2.f32 %v3355_v43  ;;  %v6512_v43 = vld [vmem:[#allocation41_spill] sm:$0xff] }
 0x559   :  { %3769 = vtanh.f32 %v2107_v59 }
 0x55d   :  { %v3762_v6 = vpop.eup %3761 }
 0x55e   :  { %v2132_v17 = vmul.f32 %v3762_v6, %v3760_v58  ;;  %v6510_v58 = vld [vmem:[#allocation24_spill] sm:$0xff] }
 0x55f   :  { %v6511_v6 = vld [vmem:[#allocation28_spill] sm:$0xff] }
 0x560   :  { %v3764_v36 = vpop.eup %3763  ;;  %v5612_v45 = vsel %vm1924_vm2, %v2132_v17, %v5507_v7  ;;  %v6513_v17 = vld [vmem:[#allocation30_spill] sm:$0xff] }
 0x561   :  { %v3766_v31 = vpop.eup %3765  ;;  %v2138_v61 = vadd.f32 1.0, %v3764_v36  ;;  %v2169_v10 = vpack.c.bf16 %v5612_v45, %v5612_v45  ;;  %v6514_v36 = vld [vmem:[#allocation43_spill] sm:$0xff] }
 0x562   :  { %v2144_v62 = vadd.f32 1.0, %v3766_v31  ;;  %v3768_v7 = vpop.eup %3767 }
 0x563   :  { %3771 = vrcp.f32 %v2138_v61  ;;  %2203 = vmatmul.mubr.bf16.vlgmr.msra.gmra.mrb[64].mxu0 %v2169_v10  ;;  %2244 = vmatmul.mubr.bf16.vlgmr.msra.gmra.mrb[80].mxu1 %v2169_v10  ;;  %v6515_v10 = vld [vmem:[#allocation27_spill] sm:$0xff] }
 0x564   :  { %3773 = vrcp.f32 %v2144_v62  ;;  %2258 = vmatpush1.bf16.msra.mxu0 %v5015_v57  ;;  %2299 = vmatpush1.bf16.msra.mxu1 %v5332_v55  ;;  %v3770_v57 = vpop.eup %3769 }
 0x565   :  { %2259 = vmatprep.subr.bf16.mxu0 %v5022_v39  ;;  %2300 = vmatprep.subr.bf16.mxu1 %v5339_v38 }
 0x566   :  { %2289 = vmatprep.mubr.bf16.mxu0 %v6336_v33  ;;  %2330 = vmatprep.mubr.bf16.mxu1 %v6336_v33 }
 0x568   :  { %2260 = vmatpush1.bf16.msra.mxu0 %v5031_v24  ;;  %2301 = vmatpush1.bf16.msra.mxu1 %v5348_v42  ;;  %v2151_v24 = vadd.f32 1.0, %v3768_v7  ;;  %v6516_v7 = vld [vmem:[#allocation57_spill] sm:$0xff] }
 0x569   :  { %2261 = vmatprep.subr.bf16.mxu0 %v5038_v12  ;;  %2302 = vmatprep.subr.bf16.mxu1 %v5355_v26 }
 0x56a   :  { %3775 = vrcp.f32 %v2151_v24 }
 0x56c   :  { %2262 = vmatpush1.bf16.msra.mxu0 %v5045_v0  ;;  %2303 = vmatpush1.bf16.msra.mxu1 %v5362_v2 }
 0x56d   :  { %v3772_v39 = vpop.eup %3771  ;;  %2263 = vmatprep.subr.bf16.mxu0 %v5052_v9  ;;  %2304 = vmatprep.subr.bf16.mxu1 %v5369_v16 }
 0x56e   :  { %v3774_v60 = vpop.eup %3773  ;;  %v2155_v50 = vmul.f32 %v3772_v39, %v3770_v57 }
 0x56f   :  { %v2154_v59 = vmul.f32 %v3774_v60, %v5536_v49 }
 0x570   :  { %2264 = vmatpush1.bf16.msra.mxu0 %v5062_v15  ;;  %2305 = vmatpush1.bf16.msra.mxu1 %v5377_v28 }
 0x571   :  { %v2156_v12 = vadd.f32 %v2155_v50, %v2154_v59  ;;  %2265 = vmatprep.subr.bf16.mxu0 %v5071_v5  ;;  %2306 = vmatprep.subr.bf16.mxu1 %v5386_v34  ;;  %v6517_v50 = vld [vmem:[#allocation29_spill] sm:$0xff]  ;;  %v6518_v59 = vld [vmem:[#allocation59_spill] sm:$0xff] }
 0x573   :  { %3777 = vtanh.f32 %v2156_v12  ;;  %v5638_v0 = vsel %vm1892_vm1, %v2156_v12, %v5536_v49  ;;  %v6496_v49 = vld [vmem:[#allocation17_spill] sm:$0xff] }
 0x574   :  { %2266 = vmatpush1.bf16.msra.mxu0 %v5083_v18  ;;  %2307 = vmatpush1.bf16.msra.mxu1 %v5399_v35  ;;  %v3776_v9 = vpop.eup %3775 }
 0x575   :  { %2267 = vmatprep.subr.bf16.mxu0 %v5090_v19  ;;  %2308 = vmatprep.subr.bf16.mxu1 %v5406_v47 }
 0x578   :  { %2268 = vmatpush1.bf16.msra.mxu0 %v5097_v44  ;;  %2309 = vmatpush1.bf16.msra.mxu1 %v5413_v3  ;;  %v5664_v44 = vld [vmem:[%s6200_s4 + $0x4] ss:$16 sps:$4 sm:$0xff]  }
 0x579   :  { %2269 = vmatprep.subr.bf16.mxu0 %v5104_v20  ;;  %2310 = vmatprep.subr.bf16.mxu1 %v5420_v37  ;;  %v5670_v20 = vld [vmem:[%s6200_s4 + $0xc] ss:$16 sps:$4 sm:$0xff]  }
 0x57c   :  { %2270 = vmatpush1.bf16.msra.mxu0 %v5111_v21  ;;  %2311 = vmatpush1.bf16.msra.mxu1 %v5427_v40  ;;  %v5676_v21 = vld [vmem:[%s6200_s4] ss:$16 sps:$4 sm:$0xff]  }
 0x57d   :  { %v3778_v15 = vpop.eup %3777  ;;  %2271 = vmatprep.subr.bf16.mxu0 %v5118_v46  ;;  %2312 = vmatprep.subr.bf16.mxu1 %v5434_v13  ;;  %v5683_v46 = vld [vmem:[%s6200_s4 + $0x24] ss:$16 sps:$4 sm:$0xff]  }
 0x57e   :  { %v2158_v5 = vmul.f32 %v3778_v15, %v3776_v9 }
 0x580   :  { %2272 = vmatpush1.bf16.msra.mxu0 %v5132_v25  ;;  %2313 = vmatpush1.bf16.msra.mxu1 %v5441_v14  ;;  %v5657_v18 = vsel %vm1892_vm1, %v2158_v5, %v5555_v30  ;;  %v5692_v25 = vld [vmem:[%s6200_s4 + $0x20] ss:$16 sps:$4 sm:$0xff]  }
 0x581   :  { %v2256_v19 = vpack.c.bf16 %v5657_v18, %v5657_v18  ;;  %2404 = vmatprep.subr.bf16.mxu0 %v5664_v44  ;;  %2445 = vmatprep.subr.bf16.mxu1 %v5670_v20  ;;  %v6497_v30 = vld [vmem:[#allocation7_spill] sm:$0xff] }
 0x583   :  { %2290 = vmatmul.mubr.bf16.vlgmr.msra.gmra.mrb[68].mxu0 %v2256_v19  ;;  %2331 = vmatmul.mubr.bf16.vlgmr.msra.gmra.mrb[84].mxu1 %v2256_v19 }
 0x584   :  { %2405 = vmatpush1.bf16.msra.mxu0 %v5676_v21  ;;  %2446 = vmatpush1.bf16.msra.mxu1 %v5144_v54  ;;  %v5699_v54 = vld [vmem:[%s6200_s4 + $0x44] ss:$16 sps:$4 sm:$0xff]  }
 0x585   :  { %2406 = vmatprep.subr.bf16.mxu0 %v5683_v46  ;;  %2447 = vmatprep.subr.bf16.mxu1 %v5151_v27  ;;  %v5706_v27 = vld [vmem:[%s6200_s4 + $0x40] ss:$16 sps:$4 sm:$0xff]  }
 0x586   :  { %2436 = vmatprep.mubr.bf16.mxu0 %v6336_v33  ;;  %2477 = vmatprep.mubr.bf16.mxu1 %v6336_v33 }
 0x588   :  { %2407 = vmatpush1.bf16.msra.mxu0 %v5692_v25  ;;  %2448 = vmatpush1.bf16.msra.mxu1 %v5160_v51  ;;  %v5713_v51 = vld [vmem:[%s6200_s4 + $0x64] ss:$16 sps:$4 sm:$0xff]  }
 0x589   :  { %2408 = vmatprep.subr.bf16.mxu0 %v5699_v54  ;;  %2449 = vmatprep.subr.bf16.mxu1 %v6462_v63  ;;  %v6498_v63 = vld [vmem:[#allocation18_spill] sm:$0xff] }
 0x58c   :  { %2409 = vmatpush1.bf16.msra.mxu0 %v5706_v27  ;;  %2450 = vmatpush1.bf16.msra.mxu1 %v6464_v1  ;;  %v6500_v1 = vld [vmem:[#allocation19_spill] sm:$0xff] }
 0x58d   :  { %2410 = vmatprep.subr.bf16.mxu0 %v5713_v51  ;;  %2451 = vmatprep.subr.bf16.mxu1 %v6466_v4  ;;  %v6505_v4 = vld [vmem:[#allocation11_spill] sm:$0xff] }
 0x590   :  { %2411 = vmatpush1.bf16.msra.mxu0 %v6495_v53  ;;  %2452 = vmatpush1.bf16.msra.mxu1 %v6496_v49 }
 0x591   :  { %2412 = vmatprep.subr.bf16.mxu0 %v6497_v30  ;;  %2453 = vmatprep.subr.bf16.mxu1 %v6498_v63 }
 0x594   :  { %2413 = vmatpush1.bf16.msra.mxu0 %v6499_v22  ;;  %2454 = vmatpush1.bf16.msra.mxu1 %v6500_v1 }
 0x595   :  { %2414 = vmatprep.subr.bf16.mxu0 %v6501_v11  ;;  %2455 = vmatprep.subr.bf16.mxu1 %v6502_v52 }
 0x598   :  { %2415 = vmatpush1.bf16.msra.mxu0 %v6503_v29  ;;  %2456 = vmatpush1.bf16.msra.mxu1 %v6504_v41 }
 0x599   :  { %2416 = vmatprep.subr.bf16.mxu0 %v6505_v4  ;;  %2457 = vmatprep.subr.bf16.mxu1 %v6506_v8 }
 0x59c   :  { %2417 = vmatpush1.bf16.msra.mxu0 %v6507_v56  ;;  %2458 = vmatpush1.bf16.msra.mxu1 %v6508_v32 }
 0x59d   :  { %2418 = vmatprep.subr.bf16.mxu0 %v6509_v48  ;;  %2459 = vmatprep.subr.bf16.mxu1 %v6510_v58 }
 0x5a0   :  { %2419 = vmatpush1.bf16.msra.mxu0 %v6511_v6  ;;  %2460 = vmatpush1.bf16.msra.mxu1 %v6512_v43  ;;  %v6519_v43 = vld [vmem:[#allocation46_spill] sm:$0xff] }
 0x5a1   :  { %2491 = vmatprep.subr.bf16.mxu0 %v6513_v17  ;;  %2532 = vmatprep.subr.bf16.mxu1 %v6514_v36  ;;  %v6520_v36 = vld [vmem:[#allocation71_spill] sm:$0xff] }
 0x636   :  { %v2204_v31 = vpop.f32.mrb[64].mxu0  ;;  %v2245_v61 = vpop.f32.mrb[80].mxu1 }
 0x637   :  { %v2252_v62 = vadd.f32 %v2204_v31, %v6515_v10  ;;  %v2254_v57 = vadd.f32 %v2245_v61, %v6516_v7  ;;  %v2206_v39 = vpop.f32.mrb[65].mxu0  ;;  %v2247_v60 = vpop.f32.mrb[81].mxu1 }
 0x638   :  { %v2253_v24 = vadd.f32 %v2206_v39, %v6517_v50  ;;  %v2255_v12 = vadd.f32 %v2247_v60, %v6518_v59  ;;  %v2208_v9 = vpop.f32.mrb[66].mxu0  ;;  %v2249_v15 = vpop.f32.mrb[82].mxu1 }
 0x639   :  { %v3356_v5 = vmul.f32 -1.442695, %v2252_v62  ;;  %v2209_v19 = vpop.f32.mrb[67].mxu0  ;;  %v2250_v53 = vpop.f32.mrb[83].mxu1  ;;  %v6521_v62 = vld [vmem:[#allocation48_spill] sm:$0xff] }
 0x63a   :  { %v3357_v49 = vmul.f32 -1.442695, %v2253_v24  ;;  %v3358_v30 = vmul.f32 -1.442695, %v2255_v12  ;;  %v3979_v24 = vld [vmem:[%s6200_s4 + $0xcc] ss:$16 sps:$4 sm:$0xff]  }
 0x63b   :  { %3779 = vpow2.f32 %v3356_v5 }
 0x63c   :  { %3781 = vpow2.f32 %v3357_v49 }
 0x63d   :  { %3783 = vpow2.f32 %v3358_v30 }
 0x63e   :  { %3785 = vtanh.f32 %v2254_v57  ;;  %v6522_v57 = vld [vmem:[#allocation72_spill] sm:$0xff] }
 0x645   :  { %v3780_v63 = vpop.eup %3779 }
 0x646   :  { %v3782_v22 = vpop.eup %3781  ;;  %v2346_v1 = vadd.f32 1.0, %v3780_v63 }
 0x647   :  { %v2352_v11 = vadd.f32 1.0, %v3782_v22  ;;  %v3784_v52 = vpop.eup %3783 }
 0x648   :  { %3787 = vrcp.f32 %v2346_v1  ;;  %v3786_v29 = vpop.eup %3785  ;;  %v2359_v56 = vadd.f32 1.0, %v3784_v52 }
 0x649   :  { %3789 = vrcp.f32 %v2352_v11 }
 0x64a   :  { %3791 = vrcp.f32 %v2359_v56  ;;  %v5798_v56 = vld [vmem:[%s6201_s5 + $0x64] ss:$16 sps:$4 sm:$0xff]  }
 0x652   :  { %v3788_v41 = vpop.eup %3787 }
 0x653   :  { %v3790_v4 = vpop.eup %3789  ;;  %v2363_v8 = vmul.f32 %v3788_v41, %v3786_v29  ;;  %v5761_v29 = vld [vmem:[%s6201_s5] ss:$16 sps:$4 sm:$0xff]  }
 0x654   :  { %v2362_v32 = vmul.f32 %v3790_v4, %v5607_v23  ;;  %v3792_v19 = vpop.eup %3791  ;;  %v5777_v41 = vld [vmem:[%s6201_s5 + $0x20] ss:$16 sps:$4 sm:$0xff]  }
 0x656   :  { %v2364_v48 = vadd.f32 %v2363_v8, %v2362_v32  ;;  %v2291_v58 = vpop.f32.mrb[68].mxu0  ;;  %v2332_v6 = vpop.f32.mrb[84].mxu1  ;;  %v5791_v8 = vld [vmem:[%s6201_s5 + $0x40] ss:$16 sps:$4 sm:$0xff]  }
 0x657   :  { %v2339_v17 = vadd.f32 %v2291_v58, %v6519_v43  ;;  %v2341_v31 = vadd.f32 %v2332_v6, %v6520_v36  ;;  %v2293_v61 = vpop.f32.mrb[69].mxu0  ;;  %v2334_v10 = vpop.f32.mrb[85].mxu1  ;;  %v5806_v6 = vld [vmem:[%s6201_s5 + $0x60] ss:$16 sps:$4 sm:$0xff]   ;;  %v5813_v43 = vld [vmem:[%s6201_s5 + $0x84] ss:$16 sps:$4 sm:$0xff]  }
 0x658   :  { %3793 = vtanh.f32 %v2364_v48  ;;  %v2340_v7 = vadd.f32 %v2293_v61, %v6521_v62  ;;  %v2342_v39 = vadd.f32 %v2334_v10, %v6522_v57  ;;  %v2295_v60 = vpop.f32.mrb[70].mxu0  ;;  %v2336_v50 = vpop.f32.mrb[86].mxu1  ;;  %v5749_v59 = vsel %vm1672_vm0, %v2364_v48, %v5607_v23  ;;  %v5867_v61 = vld [vmem:[%s6201_s5 + $0xe0] ss:$16 sps:$4 sm:$0xff]   ;;  %v3973_v62 = vld [vmem:[%s6200_s4 + $0x88] ss:$16 sps:$4 sm:$0xff]  }
 0x659   :  { %v3359_v12 = vmul.f32 -1.442695, %v2339_v17  ;;  %v2296_v9 = vpop.f32.mrb[71].mxu0  ;;  %v2337_v15 = vpop.f32.mrb[87].mxu1  ;;  %v3975_v57 = vld [vmem:[%s6200_s4 + $0xac] ss:$16 sps:$4 sm:$0xff]  }
 0x65a   :  { %v3360_v5 = vmul.f32 -1.442695, %v2340_v7  ;;  %v3361_v49 = vmul.f32 -1.442695, %v2342_v39  ;;  %v3974_v7 = vld [vmem:[%s6200_s4 + $0xa4] ss:$16 sps:$4 sm:$0xff]  }
 0x65b   :  { %3795 = vpow2.f32 %v3359_v12  ;;  %v3976_v39 = vld [vmem:[%s6200_s4 + $0xa0] ss:$16 sps:$4 sm:$0xff]   ;;  %v3977_v60 = vld [vmem:[%s6200_s4 + $0xa8] ss:$16 sps:$4 sm:$0xff]   ;;  %v3978_v50 = vld [vmem:[%s6200_s4 + $0xc4] ss:$16 sps:$4 sm:$0xff]  }
 0x65c   :  { %3797 = vpow2.f32 %v3360_v5  ;;  %v3980_v12 = vld [vmem:[%s6200_s4 + $0xc0] ss:$16 sps:$4 sm:$0xff]   ;;  %v3981_v9 = vld [vmem:[%s6200_s4 + $0xc8] ss:$16 sps:$4 sm:$0xff]   ;;  %v3982_v15 = vld [vmem:[%s6200_s4 + $0xe4] ss:$16 sps:$4 sm:$0xff]  }
 0x65d   :  { %3799 = vpow2.f32 %v3361_v49  ;;  %v3983_v5 = vld [vmem:[%s6200_s4 + $0xec] ss:$16 sps:$4 sm:$0xff]   ;;  %v3986_v49 = vld [vmem:[%s6201_s5 + $0x4] ss:$16 sps:$4 sm:$0xff]  }
 0x65e   :  { %3801 = vtanh.f32 %v2341_v31  ;;  %v5860_v31 = vld [vmem:[%s6201_s5 + $0xe4] ss:$16 sps:$4 sm:$0xff]  }
 0x662   :  { %v3794_v53 = vpop.eup %3793 }
 0x663   :  { %v2366_v30 = vmul.f32 %v3794_v53, %v3792_v19  ;;  %v3984_v19 = vld [vmem:[%s6200_s4 + $0xe0] ss:$16 sps:$4 sm:$0xff]   ;;  %v3985_v53 = vld [vmem:[%s6200_s4 + $0xe8] ss:$16 sps:$4 sm:$0xff]  }
 0x665   :  { %v3796_v63 = vpop.eup %3795  ;;  %v5754_v22 = vsel %vm1672_vm0, %v2366_v30, %v5612_v45  ;;  %v5768_v45 = vld [vmem:[%s6201_s5 + $0x24] ss:$16 sps:$4 sm:$0xff]   ;;  %v3987_v30 = vld [vmem:[%s6201_s5 + $0xc] ss:$16 sps:$4 sm:$0xff]  }
 0x666   :  { %v3798_v1 = vpop.eup %3797  ;;  %v2372_v11 = vadd.f32 1.0, %v3796_v63  ;;  %v2403_v23 = vpack.c.bf16 %v5754_v22, %v5754_v22 }
 0x667   :  { %v2378_v52 = vadd.f32 1.0, %v3798_v1 }
 0x668   :  { %3803 = vrcp.f32 %v2372_v11  ;;  %2437 = vmatmul.mubr.bf16.vlgmr.msra.gmra.mrb[72].mxu0 %v2403_v23  ;;  %2478 = vmatmul.mubr.bf16.vlgmr.msra.gmra.mrb[88].mxu1 %v2403_v23  ;;  %v6525_v11 = vld [vmem:[#allocation31_spill] sm:$0xff] }
 0x669   :  { %3805 = vrcp.f32 %v2378_v52  ;;  %2492 = vmatpush1.bf16.msra.mxu0 %v5761_v29  ;;  %2533 = vmatpush1.bf16.msra.mxu1 %v5332_v55  ;;  %v5784_v55 = vld [vmem:[%s6201_s5 + $0x44] ss:$16 sps:$4 sm:$0xff]   ;;  %v6526_v52 = vld [vmem:[#allocation61_spill] sm:$0xff] }
 0x66a   :  { %2493 = vmatprep.subr.bf16.mxu0 %v5768_v45  ;;  %2534 = vmatprep.subr.bf16.mxu1 %v5339_v38  ;;  %v3800_v38 = vpop.eup %3799 }
 0x66b   :  { %2523 = vmatprep.mubr.bf16.mxu0 %v6336_v33  ;;  %2564 = vmatprep.mubr.bf16.mxu1 %v6336_v33  ;;  %v3802_v4 = vpop.eup %3801  ;;  %v2385_v48 = vadd.f32 1.0, %v3800_v38 }
 0x66d   :  { %2494 = vmatpush1.bf16.msra.mxu0 %v5777_v41  ;;  %2535 = vmatpush1.bf16.msra.mxu1 %v5348_v42  ;;  %3807 = vrcp.f32 %v2385_v48  ;;  %v6528_v48 = vld [vmem:[#allocation63_spill] sm:$0xff] }
 0x66e   :  { %2495 = vmatprep.subr.bf16.mxu0 %v5784_v55  ;;  %2536 = vmatprep.subr.bf16.mxu1 %v5355_v26 }
 0x671   :  { %2496 = vmatpush1.bf16.msra.mxu0 %v5791_v8  ;;  %2537 = vmatpush1.bf16.msra.mxu1 %v5362_v2 }
 0x672   :  { %v3804_v42 = vpop.eup %3803  ;;  %2497 = vmatprep.subr.bf16.mxu0 %v5798_v56  ;;  %2538 = vmatprep.subr.bf16.mxu1 %v5369_v16 }
 0x673   :  { %v3806_v26 = vpop.eup %3805  ;;  %v2389_v32 = vmul.f32 %v3804_v42, %v3802_v4 }
 0x674   :  { %v2388_v58 = vmul.f32 %v3806_v26, %v5638_v0  ;;  %v6527_v26 = vld [vmem:[#allocation33_spill] sm:$0xff] }
 0x675   :  { %2498 = vmatpush1.bf16.msra.mxu0 %v5806_v6  ;;  %2539 = vmatpush1.bf16.msra.mxu1 %v5377_v28  ;;  %v5825_v28 = vld [vmem:[%s6201_s5 + $0x80] ss:$16 sps:$4 sm:$0xff]  }
 0x676   :  { %v2390_v2 = vadd.f32 %v2389_v32, %v2388_v58  ;;  %2499 = vmatprep.subr.bf16.mxu0 %v5813_v43  ;;  %2540 = vmatprep.subr.bf16.mxu1 %v5386_v34  ;;  %v5832_v34 = vld [vmem:[%s6201_s5 + $0xa4] ss:$16 sps:$4 sm:$0xff]  }
 0x677   :  { %v3808_v36 = vpop.eup %3807 }
 0x678   :  { %3809 = vtanh.f32 %v2390_v2  ;;  %v5820_v17 = vsel %vm1640_vm15, %v2390_v2, %v5638_v0  ;;  %v5839_v0 = vld [vmem:[%s6201_s5 + $0xa0] ss:$16 sps:$4 sm:$0xff]  }
 0x679   :  { %2500 = vmatpush1.bf16.msra.mxu0 %v5825_v28  ;;  %2541 = vmatpush1.bf16.msra.mxu1 %v5399_v35  ;;  %v5846_v35 = vld [vmem:[%s6201_s5 + $0xc4] ss:$16 sps:$4 sm:$0xff]  }
 0x67a   :  { %2501 = vmatprep.subr.bf16.mxu0 %v5832_v34  ;;  %2542 = vmatprep.subr.bf16.mxu1 %v5406_v47  ;;  %v5853_v47 = vld [vmem:[%s6201_s5 + $0xc0] ss:$16 sps:$4 sm:$0xff]  }
 0x67d   :  { %2502 = vmatpush1.bf16.msra.mxu0 %v5839_v0  ;;  %2543 = vmatpush1.bf16.msra.mxu1 %v5413_v3 }
 0x67e   :  { %2503 = vmatprep.subr.bf16.mxu0 %v5846_v35  ;;  %2544 = vmatprep.subr.bf16.mxu1 %v5420_v37 }
 0x681   :  { %2504 = vmatpush1.bf16.msra.mxu0 %v5853_v47  ;;  %2545 = vmatpush1.bf16.msra.mxu1 %v5427_v40 }
 0x682   :  { %v3810_v3 = vpop.eup %3809  ;;  %2505 = vmatprep.subr.bf16.mxu0 %v5860_v31  ;;  %2546 = vmatprep.subr.bf16.mxu1 %v5434_v13  ;;  %v3962_v13 = vld [vmem:[%s6200_s4 + $0x8] ss:$16 sps:$4 sm:$0xff]  }
 0x683   :  { %v2392_v37 = vmul.f32 %v3810_v3, %v3808_v36 }
 0x685   :  { %2506 = vmatpush1.bf16.msra.mxu0 %v5867_v61  ;;  %2547 = vmatpush1.bf16.msra.mxu1 %v5441_v14  ;;  %v5874_v40 = vsel %vm1640_vm15, %v2392_v37, %v5657_v18  ;;  %v3963_v14 = vld [vmem:[%s6200_s4 + $0x2c] ss:$16 sps:$4 sm:$0xff]   ;;  %v3964_v18 = vld [vmem:[%s6200_s4 + $0x28] ss:$16 sps:$4 sm:$0xff]  }
 0x686   :  { %v2490_v10 = vpack.c.bf16 %v5874_v40, %v5874_v40  ;;  %2638 = vmatprep.subr.bf16.mxu0 %v5664_v44  ;;  %2679 = vmatprep.subr.bf16.mxu1 %v5670_v20  ;;  %v3965_v44 = vld [vmem:[%s6200_s4 + $0x4c] ss:$16 sps:$4 sm:$0xff]   ;;  %v3966_v20 = vld [vmem:[%s6200_s4 + $0x48] ss:$16 sps:$4 sm:$0xff]  }
 0x688   :  { %2524 = vmatmul.mubr.bf16.vlgmr.msra.gmra.mrb[76].mxu0 %v2490_v10  ;;  %2565 = vmatmul.mubr.bf16.vlgmr.msra.gmra.mrb[92].mxu1 %v2490_v10 }
 0x689   :  { %2639 = vmatpush1.bf16.msra.mxu0 %v5676_v21  ;;  %2680 = vmatpush1.bf16.msra.mxu1 %v3962_v13  ;;  %v3967_v21 = vld [vmem:[%s6200_s4 + $0x6c] ss:$16 sps:$4 sm:$0xff]  }
 0x68a   :  { %2640 = vmatprep.subr.bf16.mxu0 %v5683_v46  ;;  %2681 = vmatprep.subr.bf16.mxu1 %v3963_v14  ;;  %v3968_v46 = vld [vmem:[%s6200_s4 + $0x60] ss:$16 sps:$4 sm:$0xff]  }
 0x68b   :  { %2670 = vmatprep.mubr.bf16.mxu0 %v6336_v33  ;;  %2711 = vmatprep.mubr.bf16.mxu1 %v6336_v33 }
 0x68d   :  { %2641 = vmatpush1.bf16.msra.mxu0 %v5692_v25  ;;  %2682 = vmatpush1.bf16.msra.mxu1 %v3964_v18  ;;  %v3969_v25 = vld [vmem:[%s6200_s4 + $0x68] ss:$16 sps:$4 sm:$0xff]  }
 0x68e   :  { %2642 = vmatprep.subr.bf16.mxu0 %v5699_v54  ;;  %2683 = vmatprep.subr.bf16.mxu1 %v3965_v44  ;;  %v3970_v54 = vld [vmem:[%s6200_s4 + $0x84] ss:$16 sps:$4 sm:$0xff]  }
 0x691   :  { %2643 = vmatpush1.bf16.msra.mxu0 %v5706_v27  ;;  %2684 = vmatpush1.bf16.msra.mxu1 %v3966_v20  ;;  %v3971_v27 = vld [vmem:[%s6200_s4 + $0x8c] ss:$16 sps:$4 sm:$0xff]  }
 0x692   :  { %2644 = vmatprep.subr.bf16.mxu0 %v5713_v51  ;;  %2685 = vmatprep.subr.bf16.mxu1 %v3967_v21  ;;  %v3972_v51 = vld [vmem:[%s6200_s4 + $0x80] ss:$16 sps:$4 sm:$0xff]  }
 0x695   :  { %2645 = vmatpush1.bf16.msra.mxu0 %v3968_v46  ;;  %2686 = vmatpush1.bf16.msra.mxu1 %v3969_v25 }
 0x696   :  { %2646 = vmatprep.subr.bf16.mxu0 %v3970_v54  ;;  %2687 = vmatprep.subr.bf16.mxu1 %v3971_v27 }
 0x699   :  { %2647 = vmatpush1.bf16.msra.mxu0 %v3972_v51  ;;  %2688 = vmatpush1.bf16.msra.mxu1 %v3973_v62 }
 0x69a   :  { %2648 = vmatprep.subr.bf16.mxu0 %v3974_v7  ;;  %2689 = vmatprep.subr.bf16.mxu1 %v3975_v57 }
 0x69d   :  { %2649 = vmatpush1.bf16.msra.mxu0 %v3976_v39  ;;  %2690 = vmatpush1.bf16.msra.mxu1 %v3977_v60  ;;  %v6529_v60 = vld [vmem:[#allocation42_spill] sm:$0xff] }
 0x69e   :  { %2650 = vmatprep.subr.bf16.mxu0 %v3978_v50  ;;  %2691 = vmatprep.subr.bf16.mxu1 %v3979_v24  ;;  %v6530_v24 = vld [vmem:[#allocation69_spill] sm:$0xff] }
 0x6a1   :  { %2651 = vmatpush1.bf16.msra.mxu0 %v3980_v12  ;;  %2692 = vmatpush1.bf16.msra.mxu1 %v3981_v9 }
 0x6a2   :  { %2652 = vmatprep.subr.bf16.mxu0 %v3982_v15  ;;  %2693 = vmatprep.subr.bf16.mxu1 %v3983_v5  ;;  %v6531_v5 = vld [vmem:[#allocation44_spill] sm:$0xff] }
 0x6a5   :  { %2653 = vmatpush1.bf16.msra.mxu0 %v3984_v19  ;;  %2694 = vmatpush1.bf16.msra.mxu1 %v3985_v53  ;;  %v6532_v53 = vld [vmem:[#allocation70_spill] sm:$0xff] }
 0x6a6   :  { %2725 = vmatprep.subr.bf16.mxu0 %v3986_v49  ;;  %2766 = vmatprep.subr.bf16.mxu1 %v3987_v30 }
 0x73b   :  { %v2438_v63 = vpop.f32.mrb[72].mxu0  ;;  %v2479_v1 = vpop.f32.mrb[88].mxu1 }
 0x73c   :  { %v2486_v23 = vadd.f32 %v2438_v63, %v6525_v11  ;;  %v2488_v38 = vadd.f32 %v2479_v1, %v6526_v52  ;;  %v2440_v4 = vpop.f32.mrb[73].mxu0  ;;  %v2481_v42 = vpop.f32.mrb[89].mxu1 }
 0x73d   :  { %v2487_v32 = vadd.f32 %v2440_v4, %v6527_v26  ;;  %v2489_v58 = vadd.f32 %v2481_v42, %v6528_v48  ;;  %v2442_v2 = vpop.f32.mrb[74].mxu0  ;;  %v2483_v16 = vpop.f32.mrb[90].mxu1 }
 0x73e   :  { %v3362_v36 = vmul.f32 -1.442695, %v2486_v23  ;;  %v2443_v3 = vpop.f32.mrb[75].mxu0  ;;  %v2484_v37 = vpop.f32.mrb[91].mxu1 }
 0x73f   :  { %v3363_v10 = vmul.f32 -1.442695, %v2487_v32  ;;  %v3364_v13 = vmul.f32 -1.442695, %v2489_v58  ;;  %v3988_v37 = vld [vmem:[%s6201_s5 + $0x8] ss:$16 sps:$4 sm:$0xff]  }
 0x740   :  { %3811 = vpow2.f32 %v3362_v36 }
 0x741   :  { %3813 = vpow2.f32 %v3363_v10 }
 0x742   :  { %3815 = vpow2.f32 %v3364_v13 }
 0x743   :  { %3817 = vtanh.f32 %v2488_v38 }
 0x74a   :  { %v3812_v14 = vpop.eup %3811 }
 0x74b   :  { %v3814_v18 = vpop.eup %3813  ;;  %v2580_v44 = vadd.f32 1.0, %v3812_v14 }
 0x74c   :  { %v2586_v20 = vadd.f32 1.0, %v3814_v18  ;;  %v3816_v21 = vpop.eup %3815 }
 0x74d   :  { %3819 = vrcp.f32 %v2580_v44  ;;  %v3818_v46 = vpop.eup %3817  ;;  %v2593_v51 = vadd.f32 1.0, %v3816_v21 }
 0x74e   :  { %3821 = vrcp.f32 %v2586_v20 }
 0x74f   :  { %3823 = vrcp.f32 %v2593_v51 }
 0x757   :  { %v3820_v25 = vpop.eup %3819 }
 0x758   :  { %v3822_v54 = vpop.eup %3821  ;;  %v2597_v27 = vmul.f32 %v3820_v25, %v3818_v46 }
 0x759   :  { %v2596_v62 = vmul.f32 %v3822_v54, %v5749_v59  ;;  %v3824_v42 = vpop.eup %3823  ;;  %v4000_v54 = vld [vmem:[%s6201_s5 + $0xc8] ss:$16 sps:$4 sm:$0xff]  }
 0x75b   :  { %v2598_v7 = vadd.f32 %v2597_v27, %v2596_v62  ;;  %v2525_v57 = vpop.f32.mrb[76].mxu0  ;;  %v2566_v39 = vpop.f32.mrb[92].mxu1  ;;  %v3595_v62 = vld [vmem:[%s6204_s7] sm:$0xff]  }
 0x75c   :  { %v2573_v50 = vadd.f32 %v2525_v57, %v6529_v60  ;;  %v2575_v12 = vadd.f32 %v2566_v39, %v6530_v24  ;;  %v2527_v9 = vpop.f32.mrb[77].mxu0  ;;  %v2568_v15 = vpop.f32.mrb[93].mxu1  ;;  %v3598_v57 = vld [vmem:[%s6204_s7 + $0x18] sm:$0xff]   ;;  %v3599_v39 = vld [vmem:[%s6204_s7 + $0x20] sm:$0xff]   ;;  %v3600_v60 = vld [vmem:[%s6204_s7 + $0x28] sm:$0xff]  }
 0x75d   :  { %3825 = vtanh.f32 %v2598_v7  ;;  %v2574_v19 = vadd.f32 %v2527_v9, %v6531_v5  ;;  %v2576_v49 = vadd.f32 %v2568_v15, %v6532_v53  ;;  %v2529_v30 = vpop.f32.mrb[78].mxu0  ;;  %v2570_v63 = vpop.f32.mrb[94].mxu1  ;;  %v5978_v11 = vsel %vm1420_vm14, %v2598_v7, %v5749_v59  ;;  %v3597_v7 = vld [vmem:[%s6204_s7 + $0x10] sm:$0xff]   ;;  %v3602_v24 = vld [vmem:[%s6204_s7 + $0x38] sm:$0xff]   ;;  %v3604_v9 = vld [vmem:[%s6205_s8 + $0x8] sm:$0xff]  }
 0x75e   :  { %v3365_v23 = vmul.f32 -1.442695, %v2573_v50  ;;  %v2530_v52 = vpop.f32.mrb[79].mxu0  ;;  %v2571_v38 = vpop.f32.mrb[95].mxu1  ;;  %v3601_v50 = vld [vmem:[%s6204_s7 + $0x30] sm:$0xff]   ;;  %v3606_v5 = vld [vmem:[%s6205_s8 + $0x18] sm:$0xff]  }
 0x75f   :  { %v3366_v4 = vmul.f32 -1.442695, %v2574_v19  ;;  %v3367_v32 = vmul.f32 -1.442695, %v2576_v49  ;;  %v3605_v15 = vld [vmem:[%s6205_s8 + $0x10] sm:$0xff]   ;;  %v3607_v19 = vld [vmem:[%s6205_s8 + $0x20] sm:$0xff]  }
 0x760   :  { %3827 = vpow2.f32 %v3365_v23  ;;  %v3608_v53 = vld [vmem:[%s6205_s8 + $0x28] sm:$0xff]   ;;  %v3609_v49 = vld [vmem:[%s6205_s8 + $0x30] sm:$0xff]   ;;  %v3610_v30 = vld [vmem:[%s6205_s8 + $0x38] sm:$0xff]  }
 0x761   :  { %3829 = vpow2.f32 %v3366_v4  ;;  %v6535_v23 = vld [vmem:[#allocation35_spill] sm:$0xff]  ;;  %v6536_v38 = vld [vmem:[#allocation65_spill] sm:$0xff] }
 0x762   :  { %3831 = vpow2.f32 %v3367_v32  ;;  %v6537_v32 = vld [vmem:[#allocation37_spill] sm:$0xff] }
 0x763   :  { %3833 = vtanh.f32 %v2575_v12  ;;  %v3603_v12 = vld [vmem:[%s6205_s8] sm:$0xff]  }
 0x767   :  { %v3826_v26 = vpop.eup %3825 }
 0x768   :  { %v2600_v48 = vmul.f32 %v3826_v26, %v3824_v42 }
 0x76a   :  { %v3828_v58 = vpop.eup %3827  ;;  %v5983_v2 = vsel %vm1420_vm14, %v2600_v48, %v5754_v22  ;;  %v3989_v22 = vld [vmem:[%s6201_s5 + $0x2c] ss:$16 sps:$4 sm:$0xff]  }
 0x76b   :  { %v3830_v16 = vpop.eup %3829  ;;  %v2606_v36 = vadd.f32 1.0, %v3828_v58  ;;  %v2637_v59 = vpack.c.bf16 %v5983_v2, %v5983_v2  ;;  %v6538_v58 = vld [vmem:[#allocation66_spill] sm:$0xff] }
 0x76c   :  { %v2612_v3 = vadd.f32 1.0, %v3830_v16  ;;  %v3832_v10 = vpop.eup %3831 }
 0x76d   :  { %3835 = vrcp.f32 %v2606_v36  ;;  %2671 = vmatmul.mubr.bf16.vlgmr.msra.gmra.mrb[80].mxu0 %v2637_v59  ;;  %2712 = vmatmul.mubr.bf16.vlgmr.msra.gmra.mrb[96].mxu1 %v2637_v59  ;;  %v3834_v13 = vpop.eup %3833  ;;  %v2619_v44 = vadd.f32 1.0, %v3832_v10 }
 0x76e   :  { %3837 = vrcp.f32 %v2612_v3  ;;  %2726 = vmatpush1.bf16.msra.mxu0 %v5761_v29  ;;  %2767 = vmatpush1.bf16.msra.mxu1 %v3988_v37  ;;  %v3990_v29 = vld [vmem:[%s6201_s5 + $0x28] ss:$16 sps:$4 sm:$0xff]  }
 0x76f   :  { %2727 = vmatprep.subr.bf16.mxu0 %v5768_v45  ;;  %2768 = vmatprep.subr.bf16.mxu1 %v3989_v22  ;;  %v3991_v45 = vld [vmem:[%s6201_s5 + $0x4c] ss:$16 sps:$4 sm:$0xff]   ;;  %3839 = vrcp.f32 %v2619_v44 }
 0x770   :  { %2757 = vmatprep.mubr.bf16.mxu0 %v6336_v33  ;;  %2798 = vmatprep.mubr.bf16.mxu1 %v6336_v33  ;;  %v3992_v33 = vld [vmem:[%s6201_s5 + $0x48] ss:$16 sps:$4 sm:$0xff]  }
 0x772   :  { %2728 = vmatpush1.bf16.msra.mxu0 %v5777_v41  ;;  %2769 = vmatpush1.bf16.msra.mxu1 %v3990_v29 }
 0x773   :  { %2729 = vmatprep.subr.bf16.mxu0 %v5784_v55  ;;  %2770 = vmatprep.subr.bf16.mxu1 %v3991_v45  ;;  %v3993_v55 = vld [vmem:[%s6201_s5 + $0x6c] ss:$16 sps:$4 sm:$0xff]  }
 0x776   :  { %2730 = vmatpush1.bf16.msra.mxu0 %v5791_v8  ;;  %2771 = vmatpush1.bf16.msra.mxu1 %v3992_v33  ;;  %v3994_v8 = vld [vmem:[%s6201_s5 + $0x68] ss:$16 sps:$4 sm:$0xff]  }
 0x777   :  { %v3836_v41 = vpop.eup %3835  ;;  %2731 = vmatprep.subr.bf16.mxu0 %v5798_v56  ;;  %2772 = vmatprep.subr.bf16.mxu1 %v3993_v55  ;;  %v3995_v56 = vld [vmem:[%s6201_s5 + $0x8c] ss:$16 sps:$4 sm:$0xff]  }
 0x778   :  { %v3838_v14 = vpop.eup %3837  ;;  %v2623_v18 = vmul.f32 %v3836_v41, %v3834_v13 }
 0x779   :  { %v2622_v20 = vmul.f32 %v3838_v14, %v5820_v17 }
 0x77a   :  { %2732 = vmatpush1.bf16.msra.mxu0 %v5806_v6  ;;  %2773 = vmatpush1.bf16.msra.mxu1 %v3994_v8  ;;  %v3996_v6 = vld [vmem:[%s6201_s5 + $0x88] ss:$16 sps:$4 sm:$0xff]  }
 0x77b   :  { %v2624_v21 = vadd.f32 %v2623_v18, %v2622_v20  ;;  %2733 = vmatprep.subr.bf16.mxu0 %v5813_v43  ;;  %2774 = vmatprep.subr.bf16.mxu1 %v3995_v56  ;;  %v3997_v43 = vld [vmem:[%s6201_s5 + $0xac] ss:$16 sps:$4 sm:$0xff]  }
 0x77d   :  { %3841 = vtanh.f32 %v2624_v21  ;;  %v6025_v25 = vsel %vm1388_vm13, %v2624_v21, %v5820_v17  ;;  %v3998_v17 = vld [vmem:[%s6201_s5 + $0xa8] ss:$16 sps:$4 sm:$0xff]  }
 0x77e   :  { %2734 = vmatpush1.bf16.msra.mxu0 %v5825_v28  ;;  %2775 = vmatpush1.bf16.msra.mxu1 %v3996_v6  ;;  %v3999_v28 = vld [vmem:[%s6201_s5 + $0xcc] ss:$16 sps:$4 sm:$0xff]  }
 0x77f   :  { %2735 = vmatprep.subr.bf16.mxu0 %v5832_v34  ;;  %2776 = vmatprep.subr.bf16.mxu1 %v3997_v43  ;;  %v3840_v34 = vpop.eup %3839  ;;  %v6539_v43 = vld [vmem:[#allocation39_spill] sm:$0xff] }
 0x782   :  { %2736 = vmatpush1.bf16.msra.mxu0 %v5839_v0  ;;  %2777 = vmatpush1.bf16.msra.mxu1 %v3998_v17 }
 0x783   :  { %2737 = vmatprep.subr.bf16.mxu0 %v5846_v35  ;;  %2778 = vmatprep.subr.bf16.mxu1 %v3999_v28  ;;  %v4001_v35 = vld [vmem:[%s6201_s5 + $0xec] ss:$16 sps:$4 sm:$0xff]  }
 0x784   :  { %v6540_v28 = vld [vmem:[#allocation67_spill] sm:$0xff] }
 0x786   :  { %2738 = vmatpush1.bf16.msra.mxu0 %v5853_v47  ;;  %2779 = vmatpush1.bf16.msra.mxu1 %v4000_v54  ;;  %v4002_v47 = vld [vmem:[%s6201_s5 + $0xe8] ss:$16 sps:$4 sm:$0xff]  }
 0x787   :  { %v3842_v0 = vpop.eup %3841  ;;  %2739 = vmatprep.subr.bf16.mxu0 %v5860_v31  ;;  %2780 = vmatprep.subr.bf16.mxu1 %v4001_v35  ;;  %v6541_v35 = vld [vmem:[#allocation40_spill] sm:$0xff] }
 0x788   :  { %v2626_v27 = vmul.f32 %v3842_v0, %v3840_v34 }
 0x78a   :  { %2740 = vmatpush1.bf16.msra.mxu0 %v5867_v61  ;;  %2781 = vmatpush1.bf16.msra.mxu1 %v4002_v47  ;;  %v6058_v51 = vsel %vm1388_vm13, %v2626_v27, %v5874_v40  ;;  %v4004_v61 = vmov 0.0   ;;  %v3596_v40 = vld [vmem:[%s6204_s7 + $0x8] sm:$0xff]  }
 0x78b   :  { %v2724_v31 = vpack.c.bf16 %v6058_v51, %v6058_v51  ;;  %3448 = vmatprep.subr.bf16.mxu1 %v4004_v61  ;;  %3428 = vmatprep.subr.bf16.mxu0 %v4004_v61  ;;  %v6542_v47 = vld [vmem:[#allocation68_spill] sm:$0xff] }
 0x78d   :  { %2758 = vmatmul.mubr.bf16.vlgmr.msra.gmra.mrb[84].mxu0 %v2724_v31  ;;  %2799 = vmatmul.mubr.bf16.vlgmr.msra.gmra.mrb[100].mxu1 %v2724_v31 }
 0x78e   :  { %3449 = vmatpush3.bf16.msra.mxu1 %v3595_v62  ;;  %3429 = vmatpush3.bf16.msra.mxu0 %v3603_v12 }
 0x78f   :  { %3450 = vmatprep.subr.bf16.mxu1 %v4004_v61  ;;  %3464 = vmatprep.mubr.msk.bf16.mxu1 %vm4005_vm3, %v4004_v61 }
 0x790   :  { %3430 = vmatprep.subr.bf16.mxu0 %v4004_v61  ;;  %3444 = vmatprep.mubr.msk.bf16.mxu0 %vm4005_vm3, %v4004_v61 }
 0x792   :  { %3451 = vmatpush3.bf16.msra.mxu1 %v3596_v40  ;;  %3431 = vmatpush3.bf16.msra.mxu0 %v3604_v9 }
 0x793   :  { %3452 = vmatprep.subr.bf16.mxu1 %v4004_v61  ;;  %3432 = vmatprep.subr.bf16.mxu0 %v4004_v61 }
 0x796   :  { %3453 = vmatpush3.bf16.msra.mxu1 %v3597_v7  ;;  %3433 = vmatpush3.bf16.msra.mxu0 %v3605_v15 }
 0x797   :  { %3454 = vmatprep.subr.bf16.mxu1 %v4004_v61  ;;  %3434 = vmatprep.subr.bf16.mxu0 %v4004_v61 }
 0x79a   :  { %3455 = vmatpush3.bf16.msra.mxu1 %v3598_v57  ;;  %3435 = vmatpush3.bf16.msra.mxu0 %v3606_v5 }
 0x79b   :  { %3456 = vmatprep.subr.bf16.mxu1 %v4004_v61  ;;  %3436 = vmatprep.subr.bf16.mxu0 %v4004_v61 }
 0x79e   :  { %3457 = vmatpush3.bf16.msra.mxu1 %v3599_v39  ;;  %3437 = vmatpush3.bf16.msra.mxu0 %v3607_v19 }
 0x79f   :  { %3458 = vmatprep.subr.bf16.mxu1 %v4004_v61  ;;  %3438 = vmatprep.subr.bf16.mxu0 %v4004_v61 }
 0x7a2   :  { %3459 = vmatpush3.bf16.msra.mxu1 %v3600_v60  ;;  %3439 = vmatpush3.bf16.msra.mxu0 %v3608_v53 }
 0x7a3   :  { %3460 = vmatprep.subr.bf16.mxu1 %v4004_v61  ;;  %3440 = vmatprep.subr.bf16.mxu0 %v4004_v61 }
 0x7a6   :  { %3461 = vmatpush3.bf16.msra.mxu1 %v3601_v50  ;;  %3441 = vmatpush3.bf16.msra.mxu0 %v3609_v49 }
 0x7a7   :  { %3462 = vmatprep.subr.bf16.mxu1 %v4004_v61  ;;  %3442 = vmatprep.subr.bf16.mxu0 %v4004_v61 }
 0x7aa   :  { %3463 = vmatpush3.bf16.msra.mxu1 %v3602_v24  ;;  %3443 = vmatpush3.bf16.msra.mxu0 %v3610_v30 }
 0x7ab   :  { %3468 = vmatprep.subr.bf16.mxu0 %v4004_v61 }
 0x840   :  { %v2672_v63 = vpop.f32.mrb[80].mxu0  ;;  %v2713_v1 = vpop.f32.mrb[96].mxu1 }
 0x841   :  { %v2720_v52 = vadd.f32 %v2672_v63, %v6535_v23  ;;  %v2722_v4 = vadd.f32 %v2713_v1, %v6536_v38  ;;  %v2674_v42 = vpop.f32.mrb[81].mxu0  ;;  %v2715_v26 = vpop.f32.mrb[97].mxu1 }
 0x842   :  { %v2721_v48 = vadd.f32 %v2674_v42, %v6537_v32  ;;  %v2723_v16 = vadd.f32 %v2715_v26, %v6538_v58  ;;  %v2676_v36 = vpop.f32.mrb[82].mxu0  ;;  %v2717_v59 = vpop.f32.mrb[98].mxu1 }
 0x843   :  { %v3368_v3 = vmul.f32 -1.442695, %v2720_v52  ;;  %v2677_v37 = vpop.f32.mrb[83].mxu0  ;;  %v2718_v22 = vpop.f32.mrb[99].mxu1  ;;  %v3611_v36 = vld [vmem:[%s6206_s9] sm:$0xff]  }
 0x844   :  { %v3369_v29 = vmul.f32 -1.442695, %v2721_v48  ;;  %v3370_v45 = vmul.f32 -1.442695, %v2723_v16  ;;  %v3615_v37 = vld [vmem:[%s6206_s9 + $0x20] sm:$0xff]   ;;  %v3616_v22 = vld [vmem:[%s6206_s9 + $0x28] sm:$0xff]  }
 0x845   :  { %3843 = vpow2.f32 %v3368_v3  ;;  %v3614_v3 = vld [vmem:[%s6206_s9 + $0x18] sm:$0xff]  }
 0x846   :  { %3845 = vpow2.f32 %v3369_v29  ;;  %v3617_v29 = vld [vmem:[%s6206_s9 + $0x30] sm:$0xff]  }
 0x847   :  { %3847 = vpow2.f32 %v3370_v45  ;;  %v3618_v45 = vld [vmem:[%s6206_s9 + $0x38] sm:$0xff]  }
 0x848   :  { %3849 = vtanh.f32 %v2722_v4 }
 0x84f   :  { %v3844_v10 = vpop.eup %3843 }
 0x850   :  { %v3846_v13 = vpop.eup %3845  ;;  %v2814_v33 = vadd.f32 1.0, %v3844_v10  ;;  %v3071_v10 = vld [vmem:[%s6207_s2] sm:$0xf] }
 0x851   :  { %v2820_v41 = vadd.f32 1.0, %v3846_v13  ;;  %v3848_v55 = vpop.eup %3847  ;;  %v20_v13 = vstv %s6208_s12 }
 0x852   :  { %3851 = vrcp.f32 %v2814_v33  ;;  %v3850_v14 = vpop.eup %3849  ;;  %v2827_v8 = vadd.f32 1.0, %v3848_v55  ;;  %21 = vst [vmem:[#allocation3] sm:$0x1] %v20_v13 }
 0x853   :  { %3853 = vrcp.f32 %v2820_v41 }
 0x854   :  { %3855 = vrcp.f32 %v2827_v8 }
 0x85c   :  { %v3852_v18 = vpop.eup %3851 }
 0x85d   :  { %v3854_v44 = vpop.eup %3853  ;;  %v2831_v20 = vmul.f32 %v3852_v18, %v3850_v14 }
 0x85e   :  { %v2830_v21 = vmul.f32 %v3854_v44, %v5978_v11  ;;  %v3856_v60 = vpop.eup %3855 }
 0x860   :  { %v2832_v56 = vadd.f32 %v2831_v20, %v2830_v21  ;;  %v2759_v46 = vpop.f32.mrb[84].mxu0  ;;  %v2800_v6 = vpop.f32.mrb[100].mxu1 }
 0x861   :  { %v2807_v17 = vadd.f32 %v2759_v46, %v6539_v43  ;;  %v2809_v34 = vadd.f32 %v2800_v6, %v6540_v28  ;;  %v2761_v54 = vpop.f32.mrb[85].mxu0  ;;  %v2802_v0 = vpop.f32.mrb[101].mxu1 }
 0x862   :  { %3857 = vtanh.f32 %v2832_v56  ;;  %v2808_v27 = vadd.f32 %v2761_v54, %v6541_v35  ;;  %v2810_v31 = vadd.f32 %v2802_v0, %v6542_v47  ;;  %v2763_v62 = vpop.f32.mrb[86].mxu0  ;;  %v2804_v40 = vpop.f32.mrb[102].mxu1  ;;  %v3398_v56 = vld [vmem:[%s6209_s10] ss:$0 sm:$0xff] }
 0x863   :  { %v3371_v7 = vmul.f32 -1.442695, %v2807_v17  ;;  %v2764_v57 = vpop.f32.mrb[87].mxu0  ;;  %v2805_v11 = vpop.f32.mrb[103].mxu1  ;;  %v3400_v35 = vld [vmem:[#allocation3] ss:$0 sm:$0xff] }
 0x864   :  { %v3372_v39 = vmul.f32 -1.442695, %v2808_v27  ;;  %v3373_v24 = vmul.f32 -1.442695, %v2810_v31 }
 0x865   :  { %3859 = vpow2.f32 %v3371_v7 }
 0x866   :  { %3861 = vpow2.f32 %v3372_v39 }
 0x867   :  { %3863 = vpow2.f32 %v3373_v24 }
 0x868   :  { %3865 = vtanh.f32 %v2809_v34  ;;  %v3399_v34 = vld [vmem:[%s6210_s11] ss:$0 sm:$0xff] }
 0x86c   :  { %v3858_v50 = vpop.eup %3857 }
 0x86d   :  { %v2834_v12 = vmul.f32 %v3858_v50, %v3856_v60 }
 0x86f   :  { %v3860_v9 = vpop.eup %3859  ;;  %v2835_v5 = vsel %vm1168_vm11, %v2834_v12, %v5983_v2 }
 0x870   :  { %v3862_v19 = vpop.eup %3861  ;;  %v2839_v53 = vadd.f32 1.0, %v3860_v9  ;;  %v2861_v49 = vpack.c.bf16 %v2835_v5, %v2835_v5 }
 0x871   :  { %v2845_v30 = vadd.f32 1.0, %v3862_v19  ;;  %v3864_v63 = vpop.eup %3863 }
 0x872   :  { %3867 = vrcp.f32 %v2839_v53  ;;  %3465 = vmatmul.mubr.bf16.vlgmr.msra.gmra.mrb[104].mxu1 %v2861_v49  ;;  %v3866_v1 = vpop.eup %3865  ;;  %v2852_v4 = vadd.f32 1.0, %v3864_v63 }
 0x873   :  { %3869 = vrcp.f32 %v2845_v30 }
 0x874   :  { %3871 = vrcp.f32 %v2852_v4 }
 0x87c   :  { %v3868_v23 = vpop.eup %3867 }
 0x87d   :  { %v3870_v52 = vpop.eup %3869  ;;  %v2856_v38 = vmul.f32 %v3868_v23, %v3866_v1 }
 0x87e   :  { %v2855_v42 = vmul.f32 %v3870_v52, %v6025_v25  ;;  %v3872_v2 = vpop.eup %3871  ;;  %v3612_v25 = vld [vmem:[%s6206_s9 + $0x8] sm:$0xff]  }
 0x880   :  { %v2857_v26 = vadd.f32 %v2856_v38, %v2855_v42 }
 0x882   :  { %3873 = vtanh.f32 %v2857_v26 }
 0x88c   :  { %v3874_v32 = vpop.eup %3873 }
 0x88d   :  { %v2859_v48 = vmul.f32 %v3874_v32, %v3872_v2 }
 0x88f   :  { %v2860_v16 = vsel %vm1136_vm9, %v2859_v48, %v6058_v51  ;;  %v3613_v51 = vld [vmem:[%s6206_s9 + $0x10] sm:$0xff]  }
 0x890   :  { %v2878_v59 = vpack.c.bf16 %v2860_v16, %v2860_v16 }
 0x892   :  { %3445 = vmatmul.mubr.bf16.vlgmr.msra.gmra.mrb[88].mxu0 %v2878_v59 }
 0x893   :  { %3469 = vmatpush3.bf16.msra.mxu0 %v3611_v36  ;;  %3484 = vmatprep.mubr.msk.bf16.mxu0 %vm4005_vm3, %v4004_v61 }
 0x894   :  { %3470 = vmatprep.subr.bf16.mxu0 %v4004_v61 }
 0x897   :  { %3471 = vmatpush3.bf16.msra.mxu0 %v3612_v25 }
 0x898   :  { %3472 = vmatprep.subr.bf16.mxu0 %v4004_v61 }
 0x89b   :  { %3473 = vmatpush3.bf16.msra.mxu0 %v3613_v51 }
 0x89c   :  { %3474 = vmatprep.subr.bf16.mxu0 %v4004_v61 }
 0x89f   :  { %3475 = vmatpush3.bf16.msra.mxu0 %v3614_v3 }
 0x8a0   :  { %3476 = vmatprep.subr.bf16.mxu0 %v4004_v61 }
 0x8a3   :  { %3477 = vmatpush3.bf16.msra.mxu0 %v3615_v37 }
 0x8a4   :  { %3478 = vmatprep.subr.bf16.mxu0 %v4004_v61 }
 0x8a7   :  { %3479 = vmatpush3.bf16.msra.mxu0 %v3616_v22 }
 0x8a8   :  { %3480 = vmatprep.subr.bf16.mxu0 %v4004_v61 }
 0x8ab   :  { %3481 = vmatpush3.bf16.msra.mxu0 %v3617_v29 }
 0x8ac   :  { %3482 = vmatprep.subr.bf16.mxu0 %v4004_v61 }
 0x8af   :  { %3483 = vmatpush3.bf16.msra.mxu0 %v3618_v45 }
 0x8b2   :  { %3485 = vmatmul.mubr.bf16.vlgmr.msra.gmra.mrb[92].mxu0 %v3071_v10 }
 0x945   :  { %v3065_v33 = vpop.f32.mrb[104].mxu1 }
 0x946   :  { %v3466_v41 = vpop.f32.mrb[105].mxu1 }
 0x947   :  { %v3068_v55 = vpop.f32.mrb[106].mxu1 }
 0x948   :  { %v3467_v14 = vpop.f32.mrb[107].mxu1 }
 0x965   :  { %v2977_v18 = vpop.f32.mrb[88].mxu0 }
 0x966   :  { %v3066_v44 = vadd.f32 %v3065_v33, %v2977_v18  ;;  %v3446_v20 = vpop.f32.mrb[89].mxu0 }
 0x967   :  { %v2980_v8 = vpop.f32.mrb[90].mxu0 }
 0x968   :  { %v3447_v61 = vpop.f32.mrb[91].mxu0 }
 0x985   :  { %v3170_v21 = vpop.f32.mrb[92].mxu0 }
 0x986   :  { %v3176_v46 = vadd.f32 %v3170_v21, %v3066_v44  ;;  %v3486_v6 = vpop.f32.mrb[93].mxu0 }
 0x987   :  { %v3173_v43 = vpop.f32.mrb[94].mxu0 }
 0x988   :  { %v3184_v17 = vadd.f32 %v3398_v56, %v3176_v46  ;;  %v3487_v28 = vpop.f32.mrb[95].mxu0 }
 0x98a   :  { %3185 = vst [vmem:[%s6211_s14] sm:$0xff] %v3184_v17  ;;  %v3186_v54 = vmax.f32 %v3184_v17, 0.0 }
 0x98c   :  { %v3194_v0 = vmul.f32 %v3399_v34, %v3186_v54 }
 0x98e   :  { %3195 = vadd.xlane.f32.xlu0 %v3194_v0 }
 0xa1b   :  { %v3196_v27 = vpop.xlane.xlu0 %3195 }
 0xa1c   :  { %v3204_v47 = vadd.f32 %v3400_v35, %v3196_v27 }
 0xa1e   :  { %3206 = vst.msk [vmem:[%s6212_s13] sm:$0xff] %vm3205_vm4, %v3204_v47 }

</bundles_post_ra>
